<compile_context>
chip_gen: v7x
topology: tpu7x:2x2x1
jax: 0.10.0
libtpu: 0.0.40
codegen_flags: <defaults>
</compile_context>

<pallas_src>
import math
from functools import partial

import jax
import jax.numpy as jnp
from jax.experimental import pallas as pl
from jax.experimental.pallas import tpu as pltpu

EPS = 1e-15        # PyG GMMConv epsilon (kept for parity; no-op in f32 vs sigma^2 ~ 0.1)
NEG_BIG = -1e30    # finite "-inf" for padded logit lanes (exp underflows to exactly 0)
LANES = 128        # pad every feature dim to one full lane tile
SUBLANES = 8

VMEM = pl.BlockSpec(memory_space=pltpu.MemorySpace.VMEM)
SMEM = pl.BlockSpec(memory_space=pltpu.MemorySpace.SMEM)


# --------------------------------------------------------------------------- fused kernel

def _monet_fused_kernel(*refs, n_monet, n_interm, K):
    """Entire MoNet forward in one kernel; all intermediates stay in VMEM/vregs."""
    i = 0
    mu_refs, iv_refs = [], []
    for _ in range(n_monet):                       # SMEM scalar params per GMM layer
        mu_refs.append(refs[i]); iv_refs.append(refs[i + 1]); i += 2
    x_ref, ea_ref, srcc_ref, dstr_ref, bat_ref = refs[i:i + 5]; i += 5
    g_refs, root_refs, bias_refs = [], [], []
    for _ in range(n_monet):
        g_refs.append(refs[i]); root_refs.append(refs[i + 1]); bias_refs.append(refs[i + 2]); i += 3
    lw_refs, lb_refs, lm_refs = [], [], []
    for _ in range(n_interm):
        lw_refs.append(refs[i]); lb_refs.append(refs[i + 1]); lm_refs.append(refs[i + 2]); i += 3
    wf_ref, bf_ref, out_ref = refs[i], refs[i + 1], refs[i + 2]

    f32 = jnp.float32
    bf16 = jnp.bfloat16
    N, FP = x_ref.shape
    E = ea_ref.shape[0]
    BP = out_ref.shape[0]

    x_bf = x_ref[...]              # [N, 128] bf16  (cat([pos, feat]) zero-padded)
    ea = ea_ref[...]               # [E, 2]   f32   pseudo-coordinates (valid for all layers:
                                   #                identity clustering keeps edges unchanged)
    ea0 = ea[:, 0:1]
    ea1 = ea[:, 1:2]

    # Gather / scatter-mean / mean-pool expressed as one-hot MXU matmuls.  One-hot matrices are
    # built in-register from int32 index vectors (broadcasted_iota compare), cast to bf16 (exact
    # for 0/1) so every matmul runs at native bf16 MXU rate.
    iota_en = jax.lax.broadcasted_iota(jnp.int32, (E, N), 1)
    gath_src = (iota_en == srcc_ref[...]).astype(f32).astype(bf16)      # [E, N]: row e one-hot at src[e]
    iota_ne = jax.lax.broadcasted_iota(jnp.int32, (N, E), 0)
    s_dst = (iota_ne == dstr_ref[...]).astype(f32)                      # [N, E]: scatter to dst
    indeg = jnp.maximum(jnp.sum(s_dst, axis=1, keepdims=True), 1.0)
    p_mean = (s_dst * pl.reciprocal(indeg, approx=True)).astype(bf16)   # 'mean' aggregation
    iota_bn = jax.lax.broadcasted_iota(jnp.int32, (BP, N), 0)
    q_hot = (iota_bn == bat_ref[...]).astype(f32)                       # [BP, N] graph membership
    gsize = jnp.maximum(jnp.sum(q_hot, axis=1, keepdims=True), 1.0)
    q_mean = (q_hot * pl.reciprocal(gsize, approx=True)).astype(bf16)   # global_mean_pool

    # ---------------- GMMConv stack ----------------
    for layer in range(n_monet):
        mu, iv = mu_refs[layer], iv_refs[layer]                         # SMEM [K, 2]
        xe = jnp.dot(gath_src, x_bf, preferred_element_type=f32).astype(bf16)   # x[src] -> [E,128]

        # K-component Gaussian mixture as ONE wide contraction:
        #   msg = sum_k w_k * (xe @ g_k)  ==  [w_0*xe | ... | w_{K-1}*xe] @ vstack(g_k)
        slabs = []
        for k in range(K):                                              # K small & static -> unrolled
            d0 = ea0 - mu[k, 0]
            d1 = ea1 - mu[k, 1]
            wk = jnp.exp(-0.5 * (d0 * d0 * iv[k, 0] + d1 * d1 * iv[k, 1]))       # [E, 1] f32 (EUP)
            slabs.append(wk.astype(bf16) * xe)
        xs = jnp.concatenate(slabs, axis=-1)                            # [E, K*128] bf16 (lane-aligned)
        msg = jnp.dot(xs, g_refs[layer][...], preferred_element_type=f32)        # [E, 128]

        agg = jnp.dot(p_mean, msg.astype(bf16), preferred_element_type=f32)      # scatter-mean [N,128]
        x = agg + jnp.dot(x_bf, root_refs[layer][...], preferred_element_type=f32) + bias_refs[layer][...]

        if layer < n_monet - 1:
            x = jnp.maximum(x, 0.0)                                     # F.relu
            # TODO(synk): graclus greedy matching + max_pool graph coarsening are sequential,
            # data-dependent graph rewrites with no clean Pallas equivalent; identity clustering is
            # used, under which the T.Cartesian edge_attr recompute equals the input edge_attr and
            # is therefore dropped entirely (normalized_cut_2d is dead as well).
        x_bf = x.astype(bf16)

    # -------- head: global_mean_pool -> [relu(Linear) -> dropout]* -> Linear -> log_softmax ------
    pooled = jnp.dot(q_mean, x_bf, preferred_element_type=f32)          # [BP, 128]
    h = pooled
    for j in range(n_interm):
        # reference re-pools an unchanged data.x every iteration -> reuse `pooled`
        h = jnp.maximum(jnp.dot(pooled.astype(bf16), lw_refs[j][...], preferred_element_type=f32)
                        + lb_refs[j][...], 0.0)
        h = h * lm_refs[j][...]                                         # F.dropout (p=0.5, training)
    z = jnp.dot(h.astype(bf16), wf_ref[...], preferred_element_type=f32) + bf_ref[...]
    z = z - jnp.max(z, axis=-1, keepdims=True)                          # log_softmax over padded lanes
    out_ref[...] = z - jnp.log(jnp.sum(jnp.exp(z), axis=-1, keepdims=True))


# --------------------------------------------------------------------------- param preparation

def _pad2(a, rows, cols, fill=0.0):
    out = jnp.full((rows, cols), fill, jnp.float32)
    return out.at[: a.shape[0], : a.shape[1]].set(a.astype(jnp.float32))


def prepare_params(params, *, num_graphs, dropout_key):
    """Pad / cast all weights to MXU-friendly layouts ONCE, outside the per-step call path."""
    monet, lin = params["monet"], params["lin"]
    n_interm = len(lin) - 1
    BP = max(SUBLANES, -(-num_graphs // SUBLANES) * SUBLANES)

    mus, ivs, gs, roots, biases = [], [], [], [], []
    for lp in monet:
        mus.append(lp["mu"].astype(jnp.float32))                        # SMEM [K,2]
        ivs.append(1.0 / (EPS + lp["sigma"].astype(jnp.float32) ** 2))  # SMEM [K,2]
        K, fin, fout = lp["g"].shape
        gp = jnp.zeros((K, LANES, LANES), jnp.float32).at[:, :fin, :fout].set(lp["g"].astype(jnp.float32))
        gs.append(gp.reshape(K * LANES, LANES).astype(jnp.bfloat16))    # K slabs stacked on contraction axis
        roots.append(_pad2(lp["root"], LANES, LANES).astype(jnp.bfloat16))
        biases.append(_pad2(lp["bias"][None, :], 1, LANES))

    keys = jax.random.split(dropout_key, max(n_interm, 1))
    lws, lbs, masks = [], [], []
    for j in range(n_interm):
        lws.append(_pad2(lin[j]["w"], LANES, LANES).astype(jnp.bfloat16))
        lbs.append(_pad2(lin[j]["b"][None, :], 1, LANES))
        keep = jax.random.bernoulli(keys[j], 0.5, (BP, LANES)).astype(jnp.float32)
        masks.append(keep * 2.0)                                        # dropout p=0.5 -> 1/(1-p)=2 scaling
    wf = _pad2(lin[-1]["w"], LANES, LANES).astype(jnp.bfloat16)
    bf = _pad2(lin[-1]["b"][None, :], 1, LANES, fill=NEG_BIG)           # padded lanes -> ~-inf logits

    return dict(mu=mus, iv=ivs, g=gs, root=roots, bias=biases,
                lw=lws, lb=lbs, mask=masks, wf=wf, bf=bf)


# --------------------------------------------------------------------------- wrapper

@partial(jax.jit, static_argnames=("num_graphs", "num_classes"))
def monet_forward(prepped, pos, feat, edge_index, edge_attr, batch, *, num_graphs, num_classes):
    """data.x = cat([pos, x], 1); GMMConv stack; pooled MLP head.  One fused pallas_call."""
    N = pos.shape[0]
    E = edge_index.shape[1]
    n_monet = len(prepped["mu"])
    n_interm = len(prepped["lw"])
    K = prepped["mu"][0].shape[0]
    FP = LANES
    BP = max(SUBLANES, -(-num_graphs // SUBLANES) * SUBLANES)

    x0 = jnp.concatenate([pos, feat], axis=1)                           # data.x = cat([pos, x], 1)
    x_pad = jnp.zeros((N, FP), jnp.bfloat16).at[:, : x0.shape[1]].set(x0.astype(jnp.bfloat16))

    smem_args, smem_specs = [], []
    for m, v in zip(prepped["mu"], prepped["iv"]):
        smem_args += [m, v]
        smem_specs += [SMEM, SMEM]

    vmem_args = [
        x_pad,                                                          # node features, 128-lane bf16
        edge_attr.astype(jnp.float32),                                  # [E, 2] pseudo-coordinates
        edge_index[0].astype(jnp.int32)[:, None],                       # src column [E, 1]
        edge_index[1].astype(jnp.int32)[None, :],                       # dst row    [1, E]
        batch.astype(jnp.int32)[None, :],                               # batch row  [1, N]
    ]
    for g, r, b in zip(prepped["g"], prepped["root"], prepped["bias"]):
        vmem_args += [g, r, b]
    for w, b, m in zip(prepped["lw"], prepped["lb"], prepped["mask"]):
        vmem_args += [w, b, m]
    vmem_args += [prepped["wf"], prepped["bf"]]

    flops = 0
    for _ in range(n_monet):
        flops += 2 * E * N * FP + 2 * E * (K * FP) * FP + 2 * N * E * FP + 2 * N * FP * FP
    flops += 2 * BP * N * FP + (n_interm + 1) * 2 * BP * FP * FP
    nbytes = sum(int(a.size) * a.dtype.itemsize for a in smem_args + vmem_args) + BP * FP * 4

    out = pl.pallas_call(
        partial(_monet_fused_kernel, n_monet=n_monet, n_interm=n_interm, K=K),
        out_shape=jax.ShapeDtypeStruct((BP, FP), jnp.float32),
        in_specs=smem_specs + [VMEM] * len(vmem_args),
        out_specs=VMEM,
        compiler_params=pltpu.CompilerParams(vmem_limit_bytes=32 * 1024 * 1024),
        cost_estimate=pl.CostEstimate(
            flops=flops,
            transcendentals=n_monet * K * E + BP * FP + N + BP,
            bytes_accessed=nbytes),
    )(*smem_args, *vmem_args)

    return out[:num_graphs, :num_classes]                               # strip sublane/lane padding


# --------------------------------------------------------------------------- init / main

def init_gmm_params(key, fin, fout, K):
    k1, k2, k3, k4 = jax.random.split(key, 4)
    s = 1.0 / math.sqrt(fin)
    return dict(
        g=jax.random.normal(k1, (K, fin, fout), jnp.float32) * s,
        mu=jax.random.normal(k2, (K, 2), jnp.float32) * 0.3 + 0.5,
        sigma=jnp.abs(jax.random.normal(k3, (K, 2), jnp.float32)) * 0.3 + 0.3,
        root=jax.random.normal(k4, (fin, fout), jnp.float32) * s,
        bias=jnp.zeros((fout,), jnp.float32),
    )


def init_linear_params(key, fin, fout):
    k1, k2 = jax.random.split(key)
    s = 1.0 / math.sqrt(fin)
    return dict(
        w=jax.random.normal(k1, (fin, fout), jnp.float32) * s,
        b=jax.random.normal(k2, (fout,), jnp.float32) * s,
    )


if __name__ == "__main__":
    # config: num_node_features=3 (2 pos + 1 raw feature), hidden_layer_sizes=(8,16),
    #         kernel_size=4 (dim=2), intermediate_layer_sizes=(32,), num_classes=4
    NUM_NODE_FEATURES = 3
    MONET_SIZES = [NUM_NODE_FEATURES, 8, 16]
    LINEAR_SIZES = [MONET_SIZES[-1], 32, 4]
    KERNEL_SIZE = 4
    NUM_CLASSES = LINEAR_SIZES[-1]

    B = 2                      # graphs in the batch
    NODES_PER_GRAPH = 32
    N = B * NODES_PER_GRAPH    # 64 nodes
    E_PER_GRAPH = 64
    E = B * E_PER_GRAPH        # 128 directed edges

    key = jax.random.PRNGKey(0)
    k_pos, k_feat, k_src, k_dst, k_par, k_drop = jax.random.split(key, 6)

    pos = jax.random.uniform(k_pos, (N, 2), jnp.float32)
    feat = jax.random.normal(k_feat, (N, 1), jnp.float32)
    batch = jnp.repeat(jnp.arange(B, dtype=jnp.int32), NODES_PER_GRAPH)

    graph_of_edge = jnp.repeat(jnp.arange(B, dtype=jnp.int32), E_PER_GRAPH)
    src = jax.random.randint(k_src, (E,), 0, NODES_PER_GRAPH, dtype=jnp.int32) + graph_of_edge * NODES_PER_GRAPH
    dst = jax.random.randint(k_dst, (E,), 0, NODES_PER_GRAPH, dtype=jnp.int32) + graph_of_edge * NODES_PER_GRAPH
    edge_index = jnp.stack([src, dst])

    # dataset-style initial edge_attr: T.Cartesian(norm=True, cat=False) of pos (data prep, not model)
    cart0 = pos[src] - pos[dst]
    edge_attr = cart0 / (2.0 * jnp.max(jnp.abs(cart0))) + 0.5

    keys = jax.random.split(k_par, len(MONET_SIZES) - 1 + len(LINEAR_SIZES) - 1)
    monet_params = [
        init_gmm_params(keys[i], MONET_SIZES[i], MONET_SIZES[i + 1], KERNEL_SIZE)
        for i in range(len(MONET_SIZES) - 1)
    ]
    lin_params = [
        init_linear_params(keys[len(MONET_SIZES) - 1 + j], LINEAR_SIZES[j], LINEAR_SIZES[j + 1])
        for j in range(len(LINEAR_SIZES) - 1)
    ]
    params = dict(monet=monet_params, lin=lin_params)

    # Pad / cast parameters once, outside the jitted per-step path.
    prepped = prepare_params(params, num_graphs=B, dropout_key=k_drop)

    out = monet_forward(prepped, pos, feat, edge_index, edge_attr, batch,
                        num_graphs=B, num_classes=NUM_CLASSES)
    out = jax.block_until_ready(out)
    assert out.shape == (B, NUM_CLASSES)
    assert bool(jnp.isfinite(out).all())
    print("KERNEL_OK")
</pallas_src>

<mosaic_0001>
module attributes {stable_mosaic.version = 11 : i64} {
  func.func @_monet_fused_kernel(%arg0: memref<4x2xf32, #tpu.memory_space<smem>>, %arg1: memref<4x2xf32, #tpu.memory_space<smem>>, %arg2: memref<4x2xf32, #tpu.memory_space<smem>>, %arg3: memref<4x2xf32, #tpu.memory_space<smem>>, %arg4: memref<64x128xbf16, #tpu.memory_space<vmem>>, %arg5: memref<128x2xf32, #tpu.memory_space<vmem>>, %arg6: memref<128x1xi32, #tpu.memory_space<vmem>>, %arg7: memref<1x128xi32, #tpu.memory_space<vmem>>, %arg8: memref<1x64xi32, #tpu.memory_space<vmem>>, %arg9: memref<512x128xbf16, #tpu.memory_space<vmem>>, %arg10: memref<128x128xbf16, #tpu.memory_space<vmem>>, %arg11: memref<1x128xf32, #tpu.memory_space<vmem>>, %arg12: memref<512x128xbf16, #tpu.memory_space<vmem>>, %arg13: memref<128x128xbf16, #tpu.memory_space<vmem>>, %arg14: memref<1x128xf32, #tpu.memory_space<vmem>>, %arg15: memref<128x128xbf16, #tpu.memory_space<vmem>>, %arg16: memref<1x128xf32, #tpu.memory_space<vmem>>, %arg17: memref<8x128xf32, #tpu.memory_space<vmem>>, %arg18: memref<128x128xbf16, #tpu.memory_space<vmem>>, %arg19: memref<1x128xf32, #tpu.memory_space<vmem>>, %arg20: memref<8x128xf32, #tpu.memory_space<vmem>>) attributes {dimension_semantics = [], scalar_prefetch = 0 : i64, scratch_operands = 0 : i64, tpu.core_type = #tpu.core_type<tc>} {
    %c0 = arith.constant 0 : index
    %c0_0 = arith.constant 0 : index
    %0 = vector.load %arg4[%c0, %c0_0] : memref<64x128xbf16, #tpu.memory_space<vmem>>, vector<64x128xbf16>
    %c0_1 = arith.constant 0 : index
    %c0_2 = arith.constant 0 : index
    %1 = vector.load %arg5[%c0_1, %c0_2] : memref<128x2xf32, #tpu.memory_space<vmem>>, vector<128x2xf32>
    %2 = vector.extract_strided_slice %1 {offsets = [0, 0], sizes = [128, 1], strides = [1, 1]} : vector<128x2xf32> to vector<128x1xf32>
    %3 = vector.extract_strided_slice %1 {offsets = [0, 1], sizes = [128, 1], strides = [1, 1]} : vector<128x2xf32> to vector<128x1xf32>
    %4 = tpu.iota {dimensions = array<i32: 1>} : vector<128x64xi32>
    %c0_3 = arith.constant 0 : index
    %c0_4 = arith.constant 0 : index
    %5 = vector.load %arg6[%c0_3, %c0_4] : memref<128x1xi32, #tpu.memory_space<vmem>>, vector<128x1xi32>
    %6 = vector.broadcast %5 : vector<128x1xi32> to vector<128x64xi32>
    %7 = arith.cmpi eq, %4, %6 : vector<128x64xi32>
    %8 = arith.extui %7 : vector<128x64xi1> to vector<128x64xi32>
    %9 = arith.sitofp %8 : vector<128x64xi32> to vector<128x64xf32>
    %10 = arith.truncf %9 : vector<128x64xf32> to vector<128x64xbf16>
    %11 = tpu.iota {dimensions = array<i32: 0>} : vector<64x128xi32>
    %c0_5 = arith.constant 0 : index
    %c0_6 = arith.constant 0 : index
    %12 = vector.load %arg7[%c0_5, %c0_6] : memref<1x128xi32, #tpu.memory_space<vmem>>, vector<1x128xi32>
    %13 = vector.broadcast %12 : vector<1x128xi32> to vector<64x128xi32>
    %14 = arith.cmpi eq, %11, %13 : vector<64x128xi32>
    %15 = arith.extui %14 : vector<64x128xi1> to vector<64x128xi32>
    %16 = arith.sitofp %15 : vector<64x128xi32> to vector<64x128xf32>
    %cst = arith.constant dense<0.000000e+00> : vector<64xf32>
    %17 = vector.multi_reduction <add>, %16, %cst [1] : vector<64x128xf32> to vector<64xf32>
    %18 = vector.shape_cast %17 : vector<64xf32> to vector<64x1xf32>
    %cst_7 = arith.constant 1.000000e+00 : f32
    %19 = vector.broadcast %cst_7 : f32 to vector<64x1xf32>
    %20 = arith.maximumf %18, %19 : vector<64x1xf32>
    %21 = tpu.reciprocal %20 {approx = true} : vector<64x1xf32> -> vector<64x1xf32>
    %22 = vector.broadcast %21 : vector<64x1xf32> to vector<64x128xf32>
    %23 = arith.mulf %16, %22 : vector<64x128xf32>
    %24 = arith.truncf %23 : vector<64x128xf32> to vector<64x128xbf16>
    %25 = tpu.iota {dimensions = array<i32: 0>} : vector<8x64xi32>
    %c0_8 = arith.constant 0 : index
    %c0_9 = arith.constant 0 : index
    %26 = vector.load %arg8[%c0_8, %c0_9] : memref<1x64xi32, #tpu.memory_space<vmem>>, vector<1x64xi32>
    %27 = vector.broadcast %26 : vector<1x64xi32> to vector<8x64xi32>
    %28 = arith.cmpi eq, %25, %27 : vector<8x64xi32>
    %29 = arith.extui %28 : vector<8x64xi1> to vector<8x64xi32>
    %30 = arith.sitofp %29 : vector<8x64xi32> to vector<8x64xf32>
    %cst_10 = arith.constant dense<0.000000e+00> : vector<8xf32>
    %31 = vector.multi_reduction <add>, %30, %cst_10 [1] : vector<8x64xf32> to vector<8xf32>
    %32 = vector.shape_cast %31 : vector<8xf32> to vector<8x1xf32>
    %cst_11 = arith.constant 1.000000e+00 : f32
    %33 = vector.broadcast %cst_11 : f32 to vector<8x1xf32>
    %34 = arith.maximumf %32, %33 : vector<8x1xf32>
    %35 = tpu.reciprocal %34 {approx = true} : vector<8x1xf32> -> vector<8x1xf32>
    %36 = vector.broadcast %35 : vector<8x1xf32> to vector<8x64xf32>
    %37 = arith.mulf %30, %36 : vector<8x64xf32>
    %38 = arith.truncf %37 : vector<8x64xf32> to vector<8x64xbf16>
    %cst_12 = arith.constant dense<0.000000e+00> : vector<128x128xf32>
    %39 = tpu.matmul %10, %0, %cst_12 {dimension_numbers = #tpu.dot_dimension_numbers<[1], [0], [0], [1], [0, 0, 1, 1], [], []>} : vector<128x64xbf16>, vector<64x128xbf16>, vector<128x128xf32> -> vector<128x128xf32>
    %40 = arith.truncf %39 : vector<128x128xf32> to vector<128x128xbf16>
    %c0_13 = arith.constant 0 : index
    %c0_14 = arith.constant 0 : index
    %41 = memref.load %arg0[%c0_13, %c0_14] : memref<4x2xf32, #tpu.memory_space<smem>>
    %42 = vector.broadcast %41 : f32 to vector<128x1xf32>
    %43 = arith.subf %2, %42 : vector<128x1xf32>
    %c0_15 = arith.constant 0 : index
    %c1 = arith.constant 1 : index
    %44 = memref.load %arg0[%c0_15, %c1] : memref<4x2xf32, #tpu.memory_space<smem>>
    %45 = vector.broadcast %44 : f32 to vector<128x1xf32>
    %46 = arith.subf %3, %45 : vector<128x1xf32>
    %47 = arith.mulf %43, %43 : vector<128x1xf32>
    %c0_16 = arith.constant 0 : index
    %c0_17 = arith.constant 0 : index
    %48 = memref.load %arg1[%c0_16, %c0_17] : memref<4x2xf32, #tpu.memory_space<smem>>
    %49 = vector.broadcast %48 : f32 to vector<128x1xf32>
    %50 = arith.mulf %47, %49 : vector<128x1xf32>
    %51 = arith.mulf %46, %46 : vector<128x1xf32>
    %c0_18 = arith.constant 0 : index
    %c1_19 = arith.constant 1 : index
    %52 = memref.load %arg1[%c0_18, %c1_19] : memref<4x2xf32, #tpu.memory_space<smem>>
    %53 = vector.broadcast %52 : f32 to vector<128x1xf32>
    %54 = arith.mulf %51, %53 : vector<128x1xf32>
    %55 = arith.addf %50, %54 : vector<128x1xf32>
    %cst_20 = arith.constant -5.000000e-01 : f32
    %56 = vector.broadcast %cst_20 : f32 to vector<128x1xf32>
    %57 = arith.mulf %56, %55 : vector<128x1xf32>
    %58 = math.exp %57 : vector<128x1xf32>
    %59 = arith.truncf %58 : vector<128x1xf32> to vector<128x1xbf16>
    %60 = vector.broadcast %59 : vector<128x1xbf16> to vector<128x128xbf16>
    %61 = arith.mulf %60, %40 : vector<128x128xbf16>
    %c1_21 = arith.constant 1 : index
    %c0_22 = arith.constant 0 : index
    %62 = memref.load %arg0[%c1_21, %c0_22] : memref<4x2xf32, #tpu.memory_space<smem>>
    %63 = vector.broadcast %62 : f32 to vector<128x1xf32>
    %64 = arith.subf %2, %63 : vector<128x1xf32>
    %c1_23 = arith.constant 1 : index
    %c1_24 = arith.constant 1 : index
    %65 = memref.load %arg0[%c1_23, %c1_24] : memref<4x2xf32, #tpu.memory_space<smem>>
    %66 = vector.broadcast %65 : f32 to vector<128x1xf32>
    %67 = arith.subf %3, %66 : vector<128x1xf32>
    %68 = arith.mulf %64, %64 : vector<128x1xf32>
    %c1_25 = arith.constant 1 : index
    %c0_26 = arith.constant 0 : index
    %69 = memref.load %arg1[%c1_25, %c0_26] : memref<4x2xf32, #tpu.memory_space<smem>>
    %70 = vector.broadcast %69 : f32 to vector<128x1xf32>
    %71 = arith.mulf %68, %70 : vector<128x1xf32>
    %72 = arith.mulf %67, %67 : vector<128x1xf32>
    %c1_27 = arith.constant 1 : index
    %c1_28 = arith.constant 1 : index
    %73 = memref.load %arg1[%c1_27, %c1_28] : memref<4x2xf32, #tpu.memory_space<smem>>
    %74 = vector.broadcast %73 : f32 to vector<128x1xf32>
    %75 = arith.mulf %72, %74 : vector<128x1xf32>
    %76 = arith.addf %71, %75 : vector<128x1xf32>
    %cst_29 = arith.constant -5.000000e-01 : f32
    %77 = vector.broadcast %cst_29 : f32 to vector<128x1xf32>
    %78 = arith.mulf %77, %76 : vector<128x1xf32>
    %79 = math.exp %78 : vector<128x1xf32>
    %80 = arith.truncf %79 : vector<128x1xf32> to vector<128x1xbf16>
    %81 = vector.broadcast %80 : vector<128x1xbf16> to vector<128x128xbf16>
    %82 = arith.mulf %81, %40 : vector<128x128xbf16>
    %c2 = arith.constant 2 : index
    %c0_30 = arith.constant 0 : index
    %83 = memref.load %arg0[%c2, %c0_30] : memref<4x2xf32, #tpu.memory_space<smem>>
    %84 = vector.broadcast %83 : f32 to vector<128x1xf32>
    %85 = arith.subf %2, %84 : vector<128x1xf32>
    %c2_31 = arith.constant 2 : index
    %c1_32 = arith.constant 1 : index
    %86 = memref.load %arg0[%c2_31, %c1_32] : memref<4x2xf32, #tpu.memory_space<smem>>
    %87 = vector.broadcast %86 : f32 to vector<128x1xf32>
    %88 = arith.subf %3, %87 : vector<128x1xf32>
    %89 = arith.mulf %85, %85 : vector<128x1xf32>
    %c2_33 = arith.constant 2 : index
    %c0_34 = arith.constant 0 : index
    %90 = memref.load %arg1[%c2_33, %c0_34] : memref<4x2xf32, #tpu.memory_space<smem>>
    %91 = vector.broadcast %90 : f32 to vector<128x1xf32>
    %92 = arith.mulf %89, %91 : vector<128x1xf32>
    %93 = arith.mulf %88, %88 : vector<128x1xf32>
    %c2_35 = arith.constant 2 : index
    %c1_36 = arith.constant 1 : index
    %94 = memref.load %arg1[%c2_35, %c1_36] : memref<4x2xf32, #tpu.memory_space<smem>>
    %95 = vector.broadcast %94 : f32 to vector<128x1xf32>
    %96 = arith.mulf %93, %95 : vector<128x1xf32>
    %97 = arith.addf %92, %96 : vector<128x1xf32>
    %cst_37 = arith.constant -5.000000e-01 : f32
    %98 = vector.broadcast %cst_37 : f32 to vector<128x1xf32>
    %99 = arith.mulf %98, %97 : vector<128x1xf32>
    %100 = math.exp %99 : vector<128x1xf32>
    %101 = arith.truncf %100 : vector<128x1xf32> to vector<128x1xbf16>
    %102 = vector.broadcast %101 : vector<128x1xbf16> to vector<128x128xbf16>
    %103 = arith.mulf %102, %40 : vector<128x128xbf16>
    %c3 = arith.constant 3 : index
    %c0_38 = arith.constant 0 : index
    %104 = memref.load %arg0[%c3, %c0_38] : memref<4x2xf32, #tpu.memory_space<smem>>
    %105 = vector.broadcast %104 : f32 to vector<128x1xf32>
    %106 = arith.subf %2, %105 : vector<128x1xf32>
    %c3_39 = arith.constant 3 : index
    %c1_40 = arith.constant 1 : index
    %107 = memref.load %arg0[%c3_39, %c1_40] : memref<4x2xf32, #tpu.memory_space<smem>>
    %108 = vector.broadcast %107 : f32 to vector<128x1xf32>
    %109 = arith.subf %3, %108 : vector<128x1xf32>
    %110 = arith.mulf %106, %106 : vector<128x1xf32>
    %c3_41 = arith.constant 3 : index
    %c0_42 = arith.constant 0 : index
    %111 = memref.load %arg1[%c3_41, %c0_42] : memref<4x2xf32, #tpu.memory_space<smem>>
    %112 = vector.broadcast %111 : f32 to vector<128x1xf32>
    %113 = arith.mulf %110, %112 : vector<128x1xf32>
    %114 = arith.mulf %109, %109 : vector<128x1xf32>
    %c3_43 = arith.constant 3 : index
    %c1_44 = arith.constant 1 : index
    %115 = memref.load %arg1[%c3_43, %c1_44] : memref<4x2xf32, #tpu.memory_space<smem>>
    %116 = vector.broadcast %115 : f32 to vector<128x1xf32>
    %117 = arith.mulf %114, %116 : vector<128x1xf32>
    %118 = arith.addf %113, %117 : vector<128x1xf32>
    %cst_45 = arith.constant -5.000000e-01 : f32
    %119 = vector.broadcast %cst_45 : f32 to vector<128x1xf32>
    %120 = arith.mulf %119, %118 : vector<128x1xf32>
    %121 = math.exp %120 : vector<128x1xf32>
    %122 = arith.truncf %121 : vector<128x1xf32> to vector<128x1xbf16>
    %123 = vector.broadcast %122 : vector<128x1xbf16> to vector<128x128xbf16>
    %124 = arith.mulf %123, %40 : vector<128x128xbf16>
    %125 = tpu.concatenate %61, %82, %103, %124 in 1 : vector<128x128xbf16>, vector<128x128xbf16>, vector<128x128xbf16>, vector<128x128xbf16> -> vector<128x512xbf16>
    %c0_46 = arith.constant 0 : index
    %c0_47 = arith.constant 0 : index
    %126 = vector.load %arg9[%c0_46, %c0_47] : memref<512x128xbf16, #tpu.memory_space<vmem>>, vector<512x128xbf16>
    %cst_48 = arith.constant dense<0.000000e+00> : vector<128x128xf32>
    %127 = tpu.matmul %125, %126, %cst_48 {dimension_numbers = #tpu.dot_dimension_numbers<[1], [0], [0], [1], [0, 0, 1, 1], [], []>} : vector<128x512xbf16>, vector<512x128xbf16>, vector<128x128xf32> -> vector<128x128xf32>
    %128 = arith.truncf %127 : vector<128x128xf32> to vector<128x128xbf16>
    %cst_49 = arith.constant dense<0.000000e+00> : vector<64x128xf32>
    %129 = tpu.matmul %24, %128, %cst_49 {dimension_numbers = #tpu.dot_dimension_numbers<[1], [0], [0], [1], [0, 0, 1, 1], [], []>} : vector<64x128xbf16>, vector<128x128xbf16>, vector<64x128xf32> -> vector<64x128xf32>
    %c0_50 = arith.constant 0 : index
    %c0_51 = arith.constant 0 : index
    %130 = vector.load %arg10[%c0_50, %c0_51] : memref<128x128xbf16, #tpu.memory_space<vmem>>, vector<128x128xbf16>
    %cst_52 = arith.constant dense<0.000000e+00> : vector<64x128xf32>
    %131 = tpu.matmul %0, %130, %cst_52 {dimension_numbers = #tpu.dot_dimension_numbers<[1], [0], [0], [1], [0, 0, 1, 1], [], []>} : vector<64x128xbf16>, vector<128x128xbf16>, vector<64x128xf32> -> vector<64x128xf32>
    %132 = arith.addf %129, %131 : vector<64x128xf32>
    %c0_53 = arith.constant 0 : index
    %c0_54 = arith.constant 0 : index
    %133 = vector.load %arg11[%c0_53, %c0_54] : memref<1x128xf32, #tpu.memory_space<vmem>>, vector<1x128xf32>
    %134 = vector.broadcast %133 : vector<1x128xf32> to vector<64x128xf32>
    %135 = arith.addf %132, %134 : vector<64x128xf32>
    %cst_55 = arith.constant 0.000000e+00 : f32
    %136 = vector.broadcast %cst_55 : f32 to vector<64x128xf32>
    %137 = arith.maximumf %135, %136 : vector<64x128xf32>
    %138 = arith.truncf %137 : vector<64x128xf32> to vector<64x128xbf16>
    %cst_56 = arith.constant dense<0.000000e+00> : vector<128x128xf32>
    %139 = tpu.matmul %10, %138, %cst_56 {dimension_numbers = #tpu.dot_dimension_numbers<[1], [0], [0], [1], [0, 0, 1, 1], [], []>} : vector<128x64xbf16>, vector<64x128xbf16>, vector<128x128xf32> -> vector<128x128xf32>
    %140 = arith.truncf %139 : vector<128x128xf32> to vector<128x128xbf16>
    %c0_57 = arith.constant 0 : index
    %c0_58 = arith.constant 0 : index
    %141 = memref.load %arg2[%c0_57, %c0_58] : memref<4x2xf32, #tpu.memory_space<smem>>
    %142 = vector.broadcast %141 : f32 to vector<128x1xf32>
    %143 = arith.subf %2, %142 : vector<128x1xf32>
    %c0_59 = arith.constant 0 : index
    %c1_60 = arith.constant 1 : index
    %144 = memref.load %arg2[%c0_59, %c1_60] : memref<4x2xf32, #tpu.memory_space<smem>>
    %145 = vector.broadcast %144 : f32 to vector<128x1xf32>
    %146 = arith.subf %3, %145 : vector<128x1xf32>
    %147 = arith.mulf %143, %143 : vector<128x1xf32>
    %c0_61 = arith.constant 0 : index
    %c0_62 = arith.constant 0 : index
    %148 = memref.load %arg3[%c0_61, %c0_62] : memref<4x2xf32, #tpu.memory_space<smem>>
    %149 = vector.broadcast %148 : f32 to vector<128x1xf32>
    %150 = arith.mulf %147, %149 : vector<128x1xf32>
    %151 = arith.mulf %146, %146 : vector<128x1xf32>
    %c0_63 = arith.constant 0 : index
    %c1_64 = arith.constant 1 : index
    %152 = memref.load %arg3[%c0_63, %c1_64] : memref<4x2xf32, #tpu.memory_space<smem>>
    %153 = vector.broadcast %152 : f32 to vector<128x1xf32>
    %154 = arith.mulf %151, %153 : vector<128x1xf32>
    %155 = arith.addf %150, %154 : vector<128x1xf32>
    %cst_65 = arith.constant -5.000000e-01 : f32
    %156 = vector.broadcast %cst_65 : f32 to vector<128x1xf32>
    %157 = arith.mulf %156, %155 : vector<128x1xf32>
    %158 = math.exp %157 : vector<128x1xf32>
    %159 = arith.truncf %158 : vector<128x1xf32> to vector<128x1xbf16>
    %160 = vector.broadcast %159 : vector<128x1xbf16> to vector<128x128xbf16>
    %161 = arith.mulf %160, %140 : vector<128x128xbf16>
    %c1_66 = arith.constant 1 : index
    %c0_67 = arith.constant 0 : index
    %162 = memref.load %arg2[%c1_66, %c0_67] : memref<4x2xf32, #tpu.memory_space<smem>>
    %163 = vector.broadcast %162 : f32 to vector<128x1xf32>
    %164 = arith.subf %2, %163 : vector<128x1xf32>
    %c1_68 = arith.constant 1 : index
    %c1_69 = arith.constant 1 : index
    %165 = memref.load %arg2[%c1_68, %c1_69] : memref<4x2xf32, #tpu.memory_space<smem>>
    %166 = vector.broadcast %165 : f32 to vector<128x1xf32>
    %167 = arith.subf %3, %166 : vector<128x1xf32>
    %168 = arith.mulf %164, %164 : vector<128x1xf32>
    %c1_70 = arith.constant 1 : index
    %c0_71 = arith.constant 0 : index
    %169 = memref.load %arg3[%c1_70, %c0_71] : memref<4x2xf32, #tpu.memory_space<smem>>
    %170 = vector.broadcast %169 : f32 to vector<128x1xf32>
    %171 = arith.mulf %168, %170 : vector<128x1xf32>
    %172 = arith.mulf %167, %167 : vector<128x1xf32>
    %c1_72 = arith.constant 1 : index
    %c1_73 = arith.constant 1 : index
    %173 = memref.load %arg3[%c1_72, %c1_73] : memref<4x2xf32, #tpu.memory_space<smem>>
    %174 = vector.broadcast %173 : f32 to vector<128x1xf32>
    %175 = arith.mulf %172, %174 : vector<128x1xf32>
    %176 = arith.addf %171, %175 : vector<128x1xf32>
    %cst_74 = arith.constant -5.000000e-01 : f32
    %177 = vector.broadcast %cst_74 : f32 to vector<128x1xf32>
    %178 = arith.mulf %177, %176 : vector<128x1xf32>
    %179 = math.exp %178 : vector<128x1xf32>
    %180 = arith.truncf %179 : vector<128x1xf32> to vector<128x1xbf16>
    %181 = vector.broadcast %180 : vector<128x1xbf16> to vector<128x128xbf16>
    %182 = arith.mulf %181, %140 : vector<128x128xbf16>
    %c2_75 = arith.constant 2 : index
    %c0_76 = arith.constant 0 : index
    %183 = memref.load %arg2[%c2_75, %c0_76] : memref<4x2xf32, #tpu.memory_space<smem>>
    %184 = vector.broadcast %183 : f32 to vector<128x1xf32>
    %185 = arith.subf %2, %184 : vector<128x1xf32>
    %c2_77 = arith.constant 2 : index
    %c1_78 = arith.constant 1 : index
    %186 = memref.load %arg2[%c2_77, %c1_78] : memref<4x2xf32, #tpu.memory_space<smem>>
    %187 = vector.broadcast %186 : f32 to vector<128x1xf32>
    %188 = arith.subf %3, %187 : vector<128x1xf32>
    %189 = arith.mulf %185, %185 : vector<128x1xf32>
    %c2_79 = arith.constant 2 : index
    %c0_80 = arith.constant 0 : index
    %190 = memref.load %arg3[%c2_79, %c0_80] : memref<4x2xf32, #tpu.memory_space<smem>>
    %191 = vector.broadcast %190 : f32 to vector<128x1xf32>
    %192 = arith.mulf %189, %191 : vector<128x1xf32>
    %193 = arith.mulf %188, %188 : vector<128x1xf32>
    %c2_81 = arith.constant 2 : index
    %c1_82 = arith.constant 1 : index
    %194 = memref.load %arg3[%c2_81, %c1_82] : memref<4x2xf32, #tpu.memory_space<smem>>
    %195 = vector.broadcast %194 : f32 to vector<128x1xf32>
    %196 = arith.mulf %193, %195 : vector<128x1xf32>
    %197 = arith.addf %192, %196 : vector<128x1xf32>
    %cst_83 = arith.constant -5.000000e-01 : f32
    %198 = vector.broadcast %cst_83 : f32 to vector<128x1xf32>
    %199 = arith.mulf %198, %197 : vector<128x1xf32>
    %200 = math.exp %199 : vector<128x1xf32>
    %201 = arith.truncf %200 : vector<128x1xf32> to vector<128x1xbf16>
    %202 = vector.broadcast %201 : vector<128x1xbf16> to vector<128x128xbf16>
    %203 = arith.mulf %202, %140 : vector<128x128xbf16>
    %c3_84 = arith.constant 3 : index
    %c0_85 = arith.constant 0 : index
    %204 = memref.load %arg2[%c3_84, %c0_85] : memref<4x2xf32, #tpu.memory_space<smem>>
    %205 = vector.broadcast %204 : f32 to vector<128x1xf32>
    %206 = arith.subf %2, %205 : vector<128x1xf32>
    %c3_86 = arith.constant 3 : index
    %c1_87 = arith.constant 1 : index
    %207 = memref.load %arg2[%c3_86, %c1_87] : memref<4x2xf32, #tpu.memory_space<smem>>
    %208 = vector.broadcast %207 : f32 to vector<128x1xf32>
    %209 = arith.subf %3, %208 : vector<128x1xf32>
    %210 = arith.mulf %206, %206 : vector<128x1xf32>
    %c3_88 = arith.constant 3 : index
    %c0_89 = arith.constant 0 : index
    %211 = memref.load %arg3[%c3_88, %c0_89] : memref<4x2xf32, #tpu.memory_space<smem>>
    %212 = vector.broadcast %211 : f32 to vector<128x1xf32>
    %213 = arith.mulf %210, %212 : vector<128x1xf32>
    %214 = arith.mulf %209, %209 : vector<128x1xf32>
    %c3_90 = arith.constant 3 : index
    %c1_91 = arith.constant 1 : index
    %215 = memref.load %arg3[%c3_90, %c1_91] : memref<4x2xf32, #tpu.memory_space<smem>>
    %216 = vector.broadcast %215 : f32 to vector<128x1xf32>
    %217 = arith.mulf %214, %216 : vector<128x1xf32>
    %218 = arith.addf %213, %217 : vector<128x1xf32>
    %cst_92 = arith.constant -5.000000e-01 : f32
    %219 = vector.broadcast %cst_92 : f32 to vector<128x1xf32>
    %220 = arith.mulf %219, %218 : vector<128x1xf32>
    %221 = math.exp %220 : vector<128x1xf32>
    %222 = arith.truncf %221 : vector<128x1xf32> to vector<128x1xbf16>
    %223 = vector.broadcast %222 : vector<128x1xbf16> to vector<128x128xbf16>
    %224 = arith.mulf %223, %140 : vector<128x128xbf16>
    %225 = tpu.concatenate %161, %182, %203, %224 in 1 : vector<128x128xbf16>, vector<128x128xbf16>, vector<128x128xbf16>, vector<128x128xbf16> -> vector<128x512xbf16>
    %c0_93 = arith.constant 0 : index
    %c0_94 = arith.constant 0 : index
    %226 = vector.load %arg12[%c0_93, %c0_94] : memref<512x128xbf16, #tpu.memory_space<vmem>>, vector<512x128xbf16>
    %cst_95 = arith.constant dense<0.000000e+00> : vector<128x128xf32>
    %227 = tpu.matmul %225, %226, %cst_95 {dimension_numbers = #tpu.dot_dimension_numbers<[1], [0], [0], [1], [0, 0, 1, 1], [], []>} : vector<128x512xbf16>, vector<512x128xbf16>, vector<128x128xf32> -> vector<128x128xf32>
    %228 = arith.truncf %227 : vector<128x128xf32> to vector<128x128xbf16>
    %cst_96 = arith.constant dense<0.000000e+00> : vector<64x128xf32>
    %229 = tpu.matmul %24, %228, %cst_96 {dimension_numbers = #tpu.dot_dimension_numbers<[1], [0], [0], [1], [0, 0, 1, 1], [], []>} : vector<64x128xbf16>, vector<128x128xbf16>, vector<64x128xf32> -> vector<64x128xf32>
    %c0_97 = arith.constant 0 : index
    %c0_98 = arith.constant 0 : index
    %230 = vector.load %arg13[%c0_97, %c0_98] : memref<128x128xbf16, #tpu.memory_space<vmem>>, vector<128x128xbf16>
    %cst_99 = arith.constant dense<0.000000e+00> : vector<64x128xf32>
    %231 = tpu.matmul %138, %230, %cst_99 {dimension_numbers = #tpu.dot_dimension_numbers<[1], [0], [0], [1], [0, 0, 1, 1], [], []>} : vector<64x128xbf16>, vector<128x128xbf16>, vector<64x128xf32> -> vector<64x128xf32>
    %232 = arith.addf %229, %231 : vector<64x128xf32>
    %c0_100 = arith.constant 0 : index
    %c0_101 = arith.constant 0 : index
    %233 = vector.load %arg14[%c0_100, %c0_101] : memref<1x128xf32, #tpu.memory_space<vmem>>, vector<1x128xf32>
    %234 = vector.broadcast %233 : vector<1x128xf32> to vector<64x128xf32>
    %235 = arith.addf %232, %234 : vector<64x128xf32>
    %236 = arith.truncf %235 : vector<64x128xf32> to vector<64x128xbf16>
    %cst_102 = arith.constant dense<0.000000e+00> : vector<8x128xf32>
    %237 = tpu.matmul %38, %236, %cst_102 {dimension_numbers = #tpu.dot_dimension_numbers<[1], [0], [0], [1], [0, 0, 1, 1], [], []>} : vector<8x64xbf16>, vector<64x128xbf16>, vector<8x128xf32> -> vector<8x128xf32>
    %238 = arith.truncf %237 : vector<8x128xf32> to vector<8x128xbf16>
    %c0_103 = arith.constant 0 : index
    %c0_104 = arith.constant 0 : index
    %239 = vector.load %arg15[%c0_103, %c0_104] : memref<128x128xbf16, #tpu.memory_space<vmem>>, vector<128x128xbf16>
    %cst_105 = arith.constant dense<0.000000e+00> : vector<8x128xf32>
    %240 = tpu.matmul %238, %239, %cst_105 {dimension_numbers = #tpu.dot_dimension_numbers<[1], [0], [0], [1], [0, 0, 1, 1], [], []>} : vector<8x128xbf16>, vector<128x128xbf16>, vector<8x128xf32> -> vector<8x128xf32>
    %c0_106 = arith.constant 0 : index
    %c0_107 = arith.constant 0 : index
    %241 = vector.load %arg16[%c0_106, %c0_107] : memref<1x128xf32, #tpu.memory_space<vmem>>, vector<1x128xf32>
    %242 = vector.broadcast %241 : vector<1x128xf32> to vector<8x128xf32>
    %243 = arith.addf %240, %242 : vector<8x128xf32>
    %cst_108 = arith.constant 0.000000e+00 : f32
    %244 = vector.broadcast %cst_108 : f32 to vector<8x128xf32>
    %245 = arith.maximumf %243, %244 : vector<8x128xf32>
    %c0_109 = arith.constant 0 : index
    %c0_110 = arith.constant 0 : index
    %246 = vector.load %arg17[%c0_109, %c0_110] : memref<8x128xf32, #tpu.memory_space<vmem>>, vector<8x128xf32>
    %247 = arith.mulf %245, %246 : vector<8x128xf32>
    %248 = arith.truncf %247 : vector<8x128xf32> to vector<8x128xbf16>
    %c0_111 = arith.constant 0 : index
    %c0_112 = arith.constant 0 : index
    %249 = vector.load %arg18[%c0_111, %c0_112] : memref<128x128xbf16, #tpu.memory_space<vmem>>, vector<128x128xbf16>
    %cst_113 = arith.constant dense<0.000000e+00> : vector<8x128xf32>
    %250 = tpu.matmul %248, %249, %cst_113 {dimension_numbers = #tpu.dot_dimension_numbers<[1], [0], [0], [1], [0, 0, 1, 1], [], []>} : vector<8x128xbf16>, vector<128x128xbf16>, vector<8x128xf32> -> vector<8x128xf32>
    %c0_114 = arith.constant 0 : index
    %c0_115 = arith.constant 0 : index
    %251 = vector.load %arg19[%c0_114, %c0_115] : memref<1x128xf32, #tpu.memory_space<vmem>>, vector<1x128xf32>
    %252 = vector.broadcast %251 : vector<1x128xf32> to vector<8x128xf32>
    %253 = arith.addf %250, %252 : vector<8x128xf32>
    %cst_116 = arith.constant dense<0xFF800000> : vector<8xf32>
    %254 = vector.multi_reduction <maximumf>, %253, %cst_116 [1] : vector<8x128xf32> to vector<8xf32>
    %255 = vector.shape_cast %254 : vector<8xf32> to vector<8x1xf32>
    %256 = vector.broadcast %255 : vector<8x1xf32> to vector<8x128xf32>
    %257 = arith.subf %253, %256 : vector<8x128xf32>
    %258 = math.exp %257 : vector<8x128xf32>
    %cst_117 = arith.constant dense<0.000000e+00> : vector<8xf32>
    %259 = vector.multi_reduction <add>, %258, %cst_117 [1] : vector<8x128xf32> to vector<8xf32>
    %260 = vector.shape_cast %259 : vector<8xf32> to vector<8x1xf32>
    %261 = math.log %260 : vector<8x1xf32>
    %262 = vector.broadcast %261 : vector<8x1xf32> to vector<8x128xf32>
    %263 = arith.subf %257, %262 : vector<8x128xf32>
    %c0_118 = arith.constant 0 : index
    %c0_119 = arith.constant 0 : index
    %264 = vector.load %arg20[%c0_118, %c0_119] : memref<8x128xf32, #tpu.memory_space<vmem>>, vector<8x128xf32>
    tpu.vector_store %arg20[%c0_118, %c0_119], %263 {strides = array<i32>} : memref<8x128xf32, #tpu.memory_space<vmem>>, vector<8x128xf32>,
    return
  }
}

</mosaic_0001>

<bundles_post_ra>
// kernel: monet_forward.1
= control target key start
LH: loop header
LB: loop body
LE: loop exit
PB: predicated region body
PF: predicated region fallthrough
CT: control target
= control target key end

     0   :  { %s8067_s0 = inlined_call_operand.vmem [shape: f32[4,2], index: 0, kind: input, shape index: {}]   ;;  %s8068_s1 = inlined_call_operand.vmem [shape: f32[4,2], index: 1, kind: input, shape index: {}]   ;;  %s8069_s2 = inlined_call_operand.vmem [shape: f32[4,2], index: 2, kind: input, shape index: {}]   ;;  %s8070_s3 = inlined_call_operand.vmem [shape: f32[4,2], index: 3, kind: input, shape index: {}]   ;;  %s8071_s4 = inlined_call_operand.vmem [shape: bf16[64,128], index: 4, kind: input, shape index: {}]   ;;  %s8072_s5 = inlined_call_operand.vmem [shape: f32[128,2], index: 5, kind: input, shape index: {}]   ;;  %s8073_s6 = inlined_call_operand.vmem [shape: s32[128,1], index: 6, kind: input, shape index: {}]   ;;  %s8074_s7 = inlined_call_operand.vmem [shape: s32[1,128], index: 7, kind: input, shape index: {}]   ;;  %s8075_s8 = inlined_call_operand.vmem [shape: s32[1,64], index: 8, kind: input, shape index: {}]   ;;  %s8076_s9 = inlined_call_operand.vmem [shape: bf16[512,128], index: 9, kind: input, shape index: {}]   ;;  %s8077_s10 = inlined_call_operand.vmem [shape: bf16[128,128], index: 10, kind: input, shape index: {}]   ;;  %s8078_s11 = inlined_call_operand.hbm [shape: f32[1,128], index: 11, kind: input, shape index: {}]   ;;  %s8079_s12 = inlined_call_operand.hbm [shape: bf16[512,128], index: 12, kind: input, shape index: {}]   ;;  %s8080_s13 = inlined_call_operand.vmem [shape: bf16[128,128], index: 13, kind: input, shape index: {}]   ;;  %s8081_s14 = inlined_call_operand.hbm [shape: f32[1,128], index: 14, kind: input, shape index: {}]   ;;  %s8082_s15 = inlined_call_operand.vmem [shape: bf16[128,128], index: 15, kind: input, shape index: {}]   ;;  %s8083_s16 = inlined_call_operand.hbm [shape: f32[1,128], index: 16, kind: input, shape index: {}]   ;;  %s8084_s17 = inlined_call_operand.hbm [shape: f32[8,128], index: 17, kind: input, shape index: {}]   ;;  %s8085_s18 = inlined_call_operand.vmem [shape: bf16[128,128], index: 18, kind: input, shape index: {}]   ;;  %s8086_s19 = inlined_call_operand.hbm [shape: f32[1,128], index: 19, kind: input, shape index: {}]   ;;  %s8087_s20 = inlined_call_operand.vmem [shape: f32[8,128], index: 20, kind: output, shape index: {}]  }
   0x1   :  { %8100 = sst [smem:[#allocation33_spill]] %s8067_s0 }
   0x2   :  { %8101 = sst [smem:[#allocation34_spill]] %s8068_s1 }
   0x3   :  { %8102 = sst [smem:[#allocation35_spill]] %s8069_s2 }
   0x4   :  { %8103 = sst [smem:[#allocation36_spill]] %s8070_s3 }
   0x5   :  { %8104 = sst [smem:[#allocation37_spill]] %s8071_s4 }
   0x6   :  { %8105 = sst [smem:[#allocation38_spill]] %s8082_s15 }
   0x7   :  { %8106 = sst [smem:[#allocation39_spill]] %s8085_s18 }
   0x8   :  { %8107 = sst [smem:[#allocation40_spill]] %s8087_s20 }
   0x9   :  { %25 = vsyncpa [#allocation4], 0 }
   0xa   :  { %26 = vsyncpa [#allocation6], 0 }
   0xb   :  { %27 = vsyncpa [#allocation9], 0 }
   0xc   :  { %28 = vsyncpa [#allocation3], 0 }
   0xd   :  { %29 = vsyncpa [#allocation12], 0 }
   0xe   :  { %30 = vsyncpa [#allocation15], 0  ;;  %s8108_s23 = sld [smem:[#allocation34_spill]] }
  0x14   :  { %s48_s24 = sshll.u32 %s8108_s23, 4  ;;  %s49_s24 = int_to_ptr.vmem [resolvable:$true] %s48_s24 }
  0x15   :  { %31 = vsyncpa [#allocation18], 0  ;;  %s5808_s2 = scalar_lea.vmem %s49_s24, 64  ;;  %p5813_p1 = scmp.lt.s32.totalorder %s49_s24, %s49_s24 }
  0x16   :  { %p5809_p0 = scmp.ne.s32.totalorder %s49_s24, %s5808_s2  ;;  %p5814_p2 = scmp.lt.s32.totalorder %s5808_s2, %s5808_s2 }
  0x18   :  { %p5815_p3 = por %p5814_p2, %p5813_p1 }
  0x1a   :  { %p5816_p4 = pnand %p5815_p3, %p5809_p0 }
  0x1c   :  { %5819 = shalt.err (!%p5816_p4)
}
  0x1d   :  { %s6002_s25 = smov [#allocation5]   ;;  %s6003_s3 = smov [#allocation11]  }
  0x1e   :  { %51 = dma.vmem_to_smem %s49_s24, 64, %s6002_s25, [#allocation6]  }
  0x1f   :  { %s101_s26 = sshll.u32 %s6003_s3, 4  ;;  %s5820_s4 = scalar_lea.hbm %s8079_s12, 4096  ;;  %s102_s26 = int_to_ptr.vmem [resolvable:$true] %s101_s26 }
  0x20   :  { %p5821_p5 = scmp.ne.s32.totalorder %s8079_s12, %s5820_s4  ;;  %p5824_p6 = scmp.lt.u32.totalorder %s5820_s4, %s8079_s12 }
  0x22   :  { %p5826_p7 = pnand %p5824_p6, %p5821_p5 }
  0x24   :  { %5829 = shalt.err (!%p5826_p7)
}
  0x25   :  { %s5830_s1 = scalar_lea.vmem %s102_s26, 4096  ;;  %p5835_p9 = scmp.lt.s32.totalorder %s102_s26, %s102_s26 }
  0x26   :  { %p5831_p8 = scmp.ne.s32.totalorder %s102_s26, %s5830_s1  ;;  %p5836_p10 = scmp.lt.s32.totalorder %s5830_s1, %s5830_s1 }
  0x28   :  { %p5837_p11 = por %p5836_p10, %p5835_p9 }
  0x2a   :  { %p5838_p12 = pnand %p5837_p11, %p5831_p8 }
  0x2c   :  { %5841 = shalt.err (!%p5838_p12)
}
  0x2d   :  { %s6004_s22 = smov 64   ;;  %s6005_s23 = smov 4  }
  0x2e   :  { %107 = dma.hbm_to_vmem [thread:$0]  %s8079_s12, 4096, %s102_s26, [#allocation12], %s6004_s22, %s6004_s22, %s6005_s23  }
  0x2f   :  { %s8109_s27 = sld [smem:[#allocation33_spill]]  ;;  %s6006_s4 = smov [#allocation14]  }
  0x30   :  { %s128_s29 = sshll.u32 %s6006_s4, 4  ;;  %s5842_s21 = scalar_lea.hbm %s8083_s16, 16  ;;  %s129_s29 = int_to_ptr.vmem [resolvable:$true] %s128_s29 }
  0x31   :  { %p5843_p13 = scmp.ne.s32.totalorder %s8083_s16, %s5842_s21  ;;  %p5846_p0 = scmp.lt.u32.totalorder %s5842_s21, %s8083_s16 }
  0x33   :  { %p5848_p1 = pnand %p5846_p0, %p5843_p13 }
  0x35   :  { %s38_s28 = sshll.u32 %s8109_s27, 4  ;;  %s39_s28 = int_to_ptr.vmem [resolvable:$true] %s38_s28 }
  0x36   :  { %5851 = shalt.err (!%p5848_p1)
}
  0x37   :  { %s5852_s12 = scalar_lea.vmem %s129_s29, 16  ;;  %s5856_s26 = scalar_lea.vmem %s129_s29, 32 }
  0x38   :  { %p5853_p2 = scmp.ne.s32.totalorder %s129_s29, %s5852_s12  ;;  %p5857_p3 = scmp.lt.s32.totalorder %s129_s29, %s129_s29 }
  0x39   :  { %p5858_p4 = scmp.lt.s32.totalorder %s5856_s26, %s5852_s12 }
  0x3b   :  { %p5859_p5 = por %p5858_p4, %p5857_p3 }
  0x3d   :  { %p5860_p6 = pnand %p5859_p5, %p5853_p2 }
  0x3f   :  { %5863 = shalt.err (!%p5860_p6)
}
  0x40   :  { %131 = dma.hbm_to_vmem [thread:$0]  %s8083_s16, 16, %s129_s29, [#allocation15]  }
  0x41   :  { %s5864_s20 = scalar_lea.vmem %s39_s28, 64  ;;  %p5869_p8 = scmp.lt.s32.totalorder %s39_s28, %s39_s28 }
  0x42   :  { %p5865_p7 = scmp.ne.s32.totalorder %s39_s28, %s5864_s20  ;;  %p5870_p9 = scmp.lt.s32.totalorder %s5864_s20, %s5864_s20 }
  0x44   :  { %p5871_p10 = por %p5870_p9, %p5869_p8 }
  0x46   :  { %p5872_p11 = pnand %p5871_p10, %p5865_p7 }
  0x48   :  { %5875 = shalt.err (!%p5872_p11)
}
  0x49   :  { %s6007_s15 = smov [#allocation2]   ;;  %s8110_s2 = sld [smem:[#allocation35_spill]] }
  0x4a   :  { %41 = dma.vmem_to_smem %s39_s28, 64, %s6007_s15, [#allocation4]  }
  0x4b   :  { %s8111_s4 = sld [smem:[#allocation36_spill]] }
  0x4f   :  { %s58_s25 = sshll.u32 %s8110_s2, 4  ;;  %s59_s25 = int_to_ptr.vmem [resolvable:$true] %s58_s25 }
  0x50   :  { %s5876_s0 = scalar_lea.vmem %s59_s25, 64  ;;  %p5881_p13 = scmp.lt.s32.totalorder %s59_s25, %s59_s25 }
  0x51   :  { %s68_s30 = sshll.u32 %s8111_s4, 4  ;;  %p5877_p12 = scmp.ne.s32.totalorder %s59_s25, %s5876_s0  ;;  %s69_s30 = int_to_ptr.vmem [resolvable:$true] %s68_s30 }
  0x52   :  { %p5882_p0 = scmp.lt.s32.totalorder %s5876_s0, %s5876_s0 }
  0x54   :  { %p5883_p1 = por %p5882_p0, %p5881_p13 }
  0x56   :  { %p5884_p2 = pnand %p5883_p1, %p5877_p12 }
  0x58   :  { %5887 = shalt.err (!%p5884_p2)
}
  0x59   :  { %s6008_s16 = smov [#allocation7]   ;;  %s5888_s28 = scalar_lea.vmem %s69_s30, 64 }
  0x5a   :  { %61 = dma.vmem_to_smem %s59_s25, 64, %s6008_s16, [#allocation6]  }
  0x5b   :  { %p5889_p3 = scmp.ne.s32.totalorder %s69_s30, %s5888_s28  ;;  %p5893_p4 = scmp.lt.s32.totalorder %s69_s30, %s69_s30 }
  0x5c   :  { %p5894_p5 = scmp.lt.s32.totalorder %s5888_s28, %s5888_s28 }
  0x5e   :  { %p5895_p6 = por %p5894_p5, %p5893_p4 }
  0x60   :  { %p5896_p7 = pnand %p5895_p6, %p5889_p3 }
  0x62   :  { %5899 = shalt.err (!%p5896_p7)
}
  0x63   :  { %s6009_s29 = smov [#allocation8]   ;;  %s6010_s21 = smov [#allocation10]  }
  0x64   :  { %71 = dma.vmem_to_smem %s69_s30, 64, %s6009_s29, [#allocation9]  }
  0x65   :  { %s92_s1 = sshll.u32 %s6010_s21, 4  ;;  %s6011_s12 = smov [#allocation13]   ;;  %s93_s1 = int_to_ptr.vmem [resolvable:$true] %s92_s1 }
  0x66   :  { %s116_s26 = sshll.u32 %s6011_s12, 4  ;;  %s5900_s20 = scalar_lea.hbm %s8078_s11, 16  ;;  %s117_s26 = int_to_ptr.vmem [resolvable:$true] %s116_s26 }
  0x67   :  { %p5901_p8 = scmp.ne.s32.totalorder %s8078_s11, %s5900_s20  ;;  %p5904_p9 = scmp.lt.u32.totalorder %s5900_s20, %s8078_s11 }
  0x69   :  { %p5906_p10 = pnand %p5904_p9, %p5901_p8 }
  0x6b   :  { %5909 = shalt.err (!%p5906_p10)
}
  0x6c   :  { %s5910_s25 = scalar_lea.vmem %s93_s1, 16  ;;  %s5914_s3 = scalar_lea.vmem %s93_s1, 32 }
  0x6d   :  { %p5911_p11 = scmp.ne.s32.totalorder %s93_s1, %s5910_s25  ;;  %p5915_p12 = scmp.lt.s32.totalorder %s93_s1, %s93_s1 }
  0x6e   :  { %p5916_p13 = scmp.lt.s32.totalorder %s5914_s3, %s5910_s25 }
  0x70   :  { %p5917_p0 = por %p5916_p13, %p5915_p12 }
  0x72   :  { %p5918_p1 = pnand %p5917_p0, %p5911_p11 }
  0x74   :  { %5921 = shalt.err (!%p5918_p1)
}
  0x75   :  { %95 = dma.hbm_to_vmem [thread:$0]  %s8078_s11, 16, %s93_s1, [#allocation3]  }
  0x76   :  { %s5922_s16 = scalar_lea.hbm %s8081_s14, 16 }
  0x77   :  { %p5923_p2 = scmp.ne.s32.totalorder %s8081_s14, %s5922_s16  ;;  %p5926_p3 = scmp.lt.u32.totalorder %s5922_s16, %s8081_s14 }
  0x79   :  { %p5928_p4 = pnand %p5926_p3, %p5923_p2 }
  0x7b   :  { %5931 = shalt.err (!%p5928_p4)
}
  0x7c   :  { %s5932_s22 = scalar_lea.vmem %s117_s26, 16  ;;  %s5936_s23 = scalar_lea.vmem %s117_s26, 32 }
  0x7d   :  { %p5933_p5 = scmp.ne.s32.totalorder %s117_s26, %s5932_s22  ;;  %p5937_p6 = scmp.lt.s32.totalorder %s117_s26, %s117_s26 }
  0x7e   :  { %p5938_p7 = scmp.lt.s32.totalorder %s5936_s23, %s5932_s22 }
  0x80   :  { %p5939_p8 = por %p5938_p7, %p5937_p6 }
  0x82   :  { %p5940_p9 = pnand %p5939_p8, %p5933_p5 }
  0x84   :  { %5943 = shalt.err (!%p5940_p9)
}
  0x85   :  { %119 = dma.hbm_to_vmem [thread:$0]  %s8081_s14, 16, %s117_s26, [#allocation12]  }
  0x86   :  { %s6012_s20 = smov [#allocation16]   ;;  %s6013_s18 = smov [#allocation17]  }
  0x87   :  { %s138_s15 = sshll.u32 %s6012_s20, 4  ;;  %s150_s24 = sshll.u32 %s6013_s18, 4  ;;  %s139_s15 = int_to_ptr.vmem [resolvable:$true] %s138_s15  ;;  %s151_s24 = int_to_ptr.vmem [resolvable:$true] %s150_s24 }
  0x88   :  { %s5944_s3 = scalar_lea.hbm %s8084_s17, 128 }
  0x89   :  { %p5945_p10 = scmp.ne.s32.totalorder %s8084_s17, %s5944_s3  ;;  %p5948_p11 = scmp.lt.u32.totalorder %s5944_s3, %s8084_s17 }
  0x8b   :  { %p5950_p12 = pnand %p5948_p11, %p5945_p10 }
  0x8d   :  { %5953 = shalt.err (!%p5950_p12)
}
  0x8e   :  { %s5954_s14 = scalar_lea.vmem %s139_s15, 128  ;;  %p5959_p0 = scmp.lt.s32.totalorder %s139_s15, %s139_s15 }
  0x8f   :  { %p5955_p13 = scmp.ne.s32.totalorder %s139_s15, %s5954_s14  ;;  %p5960_p1 = scmp.lt.s32.totalorder %s5954_s14, %s5954_s14 }
  0x91   :  { %p5961_p2 = por %p5960_p1, %p5959_p0 }
  0x93   :  { %p5962_p3 = pnand %p5961_p2, %p5955_p13 }
  0x95   :  { %5965 = shalt.err (!%p5962_p3)
}
  0x96   :  { %141 = dma.hbm_to_vmem [thread:$0]  %s8084_s17, 128, %s139_s15, [#allocation15]  }
  0x97   :  { %s5966_s21 = scalar_lea.hbm %s8086_s19, 16 }
  0x98   :  { %p5967_p4 = scmp.ne.s32.totalorder %s8086_s19, %s5966_s21  ;;  %p5970_p5 = scmp.lt.u32.totalorder %s5966_s21, %s8086_s19 }
  0x9a   :  { %p5972_p6 = pnand %p5970_p5, %p5967_p4 }
  0x9c   :  { %5975 = shalt.err (!%p5972_p6)
}
  0x9d   :  { %s5976_s1 = scalar_lea.vmem %s151_s24, 16  ;;  %s5980_s20 = scalar_lea.vmem %s151_s24, 32 }
  0x9e   :  { %p5977_p7 = scmp.ne.s32.totalorder %s151_s24, %s5976_s1  ;;  %p5981_p8 = scmp.lt.s32.totalorder %s151_s24, %s151_s24 }
  0x9f   :  { %p5982_p9 = scmp.lt.s32.totalorder %s5980_s20, %s5976_s1 }
  0xa1   :  { %p5983_p10 = por %p5982_p9, %p5981_p8 }
  0xa3   :  { %p5984_p11 = pnand %p5983_p10, %p5977_p7 }
  0xa5   :  { %5987 = shalt.err (!%p5984_p11)
}
  0xa6   :  { %153 = dma.hbm_to_vmem [thread:$0]  %s8086_s19, 16, %s151_s24, [#allocation18]  }
  0xa7   :  { %5988 = dma.done.wait [#allocation4], 64  }
  0xa8   :  { %5989 = vsyncadd [#allocation4], 4294967232 }
  0xa9   :  { %5990 = dma.done.wait [#allocation6], 128  }
  0xaa   :  { %5991 = vsyncadd [#allocation6], 4294967168 }
  0xab   :  { %5992 = dma.done.wait [#allocation9], 64  }
  0xac   :  { %5993 = vsyncadd [#allocation9], 4294967232 }
  0xad   :  { %5994 = dma.done.wait [#allocation3], 16  }
  0xae   :  { %5995 = vsyncadd [#allocation3], 4294967280 }
  0xaf   :  { %5996 = dma.done.wait [#allocation12], 4112  }
  0xb0   :  { %5997 = vsyncadd [#allocation12], 4294963184 }
  0xb1   :  { %5998 = dma.done.wait [#allocation15], 144  }
  0xb2   :  { %5999 = vsyncadd [#allocation15], 4294967152 }
  0xb3   :  { %6000 = dma.done.wait [#allocation18], 16  }
  0xb4   :  { %6001 = vsyncadd [#allocation18], 4294967280 }
  0xb5   :  { %184 = sfence }
  0xb6   :  { %v214_v0 = vld [vmem:[%s8073_s6 + $0x10] sm:$0xff]  ;;  %v212_v1 = vld [vmem:[%s8073_s6] sm:$0xff]  ;;  %v6014_v2 = vmov 0   ;;  %v215_v3 = vld [vmem:[%s8073_s6 + $0x18] sm:$0xff]  ;;  %s4676_s16 = sld [smem:[#allocation2 + $0x81]]  ;;  %s8112_s1 = sld [smem:[#allocation37_spill]] }
  0xb7   :  { %5390 = vset.pattern.permute.xlu1 %v6014_v2  ;;  %5389 = vset.pattern.permute.xlu0 %v6014_v2  ;;  %v213_v4 = vld [vmem:[%s8073_s6 + $0x8] sm:$0xff]  ;;  %v216_v6 = vld [vmem:[%s8073_s6 + $0x20] sm:$0xff]  ;;  %s6225_s28 = sld [smem:[#allocation5 + $0x81]]  ;;  %v219_v7 = vld [vmem:[%s8073_s6 + $0x38] sm:$0xff]  ;;  %vm422_vm4 = vcmask 523264   ;;  %s6711_s22 = sld [smem:[#allocation2]] }
  0xb8   :  { %235 = vperm.xlu1 %5390, %v214_v0   ;;  %229 = vperm.xlu0 %5389, %v212_v1   ;;  %v217_v5 = vld [vmem:[%s8073_s6 + $0x28] sm:$0xff]  ;;  %v218_v8 = vld [vmem:[%s8073_s6 + $0x30] sm:$0xff]  ;;  %s4684_s20 = sld [smem:[#allocation2 + $0x181]]  ;;  %v220_v12 = vld [vmem:[%s8073_s6 + $0x40] sm:$0xff]  ;;  %s6719_s23 = sld [smem:[#allocation5 + $0x80]] }
  0xb9   :  { %s6236_s17 = sld [smem:[#allocation5 + $0x181]]  ;;  %v221_v11 = vld [vmem:[%s8073_s6 + $0x48] sm:$0xff]  ;;  %v223_v16 = vld [vmem:[%s8073_s6 + $0x58] sm:$0xff]  ;;  %v222_v17 = vld [vmem:[%s8073_s6 + $0x50] sm:$0xff]  ;;  %s6745_s18 = sld [smem:[#allocation2 + $0x100]] }
  0xba   :  { %s4673_s2 = sld [smem:[#allocation2 + $0x1]]  ;;  %v195_v14 = vld [vmem:[%s8072_s5 + $0x8] sm:$0xff]  ;;  %v194_v19 = vld [vmem:[%s8072_s5] sm:$0xff]  ;;  %v197_v20 = vld [vmem:[%s8072_s5 + $0x18] sm:$0xff]  ;;  %s6759_s24 = sld [smem:[#allocation5]] }
  0xbb   :  { %s6250_s30 = sld [smem:[#allocation5 + $0x1]]  ;;  %v6277_v21 = vld [vmem:[%s8072_s5 + $0x10] sm:$0xff]  ;;  %v6284_v23 = vld [vmem:[%s8072_s5 + $0x28] sm:$0xff]  ;;  %v224_v26 = vld [vmem:[%s8073_s6 + $0x60] sm:$0xff]  ;;  %s6778_s25 = sld [smem:[#allocation5 + $0x100]] }
  0xbc   :  { %238 = vperm.xlu1 %5390, %v215_v3   ;;  %232 = vperm.xlu0 %5389, %v213_v4   ;;  %v5391_v9 = vld [vmem:[%s8112_s1] sm:$0xff]   ;;  %v5392_v10 = vld [vmem:[%s8112_s1 + $0x8] sm:$0xff]   ;;  %v5393_v13 = vld [vmem:[%s8112_s1 + $0x10] sm:$0xff]   ;;  %s4680_s0 = sld [smem:[#allocation2 + $0x101]]  ;;  %v6264_v18 = vstv %s4676_s16  ;;  %s4746_s12 = sld [smem:[#allocation7 + $0x180]] }
  0xbd   :  { %5161 = vmatprep.subr.bf16.mxu0 %v5391_v9  ;;  %v5394_v15 = vld [vmem:[%s8112_s1 + $0x18] sm:$0xff]   ;;  %s6269_s19 = sld [smem:[#allocation5 + $0x101]]  ;;  %v892_v24 = vsub.f32 %v195_v14, %v6264_v18  ;;  %v225_v25 = vld [vmem:[%s8073_s6 + $0x68] sm:$0xff]  ;;  %v6298_v28 = vld [vmem:[%s8072_s5 + $0x20] sm:$0xff]  ;;  %v891_v29 = vsub.f32 %v194_v19, %v6264_v18  ;;  %v6305_v32 = vstv %s6225_s28  ;;  %v894_v34 = vsub.f32 %v197_v20, %v6264_v18  ;;  %s2519_s28 = sld [smem:[#allocation7]] }
  0xbe   :  { %5162 = vmatpush3.bf16.msra.mxu0 %v5391_v9  ;;  %v6279_v22 = vstv %s4684_s20  ;;  %v893_v35 = vsub.f32 %v6277_v21, %v6264_v18  ;;  %v6315_v39 = vsub.f32 %v6284_v23, %v6264_v18  ;;  %v227_v40 = vld [vmem:[%s8073_s6 + $0x78] sm:$0xff]  ;;  %v6325_v44 = vsub.f32 %v6298_v28, %v6264_v18  ;;  %v226_v45 = vld [vmem:[%s8073_s6 + $0x70] sm:$0xff]  ;;  %v203_v54 = vld [vmem:[%s8072_s5 + $0x48] sm:$0xff]  ;;  %s7154_s16 = sld [smem:[#allocation8 + $0x181]]  ;;  %s8129_s14 = sld [smem:[#allocation39_spill]] }
  0xbf   :  { %5163 = vmatprep.subr.bf16.mxu0 %v5392_v10  ;;  %v1468_v30 = vsub.f32 %v195_v14, %v6279_v22  ;;  %v1467_v33 = vsub.f32 %v194_v19, %v6279_v22  ;;  %v942_v36 = vmul.f32 %v892_v24, %v892_v24  ;;  %v1470_v43 = vsub.f32 %v197_v20, %v6279_v22  ;;  %v202_v3 = vld [vmem:[%s8072_s5 + $0x40] sm:$0xff]  ;;  %s7156_s4 = sld [smem:[#allocation7 + $0x101]]  ;;  %s8130_s6 = sld [smem:[#allocation40_spill]] }
  0xc0   :  { %244 = vperm.xlu1 %5390, %v217_v5   ;;  %241 = vperm.xlu0 %5389, %v216_v6   ;;  %v6293_v27 = vstv %s4673_s2  ;;  %v941_v46 = vmul.f32 %v891_v29, %v891_v29  ;;  %v6331_v48 = vstv %s6236_s17  ;;  %v1469_v49 = vsub.f32 %v6277_v21, %v6279_v22  ;;  %v205_v29 = vld [vmem:[%s8072_s5 + $0x58] sm:$0xff]  ;;  %s4675_s2 = sld [smem:[#allocation2 + $0x80]]  ;;  %s7175_s29 = sld [smem:[#allocation8 + $0x1]] }
  0xc1   :  { %v604_v37 = vsub.f32 %v195_v14, %v6293_v27  ;;  %v603_v38 = vsub.f32 %v194_v19, %v6293_v27  ;;  %v1518_v47 = vmul.f32 %v1468_v30, %v1468_v30  ;;  %v1517_v50 = vmul.f32 %v1467_v33, %v1467_v33  ;;  %s7188_s21 = sld [smem:[#allocation8 + $0x101]] }
  0xc2   :  { %5164 = vmatpush3.bf16.msra.mxu0 %v5392_v10  ;;  %v6302_v31 = vstv %s4680_s0  ;;  %v944_v51 = vmul.f32 %v894_v34, %v894_v34  ;;  %v943_v52 = vmul.f32 %v893_v35, %v893_v35  ;;  %v606_v53 = vsub.f32 %v197_v20, %v6293_v27  ;;  %s4683_s0 = sld [smem:[#allocation2 + $0x180]] }
  0xc3   :  { %5165 = vmatprep.subr.bf16.mxu0 %v5393_v13  ;;  %v1180_v41 = vsub.f32 %v195_v14, %v6302_v31  ;;  %v1179_v42 = vsub.f32 %v194_v19, %v6302_v31  ;;  %v960_v55 = vmul.f32 %v6305_v32, %v942_v36  ;;  %v654_v56 = vmul.f32 %v604_v37, %v604_v37 }
  0xc4   :  { %250 = vperm.xlu1 %5390, %v219_v7   ;;  %247 = vperm.xlu0 %5389, %v218_v8   ;;  %v6341_v57 = vstv %s6250_s30  ;;  %v653_v58 = vmul.f32 %v603_v38, %v603_v38  ;;  %v1520_v61 = vmul.f32 %v1470_v43, %v1470_v43  ;;  %v605_v62 = vsub.f32 %v6277_v21, %v6293_v27  ;;  %s6015_s30 = smov 127   ;;  %v204_v43 = vld [vmem:[%s8072_s5 + $0x50] sm:$0xff] }
  0xc5   :  { %v1230_v59 = vmul.f32 %v1180_v41, %v1180_v41  ;;  %v1229_v60 = vmul.f32 %v1179_v42, %v1179_v42  ;;  %v959_v63 = vmul.f32 %v6305_v32, %v941_v46  ;;  %v1536_v0 = vmul.f32 %v6331_v48, %v1518_v47 }
  0xc6   :  { %5166 = vmatpush3.bf16.msra.mxu0 %v5393_v13  ;;  %v6348_v1 = vstv %s6269_s19  ;;  %v1519_v2 = vmul.f32 %v1469_v49, %v1469_v49  ;;  %v1535_v4 = vmul.f32 %v6331_v48, %v1517_v50  ;;  %v6355_v5 = vmul.f32 %v6305_v32, %v944_v51  ;;  %s6751_s19 = sld [smem:[#allocation5 + $0x180]] }
  0xc7   :  { %5167 = vmatprep.subr.bf16.mxu0 %v5394_v15  ;;  %v656_v6 = vmul.f32 %v606_v53, %v606_v53  ;;  %v1182_v7 = vsub.f32 %v197_v20, %v6302_v31  ;;  %v672_v8 = vmul.f32 %v6341_v57, %v654_v56  ;;  %v671_v9 = vmul.f32 %v6341_v57, %v653_v58 }
  0xc8   :  { %256 = vperm.xlu1 %5390, %v221_v11   ;;  %253 = vperm.xlu0 %5389, %v220_v12   ;;  %v6361_v10 = vmul.f32 %v6305_v32, %v943_v52  ;;  %v900_v11 = vsub.f32 %v203_v54, %v6264_v18  ;;  %v1248_v12 = vmul.f32 %v6348_v1, %v1230_v59 }
  0xc9   :  { %v1247_v13 = vmul.f32 %v6348_v1, %v1229_v60  ;;  %v6367_v14 = vmul.f32 %v6331_v48, %v1520_v61  ;;  %v6381_v20 = vmul.f32 %v6341_v57, %v656_v6  ;;  %v6383_v24 = vmul.f32 %v1182_v7, %v1182_v7 }
  0xca   :  { %5168 = vmatpush3.bf16.msra.mxu0 %v5394_v15  ;;  %v6369_v15 = vmul.f32 %v605_v62, %v605_v62  ;;  %v950_v19 = vmul.f32 %v900_v11, %v900_v11  ;;  %v612_v33 = vsub.f32 %v203_v54, %v6293_v27  ;;  %v611_v34 = vsub.f32 %v202_v3, %v6293_v27  ;;  %v207_v62 = vld [vmem:[%s8072_s5 + $0x68] sm:$0xff] }
  0xcb   :  { %v1188_v37 = vsub.f32 %v203_v54, %v6302_v31  ;;  %v1187_v38 = vsub.f32 %v202_v3, %v6302_v31  ;;  %v902_v53 = vsub.f32 %v205_v29, %v6264_v18  ;;  %v901_v56 = vsub.f32 %v204_v43, %v6264_v18 }
  0xcc   :  { %262 = vperm.xlu1 %5390, %v223_v16   ;;  %259 = vperm.xlu0 %5389, %v222_v17   ;;  %v6374_v16 = vmul.f32 %v6331_v48, %v1519_v2  ;;  %v6378_v17 = vsub.f32 %v6277_v21, %v6302_v31  ;;  %v6391_v30 = vmul.f32 %v6305_v32, %v950_v19 }
  0xcd   :  { %v1475_v21 = vsub.f32 %v202_v3, %v6279_v22  ;;  %v662_v41 = vmul.f32 %v612_v33, %v612_v33  ;;  %v661_v42 = vmul.f32 %v611_v34, %v611_v34  ;;  %v1238_v47 = vmul.f32 %v1188_v37, %v1188_v37 }
  0xce   :  { %v1237_v49 = vmul.f32 %v1187_v38, %v1187_v38  ;;  %v1478_v58 = vsub.f32 %v205_v29, %v6279_v22  ;;  %v952_v59 = vmul.f32 %v902_v53, %v902_v53  ;;  %v1477_v60 = vsub.f32 %v204_v43, %v6279_v22 }
  0xcf   :  { %v6413_v51 = vmul.f32 %v6341_v57, %v662_v41  ;;  %v6416_v52 = vmul.f32 %v6341_v57, %v661_v42  ;;  %v614_v61 = vsub.f32 %v205_v29, %v6293_v27  ;;  %v209_v41 = vld [vmem:[%s8072_s5 + $0x78] sm:$0xff]  ;;  %v208_v42 = vld [vmem:[%s8072_s5 + $0x70] sm:$0xff]  ;;  %v1192_v53 = vsub.f32 %v207_v62, %v6302_v31 }
  0xd0   :  { %268 = vperm.xlu1 %5390, %v225_v25   ;;  %265 = vperm.xlu0 %5389, %v224_v26   ;;  %v899_v25 = vsub.f32 %v202_v3, %v6264_v18  ;;  %v1476_v26 = vsub.f32 %v203_v54, %v6279_v22  ;;  %v6420_v54 = vmul.f32 %v6348_v1, %v1238_v47 }
  0xd1   :  { %v1528_v2 = vmul.f32 %v1478_v58, %v1478_v58  ;;  %v613_v3 = vsub.f32 %v204_v43, %v6293_v27  ;;  %v6440_v6 = vmul.f32 %v6305_v32, %v952_v59  ;;  %v1527_v7 = vmul.f32 %v1477_v60, %v1477_v60 }
  0xd2   :  { %v949_v35 = vmul.f32 %v899_v25, %v899_v25  ;;  %v1526_v36 = vmul.f32 %v1476_v26, %v1476_v26 }
  0xd3   :  { %v6447_v19 = vmul.f32 %v6331_v48, %v1528_v2  ;;  %v663_v25 = vmul.f32 %v613_v3, %v613_v3  ;;  %v1242_v2 = vmul.f32 %v1192_v53, %v1192_v53 }
  0xd4   :  { %274 = vperm.xlu1 %5390, %v227_v40   ;;  %271 = vperm.xlu0 %5389, %v226_v45   ;;  %v1525_v40 = vmul.f32 %v1475_v21, %v1475_v21  ;;  %v6404_v45 = vmul.f32 %v6305_v32, %v949_v35  ;;  %v6407_v46 = vmul.f32 %v6331_v48, %v1526_v36 }
  0xd5   :  { %v6458_v34 = vmul.f32 %v6341_v57, %v663_v25  ;;  %v904_v36 = vsub.f32 %v207_v62, %v6264_v18  ;;  %v673_v25 = vmul.f32 %v6341_v57, %v6369_v15 }
  0xd6   :  { %v6410_v50 = vmul.f32 %v6331_v48, %v1525_v40  ;;  %v616_v40 = vsub.f32 %v207_v62, %v6293_v27 }
  0xd8   :  { %993 = vrot.lane.b32.xlu1 %v960_v55, %s6015_s30  ;;  %991 = vrot.lane.b32.xlu0 %v959_v63, %s6015_s30  ;;  %v6423_v55 = vmul.f32 %v6348_v1, %v1237_v49  ;;  %v206_v63 = vld [vmem:[%s8072_s5 + $0x60] sm:$0xff]  ;;  %v666_v59 = vmul.f32 %v616_v40, %v616_v40 }
  0xd9   :  { %v903_v37 = vsub.f32 %v206_v63, %v6264_v18  ;;  %v1479_v38 = vsub.f32 %v206_v63, %v6279_v22  ;;  %v615_v49 = vsub.f32 %v206_v63, %v6293_v27 }
  0xdb   :  { %v953_v47 = vmul.f32 %v903_v37, %v903_v37  ;;  %v1529_v58 = vmul.f32 %v1479_v38, %v1479_v38  ;;  %v1482_v37 = vsub.f32 %v209_v41, %v6279_v22  ;;  %v1250_v38 = vmul.f32 %v6348_v1, %v6383_v24 }
  0xdc   :  { %1569 = vrot.lane.b32.xlu1 %v1536_v0, %s6015_s30  ;;  %1567 = vrot.lane.b32.xlu0 %v1535_v4, %s6015_s30  ;;  %v951_v0 = vmul.f32 %v901_v56, %v901_v56  ;;  %v1190_v4 = vsub.f32 %v205_v29, %v6302_v31  ;;  %v6452_v29 = vmul.f32 %v6331_v48, %v1527_v7 }
  0xdd   :  { %v6503_v7 = vmul.f32 %v6348_v1, %v1242_v2  ;;  %v1471_v24 = vsub.f32 %v6298_v28, %v6279_v22  ;;  %v607_v2 = vsub.f32 %v6298_v28, %v6293_v27 }
  0xde   :  { %v6444_v11 = vmul.f32 %v6305_v32, %v951_v0  ;;  %v1240_v26 = vmul.f32 %v1190_v4, %v1190_v4  ;;  %v665_v0 = vmul.f32 %v615_v49, %v615_v49 }
  0xe0   :  { %705 = vrot.lane.b32.xlu1 %v672_v8, %s6015_s30  ;;  %703 = vrot.lane.b32.xlu0 %v671_v9, %s6015_s30  ;;  %v664_v8 = vmul.f32 %v614_v61, %v614_v61  ;;  %v1189_v9 = vsub.f32 %v204_v43, %v6302_v31  ;;  %v6461_v35 = vmul.f32 %v6348_v1, %v1240_v26 }
  0xe1   :  { %v954_v43 = vmul.f32 %v904_v36, %v904_v36  ;;  %v6487_v61 = vmul.f32 %v6305_v32, %v953_v47  ;;  %v6500_v4 = vmul.f32 %v6341_v57, %v665_v0  ;;  %v617_v0 = vsub.f32 %v208_v42, %v6293_v27 }
  0xe2   :  { %v6455_v21 = vmul.f32 %v6341_v57, %v664_v8  ;;  %v1239_v33 = vmul.f32 %v1189_v9, %v1189_v9  ;;  %v906_v8 = vsub.f32 %v209_v41, %v6264_v18  ;;  %v905_v9 = vsub.f32 %v208_v42, %v6264_v18 }
  0xe3   :  { %v6484_v60 = vmul.f32 %v6305_v32, %v954_v43  ;;  %v1532_v43 = vmul.f32 %v1482_v37, %v1482_v37 }
  0xe4   :  { %1281 = vrot.lane.b32.xlu1 %v1248_v12, %s6015_s30  ;;  %1279 = vrot.lane.b32.xlu0 %v1247_v13, %s6015_s30  ;;  %v6466_v12 = vmul.f32 %v6348_v1, %v1239_v33  ;;  %v1480_v13 = vsub.f32 %v207_v62, %v6279_v22  ;;  %v6493_v62 = vmul.f32 %v6331_v48, %v1529_v58 }
  0xe5   :  { %v956_v33 = vmul.f32 %v906_v8, %v906_v8  ;;  %v955_v36 = vmul.f32 %v905_v9, %v905_v9  ;;  %v6541_v49 = vmul.f32 %v6331_v48, %v1532_v43  ;;  %v1194_v8 = vsub.f32 %v209_v41, %v6302_v31 }
  0xe6   :  { %v1530_v56 = vmul.f32 %v1480_v13, %v1480_v13  ;;  %v1481_v13 = vsub.f32 %v208_v42, %v6279_v22  ;;  %v1193_v9 = vsub.f32 %v208_v42, %v6302_v31 }
  0xe7   :  { %v6530_v40 = vmul.f32 %v6305_v32, %v955_v36  ;;  %v1244_v36 = vmul.f32 %v1194_v8, %v1194_v8 }
  0xe8   :  { %997 = vrot.lane.b32.xlu1 %v6355_v5, %s6015_s30  ;;  %995 = vrot.lane.b32.xlu0 %v6361_v10, %s6015_s30  ;;  %v6490_v3 = vmul.f32 %v6331_v48, %v1530_v56  ;;  %v6496_v5 = vmul.f32 %v6341_v57, %v666_v59  ;;  %v1191_v10 = vsub.f32 %v206_v63, %v6302_v31 }
  0xe9   :  { %v1231_v63 = vmul.f32 %v6378_v17, %v6378_v17  ;;  %v6527_v17 = vmul.f32 %v6305_v32, %v956_v33  ;;  %v1531_v47 = vmul.f32 %v1481_v13, %v1481_v13  ;;  %v618_v56 = vsub.f32 %v209_v41, %v6293_v27  ;;  %v6566_v41 = vld [vmem:[%s8072_s5 + $0x38] sm:$0xff] }
  0xea   :  { %v1241_v26 = vmul.f32 %v1191_v10, %v1191_v10  ;;  %v608_v59 = vsub.f32 %v6284_v23, %v6293_v27  ;;  %v1243_v37 = vmul.f32 %v1193_v9, %v1193_v9  ;;  %v1184_v13 = vsub.f32 %v6284_v23, %v6302_v31 }
  0xeb   :  { %v6544_v53 = vmul.f32 %v6331_v48, %v1531_v47  ;;  %v668_v10 = vmul.f32 %v618_v56, %v618_v56  ;;  %v6579_v43 = vmul.f32 %v6348_v1, %v1244_v36  ;;  %v898_v56 = vsub.f32 %v6566_v41, %v6264_v18 }
  0xec   :  { %1573 = vrot.lane.b32.xlu1 %v6367_v14, %s6015_s30  ;;  %1571 = vrot.lane.b32.xlu0 %v6374_v16, %s6015_s30  ;;  %v946_v14 = vmul.f32 %v6315_v39, %v6315_v39  ;;  %v945_v16 = vmul.f32 %v6325_v44, %v6325_v44  ;;  %v6524_v15 = vmul.f32 %v6348_v1, %v1241_v26 }
  0xed   :  { %v1249_v39 = vmul.f32 %v6348_v1, %v1231_v63  ;;  %v1472_v44 = vsub.f32 %v6284_v23, %v6279_v22  ;;  %v1521_v63 = vmul.f32 %v1471_v24, %v1471_v24  ;;  %v667_v26 = vmul.f32 %v617_v0, %v617_v0 }
  0xee   :  { %v963_v58 = vmul.f32 %v6305_v32, %v945_v16  ;;  %v6559_v33 = vmul.f32 %v6341_v57, %v668_v10  ;;  %v6576_v16 = vld [vmem:[%s8072_s5 + $0x30] sm:$0xff]  ;;  %v6582_v23 = vmul.f32 %v6348_v1, %v1243_v37  ;;  %v948_v10 = vmul.f32 %v898_v56, %v898_v56 }
  0xef   :  { %v6569_v42 = vmul.f32 %v6341_v57, %v667_v26  ;;  %v1474_v9 = vsub.f32 %v6566_v41, %v6279_v22  ;;  %v609_v26 = vsub.f32 %v6576_v16, %v6293_v27 }
  0xf0   :  { %709 = vrot.lane.b32.xlu1 %v6381_v20, %s6015_s30  ;;  %707 = vrot.lane.b32.xlu0 %v673_v25, %s6015_s30  ;;  %v964_v20 = vmul.f32 %v6305_v32, %v946_v14  ;;  %v1522_v25 = vmul.f32 %v1472_v44, %v1472_v44  ;;  %v1183_v14 = vsub.f32 %v6298_v28, %v6302_v31 }
  0xf1   :  { %v657_v28 = vmul.f32 %v607_v2, %v607_v2  ;;  %v1234_v44 = vmul.f32 %v1184_v13, %v1184_v13  ;;  %v1524_v37 = vmul.f32 %v1474_v9, %v1474_v9 }
  0xf2   :  { %v1540_v47 = vmul.f32 %v6331_v48, %v1522_v25  ;;  %v1233_v24 = vmul.f32 %v1183_v14, %v1183_v14  ;;  %v1473_v25 = vsub.f32 %v6576_v16, %v6279_v22  ;;  %v1186_v22 = vsub.f32 %v6566_v41, %v6302_v31 }
  0xf3   :  { %v1252_v0 = vmul.f32 %v6348_v1, %v1234_v44  ;;  %v1185_v14 = vsub.f32 %v6576_v16, %v6302_v31 }
  0xf4   :  { %1285 = vrot.lane.b32.xlu1 %v1250_v38, %s6015_s30  ;;  %1283 = vrot.lane.b32.xlu0 %v1249_v39, %s6015_s30  ;;  %v658_v38 = vmul.f32 %v608_v59, %v608_v59  ;;  %v1539_v39 = vmul.f32 %v6331_v48, %v1521_v63  ;;  %v1251_v2 = vmul.f32 %v6348_v1, %v1233_v24 }
  0xf5   :  { %v966_v63 = vmul.f32 %v6305_v32, %v948_v10  ;;  %v1523_v13 = vmul.f32 %v1473_v25, %v1473_v25  ;;  %v1235_v24 = vmul.f32 %v1185_v14, %v1185_v14  ;;  %v5770_v10 = vld [vmem:[%s8072_s5] sm:$0xff] }
  0xf6   :  { %v676_v59 = vmul.f32 %v6341_v57, %v658_v38 }
  0xf7   :  { %v1253_v56 = vmul.f32 %v6348_v1, %v1235_v24 }
  0xf8   :  { %1001 = vrot.lane.b32.xlu1 %v964_v20, %s6015_s30  ;;  %999 = vrot.lane.b32.xlu0 %v963_v58, %s6015_s30  ;;  %v675_v20 = vmul.f32 %v6341_v57, %v657_v28  ;;  %v897_v58 = vsub.f32 %v6576_v16, %v6264_v18  ;;  %v610_v18 = vsub.f32 %v6566_v41, %v6293_v27 }
  0xf9   :  { %v1542_v27 = vmul.f32 %v6331_v48, %v1524_v37  ;;  %v1236_v28 = vmul.f32 %v1186_v22, %v1186_v22 }
  0xfa   :  { %v947_v8 = vmul.f32 %v897_v58, %v897_v58  ;;  %v660_v38 = vmul.f32 %v610_v18, %v610_v18 }
  0xfb   :  { %v1254_v31 = vmul.f32 %v6348_v1, %v1236_v28 }
  0xfc   :  { %1577 = vrot.lane.b32.xlu1 %v1540_v47, %s6015_s30  ;;  %1575 = vrot.lane.b32.xlu0 %v1539_v39, %s6015_s30  ;;  %v965_v36 = vmul.f32 %v6305_v32, %v947_v8  ;;  %v1541_v47 = vmul.f32 %v6331_v48, %v1523_v13  ;;  %v659_v39 = vmul.f32 %v609_v26, %v609_v26  ;;  %v210_v48 = vlaneseq }
  0xfd   :  { %v678_v32 = vmul.f32 %v6341_v57, %v660_v38  ;;  %v6757_v13 = vstv %s6711_s22  ;;  %v6764_v38 = vstv %s6719_s23  ;;  %s7576_s22 = sld [smem:[#allocation8]] }
  0xfe   :  { %v677_v44 = vmul.f32 %v6341_v57, %v659_v39  ;;  %v6663_v57 = vand.u32 127, %v210_v48  ;;  %v585_v24 = vsub.f32 %v5770_v10, %v6757_v13  ;;  %s4744_s23 = sld [smem:[#allocation8 + $0x100]] }
 0x100   :  { %713 = vrot.lane.b32.xlu1 %v676_v59, %s6015_s30  ;;  %711 = vrot.lane.b32.xlu0 %v675_v20, %s6015_s30 }
 0x104   :  { %1289 = vrot.lane.b32.xlu1 %v1252_v0, %s6015_s30  ;;  %1287 = vrot.lane.b32.xlu0 %v1251_v2, %s6015_s30 }
 0x108   :  { %1005 = vrot.lane.b32.xlu1 %v966_v63, %s6015_s30  ;;  %1003 = vrot.lane.b32.xlu0 %v965_v36, %s6015_s30 }
 0x10c   :  { %1581 = vrot.lane.b32.xlu1 %v1542_v27, %s6015_s30  ;;  %1579 = vrot.lane.b32.xlu0 %v1541_v47, %s6015_s30 }
 0x110   :  { %717 = vrot.lane.b32.xlu1 %v678_v32, %s6015_s30  ;;  %715 = vrot.lane.b32.xlu0 %v677_v44, %s6015_s30 }
 0x114   :  { %1293 = vrot.lane.b32.xlu1 %v1254_v31, %s6015_s30  ;;  %1291 = vrot.lane.b32.xlu0 %v1253_v56, %s6015_s30  ;;  %v6790_v31 = vstv %s6745_s18 }
 0x118   :  { %1009 = vrot.lane.b32.xlu1 %v6391_v30, %s6015_s30  ;;  %1007 = vrot.lane.b32.xlu0 %v6404_v45, %s6015_s30 }
 0x11c   :  { %1585 = vrot.lane.b32.xlu1 %v6407_v46, %s6015_s30  ;;  %1583 = vrot.lane.b32.xlu0 %v6410_v50, %s6015_s30  ;;  %v8091_v50 = vmov 0.0  }
 0x120   :  { %721 = vrot.lane.b32.xlu1 %v6413_v51, %s6015_s30  ;;  %719 = vrot.lane.b32.xlu0 %v6416_v52, %s6015_s30 }
 0x124   :  { %1297 = vrot.lane.b32.xlu1 %v6420_v54, %s6015_s30  ;;  %1295 = vrot.lane.b32.xlu0 %v6423_v55, %s6015_s30 }
 0x128   :  { %1013 = vrot.lane.b32.xlu1 %v6440_v6, %s6015_s30  ;;  %1011 = vrot.lane.b32.xlu0 %v6444_v11, %s6015_s30 }
 0x12c   :  { %1589 = vrot.lane.b32.xlu1 %v6447_v19, %s6015_s30  ;;  %1587 = vrot.lane.b32.xlu0 %v6452_v29, %s6015_s30 }
 0x130   :  { %725 = vrot.lane.b32.xlu1 %v6455_v21, %s6015_s30  ;;  %723 = vrot.lane.b32.xlu0 %v6458_v34, %s6015_s30 }
 0x134   :  { %1301 = vrot.lane.b32.xlu1 %v6461_v35, %s6015_s30  ;;  %1299 = vrot.lane.b32.xlu0 %v6466_v12, %s6015_s30 }
 0x137   :  { %v236_v1 = vpop.permute.xlu1 %235  ;;  %v230_v30 = vpop.permute.xlu0 %229 }
 0x138   :  { %1017 = vrot.lane.b32.xlu1 %v6484_v60, %s6015_s30  ;;  %1015 = vrot.lane.b32.xlu0 %v6487_v61, %s6015_s30  ;;  %vm278_vm0 = vcmp.eq.s32.totalorder %v6663_v57, %v236_v1  ;;  %vm276_vm1 = vcmp.eq.s32.totalorder %v6663_v57, %v230_v30  ;;  %v6795_v30 = vstv %s6751_s19  ;;  %s4747_s19 = sld [smem:[#allocation7 + $0x181]] }
 0x139   :  { %v4636_v51 = vsel %vm278_vm0, 1.0, %v8091_v50  ;;  %v4634_v54 = vsel %vm276_vm1, 1.0, %v8091_v50 }
 0x13b   :  { %v239_v45 = vpop.permute.xlu1 %238  ;;  %v233_v46 = vpop.permute.xlu0 %232 }
 0x13c   :  { %vm279_vm2 = vcmp.eq.s32.totalorder %v6663_v57, %v239_v45  ;;  %vm277_vm3 = vcmp.eq.s32.totalorder %v6663_v57, %v233_v46  ;;  %1593 = vrot.lane.b32.xlu1 %v6490_v3, %s6015_s30  ;;  %1591 = vrot.lane.b32.xlu0 %v6493_v62, %s6015_s30 }
 0x13d   :  { %v4637_v52 = vsel %vm279_vm2, 1.0, %v8091_v50  ;;  %v4635_v55 = vsel %vm277_vm3, 1.0, %v8091_v50 }
 0x13e   :  { %v6681_v6 = vpack.c.bf16 %v4637_v52, %v4636_v51  ;;  %v6683_v11 = vpack.c.bf16 %v4635_v55, %v4634_v54  ;;  %v6802_v52 = vstv %s6759_s24  ;;  %v1161_v55 = vsub.f32 %v5770_v10, %v6790_v31  ;;  %s7141_s24 = sld [smem:[#allocation8 + $0x81]] }
 0x13f   :  { %v245_v19 = vpop.permute.xlu1 %244  ;;  %v242_v29 = vpop.permute.xlu0 %241 }
 0x140   :  { %vm281_vm5 = vcmp.eq.s32.totalorder %v6663_v57, %v245_v19  ;;  %vm280_vm6 = vcmp.eq.s32.totalorder %v6663_v57, %v242_v29  ;;  %5169 = vmatprep.mubr.msk.bf16.mxu0 %vm422_vm4, %v6683_v11  ;;  %729 = vrot.lane.b32.xlu1 %v6496_v5, %s6015_s30 }
 0x141   :  { %v4639_v21 = vsel %vm281_vm5, 1.0, %v8091_v50  ;;  %v4638_v34 = vsel %vm280_vm6, 1.0, %v8091_v50  ;;  %5170 = vmatmul.mubr.msk.bf16.vlgmr.msra.gmra.mrb[0].mxu0 %vm422_vm4, %v6681_v6  ;;  %727 = vrot.lane.b32.xlu0 %v6500_v4, %s6015_s30 }
 0x142   :  { %v6697_v35 = vpack.c.bf16 %v4639_v21, %v4638_v34 }
 0x143   :  { %v251_v12 = vpop.permute.xlu1 %250  ;;  %v248_v60 = vpop.permute.xlu0 %247 }
 0x144   :  { %8113 = vst [vmem:[#allocation26_spill] sm:$0xff] %v6697_v35  ;;  %vm283_vm7 = vcmp.eq.s32.totalorder %v6663_v57, %v251_v12  ;;  %vm282_vm8 = vcmp.eq.s32.totalorder %v6663_v57, %v248_v60  ;;  %5173 = vmatprep.mubr.msk.bf16.mxu0 %vm422_vm4, %v6697_v35  ;;  %1305 = vrot.lane.b32.xlu1 %v6503_v7, %s6015_s30  ;;  %v6717_v7 = vstv %s4675_s2  ;;  %s7554_s2 = sld [smem:[#allocation7 + $0x100]] }
 0x145   :  { %v4641_v61 = vsel %vm283_vm7, 1.0, %v8091_v50  ;;  %v4640_v3 = vsel %vm282_vm8, 1.0, %v8091_v50  ;;  %1303 = vrot.lane.b32.xlu0 %v6524_v15, %s6015_s30  ;;  %v873_v8 = vsub.f32 %v5770_v10, %v6717_v7 }
 0x146   :  { %v6709_v62 = vpack.c.bf16 %v4641_v61, %v4640_v3 }
 0x147   :  { %v257_v5 = vpop.permute.xlu1 %256  ;;  %v254_v4 = vpop.permute.xlu0 %253 }
 0x148   :  { %8114 = vst [vmem:[#allocation27_spill] sm:$0xff] %v6709_v62  ;;  %vm285_vm9 = vcmp.eq.s32.totalorder %v6663_v57, %v257_v5  ;;  %vm284_vm10 = vcmp.eq.s32.totalorder %v6663_v57, %v254_v4  ;;  %1021 = vrot.lane.b32.xlu1 %v6527_v17, %s6015_s30  ;;  %v5769_v17 = vld [vmem:[%s8072_s5 + $0x8] sm:$0xff]  ;;  %v6816_v5 = vstv %s6778_s25  ;;  %s7143_s25 = sld [smem:[#allocation7 + $0x1]] }
 0x149   :  { %v4643_v59 = vsel %vm285_vm9, 1.0, %v8091_v50  ;;  %v4642_v15 = vsel %vm284_vm10, 1.0, %v8091_v50  ;;  %5174 = vmatmul.mubr.msk.bf16.gmra.mrb[4].mxu0 %vm422_vm4, %v6709_v62  ;;  %1019 = vrot.lane.b32.xlu0 %v6530_v40, %s6015_s30  ;;  %v874_v2 = vsub.f32 %v5769_v17, %v6717_v7  ;;  %v6743_v40 = vstv %s4683_s0  ;;  %s7572_s0 = sld [smem:[#allocation8 + $0x180]] }
 0x14a   :  { %v6727_v20 = vpack.c.bf16 %v4643_v59, %v4642_v15  ;;  %v1450_v37 = vsub.f32 %v5769_v17, %v6743_v40  ;;  %v586_v47 = vsub.f32 %v5769_v17, %v6757_v13  ;;  %v1162_v54 = vsub.f32 %v5769_v17, %v6790_v31  ;;  %v5772_v17 = vld [vmem:[%s8072_s5 + $0x10] sm:$0xff] }
 0x14b   :  { %v263_v58 = vpop.permute.xlu1 %262  ;;  %v260_v0 = vpop.permute.xlu0 %259  ;;  %v908_v36 = vmul.f32 %v874_v2, %v874_v2  ;;  %v875_v2 = vsub.f32 %v5772_v17, %v6717_v7 }
 0x14c   :  { %8115 = vst [vmem:[#allocation28_spill] sm:$0xff] %v6727_v20  ;;  %vm287_vm11 = vcmp.eq.s32.totalorder %v6663_v57, %v263_v58  ;;  %vm286_vm12 = vcmp.eq.s32.totalorder %v6663_v57, %v260_v0  ;;  %5177 = vmatprep.mubr.msk.bf16.mxu0 %vm422_vm4, %v6727_v20  ;;  %1597 = vrot.lane.b32.xlu1 %v6541_v49, %s6015_s30 }
 0x14d   :  { %v4645_v9 = vsel %vm287_vm11, 1.0, %v8091_v50  ;;  %v4644_v25 = vsel %vm286_vm12, 1.0, %v8091_v50  ;;  %1595 = vrot.lane.b32.xlu0 %v6544_v53, %s6015_s30  ;;  %v907_v49 = vmul.f32 %v873_v8, %v873_v8  ;;  %v1449_v53 = vsub.f32 %v5770_v10, %v6743_v40 }
 0x14e   :  { %v6753_v63 = vpack.c.bf16 %v4645_v9, %v4644_v25  ;;  %v926_v28 = vmul.f32 %v6764_v38, %v908_v36  ;;  %v1484_v44 = vmul.f32 %v1450_v37, %v1450_v37  ;;  %v1196_v58 = vmul.f32 %v1162_v54, %v1162_v54 }
 0x14f   :  { %v269_v18 = vpop.permute.xlu1 %268  ;;  %v266_v26 = vpop.permute.xlu0 %265  ;;  %v925_v32 = vmul.f32 %v6764_v38, %v907_v49  ;;  %v1195_v0 = vmul.f32 %v1161_v55, %v1161_v55  ;;  %v1451_v37 = vsub.f32 %v5772_v17, %v6743_v40  ;;  %vm6017_vm11 = vmmov 0  }
 0x150   :  { %8116 = vst [vmem:[#allocation29_spill] sm:$0xff] %v6753_v63  ;;  %vm289_vm13 = vcmp.eq.s32.totalorder %v6663_v57, %v269_v18  ;;  %vm288_vm14 = vcmp.eq.s32.totalorder %v6663_v57, %v266_v26  ;;  %733 = vrot.lane.b32.xlu1 %v6559_v33, %s6015_s30  ;;  %v1502_v21 = vmul.f32 %v6795_v30, %v1484_v44 }
 0x151   :  { %v4647_v22 = vsel %vm289_vm13, 1.0, %v8091_v50  ;;  %v4646_v14 = vsel %vm288_vm14, 1.0, %v8091_v50  ;;  %5178 = vmatmul.mubr.msk.bf16.gmra.mrb[8].mxu0 %vm422_vm4, %v6753_v63  ;;  %731 = vrot.lane.b32.xlu0 %v6569_v42, %s6015_s30  ;;  %v1483_v42 = vmul.f32 %v1449_v53, %v1449_v53  ;;  %v1485_v55 = vmul.f32 %v1451_v37, %v1451_v37  ;;  %v5773_v37 = vld [vmem:[%s8072_s5 + $0x28] sm:$0xff] }
 0x152   :  { %v6775_v27 = vpack.c.bf16 %v4647_v22, %v4646_v14  ;;  %v1214_v14 = vmul.f32 %v6816_v5, %v1196_v58 }
 0x153   :  { %v275_v39 = vpop.permute.xlu1 %274  ;;  %v272_v33 = vpop.permute.xlu0 %271  ;;  %v1501_v34 = vmul.f32 %v6795_v30, %v1483_v42  ;;  %v587_v42 = vsub.f32 %v5772_v17, %v6757_v13  ;;  %v1503_v58 = vmul.f32 %v6795_v30, %v1485_v55 }
 0x154   :  { %8117 = vst [vmem:[#allocation30_spill] sm:$0xff] %v6775_v27  ;;  %vm291_vm15 = vcmp.eq.s32.totalorder %v6663_v57, %v275_v39  ;;  %vm290_vm0 = vcmp.eq.s32.totalorder %v6663_v57, %v272_v33  ;;  %5181 = vmatprep.mubr.msk.bf16.mxu0 %vm422_vm4, %v6775_v27  ;;  %1309 = vrot.lane.b32.xlu1 %v6579_v43, %s6015_s30 }
 0x155   :  { %v4649_v56 = vsel %vm291_vm15, 1.0, %v8091_v50  ;;  %v4648_v1 = vsel %vm290_vm0, 1.0, %v8091_v50  ;;  %1307 = vrot.lane.b32.xlu0 %v6582_v23, %s6015_s30  ;;  %v620_v57 = vmul.f32 %v586_v47, %v586_v47  ;;  %v619_v43 = vmul.f32 %v585_v24, %v585_v24  ;;  %v5771_v23 = vld [vmem:[%s8072_s5 + $0x18] sm:$0xff] }
 0x156   :  { %v6799_v45 = vpack.c.bf16 %v4649_v56, %v4648_v1  ;;  %v876_v12 = vsub.f32 %v5771_v23, %v6717_v7  ;;  %v1452_v26 = vsub.f32 %v5771_v23, %v6743_v40  ;;  %v1213_v47 = vmul.f32 %v6816_v5, %v1195_v0 }
 0x157   :  { %v994_v46 = vpop.permute.xlu1 %993  ;;  %v992_v51 = vpop.permute.xlu0 %991  ;;  %v638_v3 = vmul.f32 %v6802_v52, %v620_v57  ;;  %v637_v15 = vmul.f32 %v6802_v52, %v619_v43  ;;  %v909_v39 = vmul.f32 %v875_v2, %v875_v2  ;;  %v588_v24 = vsub.f32 %v5771_v23, %v6757_v13 }
 0x158   :  { %8118 = vst [vmem:[#allocation31_spill] sm:$0xff] %v6799_v45  ;;  %v1040_v19 = vadd.f32 %v994_v46, %v926_v28  ;;  %v1039_v29 = vadd.f32 %v992_v51, %v925_v32  ;;  %v910_v18 = vmul.f32 %v876_v12, %v876_v12  ;;  %v1486_v57 = vmul.f32 %v1452_v26, %v1452_v26 }
 0x159   :  { %5182 = vmatmul.mubr.msk.bf16.gmra.mrb[12].mxu0 %vm422_vm4, %v6799_v45  ;;  %v927_v54 = vmul.f32 %v6764_v38, %v909_v39  ;;  %v622_v12 = vmul.f32 %v588_v24, %v588_v24  ;;  %v1164_v0 = vsub.f32 %v5771_v23, %v6790_v31  ;;  %v1163_v2 = vsub.f32 %v5772_v17, %v6790_v31 }
 0x15a   :  { %v1056_v60 = vmul.f32 -0.5, %v1040_v19  ;;  %v1055_v61 = vmul.f32 -0.5, %v1039_v29  ;;  %v928_v43 = vmul.f32 %v6764_v38, %v910_v18 }
 0x15b   :  { %v1570_v4 = vpop.permute.xlu1 %1569  ;;  %v1568_v59 = vpop.permute.xlu0 %1567  ;;  %v1198_v39 = vmul.f32 %v1164_v0, %v1164_v0 }
 0x15c   :  { %v1073_v10 = vmul.f32 1.442695, %v1056_v60  ;;  %v1071_v8 = vmul.f32 1.442695, %v1055_v61  ;;  %v1616_v9 = vadd.f32 %v1570_v4, %v1502_v21  ;;  %v1615_v25 = vadd.f32 %v1568_v59, %v1501_v34 }
 0x15d   :  { %v621_v60 = vmul.f32 %v587_v42, %v587_v42  ;;  %v1504_v4 = vmul.f32 %v6795_v30, %v1486_v57 }
 0x15e   :  { %5491 = vpow2.f32 %v1073_v10  ;;  %v1632_v36 = vmul.f32 -0.5, %v1616_v9  ;;  %v1631_v49 = vmul.f32 -0.5, %v1615_v25 }
 0x15f   :  { %5493 = vpow2.f32 %v1071_v8  ;;  %v706_v53 = vpop.permute.xlu1 %705  ;;  %v704_v22 = vpop.permute.xlu0 %703 }
 0x160   :  { %v1649_v33 = vmul.f32 1.442695, %v1632_v36  ;;  %v1647_v28 = vmul.f32 1.442695, %v1631_v49  ;;  %v752_v32 = vadd.f32 %v706_v53, %v638_v3  ;;  %v751_v44 = vadd.f32 %v704_v22, %v637_v15 }
 0x161   :  { %v640_v36 = vmul.f32 %v6802_v52, %v622_v12  ;;  %v639_v49 = vmul.f32 %v6802_v52, %v621_v60  ;;  %v878_v53 = vsub.f32 %v5773_v37, %v6717_v7 }
 0x162   :  { %5495 = vpow2.f32 %v1649_v33  ;;  %v768_v56 = vmul.f32 -0.5, %v752_v32  ;;  %v767_v1 = vmul.f32 -0.5, %v751_v44  ;;  %v1197_v33 = vmul.f32 %v1163_v2, %v1163_v2 }
 0x163   :  { %5497 = vpow2.f32 %v1647_v28  ;;  %v1282_v46 = vpop.permute.xlu1 %1281  ;;  %v1280_v51 = vpop.permute.xlu0 %1279  ;;  %v5774_v28 = vld [vmem:[%s8072_s5 + $0x20] sm:$0xff] }
 0x164   :  { %v785_v19 = vmul.f32 1.442695, %v768_v56  ;;  %v783_v29 = vmul.f32 1.442695, %v767_v1  ;;  %v1328_v21 = vadd.f32 %v1282_v46, %v1214_v14  ;;  %v1327_v34 = vadd.f32 %v1280_v51, %v1213_v47 }
 0x165   :  { %v877_v32 = vsub.f32 %v5774_v28, %v6717_v7  ;;  %v912_v46 = vmul.f32 %v878_v53, %v878_v53  ;;  %v1454_v51 = vsub.f32 %v5773_v37, %v6743_v40  ;;  %v1215_v12 = vmul.f32 %v6816_v5, %v1197_v33 }
 0x166   :  { %5499 = vpow2.f32 %v785_v19  ;;  %v1344_v61 = vmul.f32 -0.5, %v1328_v21  ;;  %v1343_v3 = vmul.f32 -0.5, %v1327_v34  ;;  %v1216_v34 = vmul.f32 %v6816_v5, %v1198_v39 }
 0x167   :  { %5501 = vpow2.f32 %v783_v29  ;;  %v998_v59 = vpop.permute.xlu1 %997  ;;  %v996_v15 = vpop.permute.xlu0 %995  ;;  %v911_v60 = vmul.f32 %v877_v32, %v877_v32  ;;  %v1488_v0 = vmul.f32 %v1454_v51, %v1454_v51  ;;  %v930_v53 = vmul.f32 %v6764_v38, %v912_v46 }
 0x168   :  { %v5492_v10 = vpop.eup %5491  ;;  %v1361_v8 = vmul.f32 1.442695, %v1344_v61  ;;  %v1359_v9 = vmul.f32 1.442695, %v1343_v3  ;;  %v1042_v25 = vadd.f32 %v998_v59, %v928_v43  ;;  %v1041_v18 = vadd.f32 %v996_v15, %v927_v54 }
 0x169   :  { %v5494_v26 = vpop.eup %5493  ;;  %v1453_v43 = vsub.f32 %v5774_v28, %v6743_v40  ;;  %v1506_v33 = vmul.f32 %v6795_v30, %v1488_v0 }
 0x16a   :  { %5503 = vpow2.f32 %v1361_v8  ;;  %v1058_v23 = vmul.f32 -0.5, %v1042_v25  ;;  %v1057_v22 = vmul.f32 -0.5, %v1041_v18  ;;  %v1103_v17 = vpack.c.bf16 %v5492_v10, %v5494_v26 }
 0x16b   :  { %5505 = vpow2.f32 %v1359_v9  ;;  %v1574_v14 = vpop.permute.xlu1 %1573  ;;  %v1572_v47 = vpop.permute.xlu0 %1571  ;;  %v1487_v2 = vmul.f32 %v1453_v43, %v1453_v43  ;;  %v590_v10 = vsub.f32 %v5773_v37, %v6757_v13  ;;  %v1165_v43 = vsub.f32 %v5774_v28, %v6790_v31 }
 0x16c   :  { %v5496_v44 = vpop.eup %5495  ;;  %v1077_v24 = vmul.f32 1.442695, %v1058_v23  ;;  %v1075_v42 = vmul.f32 1.442695, %v1057_v22  ;;  %v1618_v56 = vadd.f32 %v1574_v14, %v1504_v4  ;;  %1113 = vperm.xlu0 %5389, %v1103_v17   ;;  %v1617_v1 = vadd.f32 %v1572_v47, %v1503_v58 }
 0x16d   :  { %v5498_v57 = vpop.eup %5497  ;;  %v929_v23 = vmul.f32 %v6764_v38, %v911_v60  ;;  %v624_v32 = vmul.f32 %v590_v10, %v590_v10  ;;  %v1505_v46 = vmul.f32 %v6795_v30, %v1487_v2  ;;  %v879_v60 = vsub.f32 %v6576_v16, %v6717_v7  ;;  %v5395_v2 = vld [vmem:[%s8076_s9 + $0x40] sm:$0xff]  }
 0x16e   :  { %5507 = vpow2.f32 %v1077_v24  ;;  %v1634_v54 = vmul.f32 -0.5, %v1618_v56  ;;  %v1633_v55 = vmul.f32 -0.5, %v1617_v1  ;;  %v1679_v19 = vpack.c.bf16 %v5496_v44, %v5498_v57  ;;  %v5396_v10 = vld [vmem:[%s8076_s9 + $0xc0] sm:$0xff]   ;;  %4822 = vmatprep.subr.bf16.mxu1 %v5395_v2  ;;  %v5405_v2 = vld [vmem:[%s8076_s9 + $0x10] sm:$0xff]  }
 0x16f   :  { %5509 = vpow2.f32 %v1075_v42  ;;  %v710_v29 = vpop.permute.xlu1 %709  ;;  %v708_v21 = vpop.permute.xlu0 %707  ;;  %v1166_v44 = vsub.f32 %v5773_v37, %v6790_v31  ;;  %v1199_v0 = vmul.f32 %v1165_v43, %v1165_v43  ;;  %4886 = vmatprep.subr.bf16.mxu0 %v5396_v10 }
 0x170   :  { %v5500_v61 = vpop.eup %5499  ;;  %v1653_v3 = vmul.f32 1.442695, %v1634_v54  ;;  %v1651_v4 = vmul.f32 1.442695, %v1633_v55  ;;  %v754_v59 = vadd.f32 %v710_v29, %v640_v36  ;;  %1689 = vperm.xlu1 %5390, %v1679_v19   ;;  %v753_v15 = vadd.f32 %v708_v21, %v639_v49 }
 0x171   :  { %v5502_v58 = vpop.eup %5501  ;;  %v589_v36 = vsub.f32 %v5774_v28, %v6757_v13  ;;  %v1200_v37 = vmul.f32 %v1166_v44, %v1166_v44  ;;  %v1217_v44 = vmul.f32 %v6816_v5, %v1199_v0  ;;  %v5404_v0 = vld [vmem:[%s8076_s9 + $0xd0] sm:$0xff]  }
 0x172   :  { %5511 = vpow2.f32 %v1653_v3  ;;  %v770_v8 = vmul.f32 -0.5, %v754_v59  ;;  %v769_v9 = vmul.f32 -0.5, %v753_v15  ;;  %v815_v25 = vpack.c.bf16 %v5500_v61, %v5502_v58 }
 0x173   :  { %5513 = vpow2.f32 %v1651_v4  ;;  %v1286_v18 = vpop.permute.xlu1 %1285  ;;  %v1284_v26 = vpop.permute.xlu0 %1283  ;;  %v623_v51 = vmul.f32 %v589_v36, %v589_v36  ;;  %v642_v15 = vmul.f32 %v6802_v52, %v624_v32  ;;  %v1218_v36 = vmul.f32 %v6816_v5, %v1200_v37  ;;  %v5402_v37 = vld [vmem:[%s8076_s9 + $0x88] sm:$0xff]  }
 0x174   :  { %v5504_v22 = vpop.eup %5503  ;;  %v789_v49 = vmul.f32 1.442695, %v770_v8  ;;  %v787_v17 = vmul.f32 1.442695, %v769_v9  ;;  %v1330_v14 = vadd.f32 %v1286_v18, %v1216_v34  ;;  %v1329_v47 = vadd.f32 %v1284_v26, %v1215_v12  ;;  %825 = vperm.xlu0 %5389, %v815_v25   ;;  %v5397_v8 = vld [vmem:[%s8076_s9] sm:$0xff]  }
 0x175   :  { %v5506_v39 = vpop.eup %5505  ;;  %v880_v12 = vsub.f32 %v6566_v41, %v6717_v7  ;;  %v641_v58 = vmul.f32 %v6802_v52, %v623_v51  ;;  %4823 = vmatpush3.bf16.msra.mxu1 %v5397_v8 }
 0x176   :  { %5515 = vpow2.f32 %v789_v49  ;;  %v1346_v24 = vmul.f32 -0.5, %v1330_v14  ;;  %v1345_v42 = vmul.f32 -0.5, %v1329_v47  ;;  %v1391_v56 = vpack.c.bf16 %v5504_v22, %v5506_v39 }
 0x177   :  { %5517 = vpow2.f32 %v787_v17  ;;  %v1002_v1 = vpop.permute.xlu1 %1001  ;;  %v1000_v57 = vpop.permute.xlu0 %999  ;;  %v914_v22 = vmul.f32 %v880_v12, %v880_v12  ;;  %v913_v49 = vmul.f32 %v879_v60, %v879_v60  ;;  %v5398_v17 = vld [vmem:[%s8076_s9 + $0x80] sm:$0xff]  }
 0x178   :  { %v5508_v54 = vpop.eup %5507  ;;  %v1365_v55 = vmul.f32 1.442695, %v1346_v24  ;;  %v1363_v19 = vmul.f32 1.442695, %v1345_v42  ;;  %v1044_v29 = vadd.f32 %v1002_v1, %v930_v53  ;;  %1401 = vperm.xlu1 %5390, %v1391_v56   ;;  %v1043_v21 = vadd.f32 %v1000_v57, %v929_v23  ;;  %4887 = vmatpush3.bf16.msra.mxu0 %v5398_v17  ;;  %v5399_v56 = vld [vmem:[%s8076_s9 + $0x48] sm:$0xff]  }
 0x179   :  { %v5510_v34 = vpop.eup %5509  ;;  %v1456_v24 = vsub.f32 %v6566_v41, %v6743_v40  ;;  %v1455_v42 = vsub.f32 %v6576_v16, %v6743_v40  ;;  %v5400_v1 = vld [vmem:[%s8076_s9 + $0xc8] sm:$0xff]   ;;  %4824 = vmatprep.subr.bf16.mxu1 %v5399_v56 }
 0x17a   :  { %5519 = vpow2.f32 %v1365_v55  ;;  %v1060_v61 = vmul.f32 -0.5, %v1044_v29  ;;  %v1059_v3 = vmul.f32 -0.5, %v1043_v21  ;;  %v1104_v4 = vpack.c.bf16 %v5508_v54, %v5510_v34  ;;  %v5401_v57 = vld [vmem:[%s8076_s9 + $0x8] sm:$0xff]   ;;  %4888 = vmatprep.subr.bf16.mxu0 %v5400_v1 }
 0x17b   :  { %5521 = vpow2.f32 %v1363_v19  ;;  %v1578_v28 = vpop.permute.xlu1 %1577  ;;  %v1576_v59 = vpop.permute.xlu0 %1575  ;;  %v932_v29 = vmul.f32 %v6764_v38, %v914_v22  ;;  %v592_v21 = vsub.f32 %v6566_v41, %v6757_v13  ;;  %v591_v34 = vsub.f32 %v6576_v16, %v6757_v13  ;;  %4825 = vmatpush3.bf16.msra.mxu1 %v5401_v57 }
 0x17c   :  { %v5512_v9 = vpop.eup %5511  ;;  %v1081_v25 = vmul.f32 1.442695, %v1060_v61  ;;  %v1079_v18 = vmul.f32 1.442695, %v1059_v3  ;;  %v1620_v26 = vadd.f32 %v1578_v28, %v1506_v33  ;;  %v1619_v53 = vadd.f32 %v1576_v59, %v1505_v46  ;;  %1118 = vperm.xlu0 %5389, %v1104_v4   ;;  %4889 = vmatpush3.bf16.msra.mxu0 %v5402_v37 }
 0x17d   :  { %v5514_v23 = vpop.eup %5513  ;;  %v931_v28 = vmul.f32 %v6764_v38, %v913_v49  ;;  %v1490_v59 = vmul.f32 %v1456_v24, %v1456_v24  ;;  %v1168_v22 = vsub.f32 %v6566_v41, %v6790_v31  ;;  %4890 = vmatprep.subr.bf16.mxu0 %v5404_v0  ;;  %v5406_v49 = vld [vmem:[%s8076_s9 + $0x90] sm:$0xff]   ;;  %v1167_v41 = vsub.f32 %v6576_v16, %v6790_v31  ;;  %v5408_v24 = vld [vmem:[%s8076_s9 + $0xd8] sm:$0xff]  }
 0x17e   :  { %5523 = vpow2.f32 %v1081_v25  ;;  %v1636_v14 = vmul.f32 -0.5, %v1620_v26  ;;  %v1635_v47 = vmul.f32 -0.5, %v1619_v53  ;;  %v1680_v39 = vpack.c.bf16 %v5512_v9, %v5514_v23 }
 0x17f   :  { %5525 = vpow2.f32 %v1079_v18  ;;  %v714_v33 = vpop.permute.xlu1 %713  ;;  %v712_v32 = vpop.permute.xlu0 %711  ;;  %v626_v53 = vmul.f32 %v592_v21, %v592_v21  ;;  %v625_v23 = vmul.f32 %v591_v34, %v591_v34 }
 0x180   :  { %v5516_v46 = vpop.eup %5515  ;;  %v1657_v51 = vmul.f32 1.442695, %v1636_v14  ;;  %v1655_v43 = vmul.f32 1.442695, %v1635_v47  ;;  %v756_v54 = vadd.f32 %v714_v33, %v642_v15  ;;  %1694 = vperm.xlu1 %5390, %v1680_v39   ;;  %v755_v55 = vadd.f32 %v712_v32, %v641_v58  ;;  %v5403_v58 = vld [vmem:[%s8076_s9 + $0x50] sm:$0xff]   ;;  %4891 = vmatpush3.bf16.msra.mxu0 %v5406_v49 }
 0x181   :  { %v5518_v19 = vpop.eup %5517  ;;  %v1489_v15 = vmul.f32 %v1455_v42, %v1455_v42  ;;  %4826 = vmatprep.subr.bf16.mxu1 %v5403_v58  ;;  %v1508_v33 = vmul.f32 %v6795_v30, %v1490_v59  ;;  %v5409_v42 = vld [vmem:[%s8076_s9 + $0x18] sm:$0xff]   ;;  %4892 = vmatprep.subr.bf16.mxu0 %v5408_v24 }
 0x182   :  { %5527 = vpow2.f32 %v1657_v51  ;;  %v772_v12 = vmul.f32 -0.5, %v756_v54  ;;  %v771_v60 = vmul.f32 -0.5, %v755_v55  ;;  %v816_v61 = vpack.c.bf16 %v5516_v46, %v5518_v19  ;;  %4827 = vmatpush3.bf16.msra.mxu1 %v5405_v2  ;;  %v5410_v19 = vld [vmem:[%s8076_s9 + $0x98] sm:$0xff]  }
 0x183   :  { %5529 = vpow2.f32 %v1655_v43  ;;  %v1290_v3 = vpop.permute.xlu1 %1289  ;;  %v1288_v4 = vpop.permute.xlu0 %1287  ;;  %v1507_v32 = vmul.f32 %v6795_v30, %v1489_v15  ;;  %v644_v43 = vmul.f32 %v6802_v52, %v626_v53  ;;  %v643_v54 = vmul.f32 %v6802_v52, %v625_v23  ;;  %v5413_v53 = vld [vmem:[%s8076_s9 + $0x20] sm:$0xff]  }
 0x184   :  { %v5520_v10 = vpop.eup %5519  ;;  %v793_v8 = vmul.f32 1.442695, %v772_v12  ;;  %v791_v9 = vmul.f32 1.442695, %v771_v60  ;;  %v1332_v25 = vadd.f32 %v1290_v3, %v1218_v36  ;;  %v1331_v18 = vadd.f32 %v1288_v4, %v1217_v44  ;;  %830 = vperm.xlu0 %5389, %v816_v61   ;;  %v5407_v44 = vld [vmem:[%s8076_s9 + $0x58] sm:$0xff]   ;;  %v6934_v61 = vld [vmem:[%s8072_s5 + $0x48] sm:$0xff]  ;;  %4893 = vmatpush3.bf16.msra.mxu0 %v5410_v19 }
 0x185   :  { %v5522_v26 = vpop.eup %5521  ;;  %v1202_v55 = vmul.f32 %v1168_v22, %v1168_v22  ;;  %4828 = vmatprep.subr.bf16.mxu1 %v5407_v44  ;;  %v1201_v60 = vmul.f32 %v1167_v41, %v1167_v41  ;;  %v882_v3 = vsub.f32 %v6934_v61, %v6717_v7  ;;  %v6941_v4 = vld [vmem:[%s8072_s5 + $0x40] sm:$0xff] }
 0x186   :  { %5531 = vpow2.f32 %v793_v8  ;;  %v1348_v17 = vmul.f32 -0.5, %v1332_v25  ;;  %v1347_v14 = vmul.f32 -0.5, %v1331_v18  ;;  %v1392_v47 = vpack.c.bf16 %v5520_v10, %v5522_v26  ;;  %4829 = vmatpush3.bf16.msra.mxu1 %v5409_v42  ;;  %v5411_v10 = vld [vmem:[%s8076_s9 + $0x60] sm:$0xff]  }
 0x187   :  { %5533 = vpow2.f32 %v791_v9  ;;  %v1006_v36 = vpop.permute.xlu1 %1005  ;;  %v1004_v39 = vpop.permute.xlu0 %1003  ;;  %v5412_v8 = vld [vmem:[%s8076_s9 + $0xe0] sm:$0xff]   ;;  %v1220_v25 = vmul.f32 %v6816_v5, %v1202_v55  ;;  %v1458_v18 = vsub.f32 %v6934_v61, %v6743_v40  ;;  %v1457_v26 = vsub.f32 %v6941_v4, %v6743_v40  ;;  %4830 = vmatprep.subr.bf16.mxu1 %v5411_v10 }
 0x188   :  { %v5524_v56 = vpop.eup %5523  ;;  %v1369_v1 = vmul.f32 1.442695, %v1348_v17  ;;  %v1367_v57 = vmul.f32 1.442695, %v1347_v14  ;;  %v1046_v46 = vadd.f32 %v1006_v36, %v932_v29  ;;  %1406 = vperm.xlu1 %5390, %v1392_v47   ;;  %v1045_v51 = vadd.f32 %v1004_v39, %v931_v28  ;;  %v5414_v23 = vld [vmem:[%s8076_s9 + $0xa0] sm:$0xff]   ;;  %4894 = vmatprep.subr.bf16.mxu0 %v5412_v8 }
 0x189   :  { %v5526_v16 = vpop.eup %5525  ;;  %v881_v28 = vsub.f32 %v6941_v4, %v6717_v7  ;;  %v1219_v36 = vmul.f32 %v6816_v5, %v1201_v60  ;;  %v916_v39 = vmul.f32 %v882_v3, %v882_v3  ;;  %4895 = vmatpush3.bf16.msra.mxu0 %v5414_v23  ;;  %v593_v60 = vsub.f32 %v6941_v4, %v6757_v13 }
 0x18a   :  { %5535 = vpow2.f32 %v1369_v1  ;;  %v1062_v21 = vmul.f32 -0.5, %v1046_v46  ;;  %v1061_v34 = vmul.f32 -0.5, %v1045_v51  ;;  %v1105_v37 = vpack.c.bf16 %v5524_v56, %v5526_v16  ;;  %4831 = vmatpush3.bf16.msra.mxu1 %v5413_v53  ;;  %v5415_v56 = vld [vmem:[%s8076_s9 + $0x68] sm:$0xff]  }
 0x18b   :  { %5537 = vpow2.f32 %v1367_v57  ;;  %v1582_v29 = vpop.permute.xlu1 %1581  ;;  %v1580_v12 = vpop.permute.xlu0 %1579  ;;  %v5416_v1 = vld [vmem:[%s8076_s9 + $0xe8] sm:$0xff]   ;;  %v1492_v46 = vmul.f32 %v1458_v18, %v1458_v18  ;;  %v1491_v51 = vmul.f32 %v1457_v26, %v1457_v26  ;;  %v594_v16 = vsub.f32 %v6934_v61, %v6757_v13  ;;  %4832 = vmatprep.subr.bf16.mxu1 %v5415_v56  ;;  %v5422_v26 = vld [vmem:[%s8076_s9 + $0xb0] sm:$0xff]  }
 0x18c   :  { %v5528_v59 = vpop.eup %5527  ;;  %v1085_v15 = vmul.f32 1.442695, %v1062_v21  ;;  %v1083_v58 = vmul.f32 1.442695, %v1061_v34  ;;  %v1622_v0 = vadd.f32 %v1582_v29, %v1508_v33  ;;  %v1621_v2 = vadd.f32 %v1580_v12, %v1507_v32  ;;  %1123 = vperm.xlu0 %5389, %v1105_v37   ;;  %4896 = vmatprep.subr.bf16.mxu0 %v5416_v1 }
 0x18d   :  { %v5530_v9 = vpop.eup %5529  ;;  %v915_v33 = vmul.f32 %v881_v28, %v881_v28  ;;  %v934_v29 = vmul.f32 %v6764_v38, %v916_v39  ;;  %v1510_v8 = vmul.f32 %v6795_v30, %v1492_v46  ;;  %v628_v18 = vmul.f32 %v594_v16, %v594_v16  ;;  %v5426_v16 = vld [vmem:[%s8076_s9 + $0xb8] sm:$0xff]  }
 0x18e   :  { %5539 = vpow2.f32 %v1085_v15  ;;  %v1638_v22 = vmul.f32 -0.5, %v1622_v0  ;;  %v1637_v49 = vmul.f32 -0.5, %v1621_v2  ;;  %v1681_v17 = vpack.c.bf16 %v5528_v59, %v5530_v9  ;;  %v5419_v0 = vld [vmem:[%s8076_s9 + $0x70] sm:$0xff]  }
 0x18f   :  { %5541 = vpow2.f32 %v1083_v58  ;;  %v718_v14 = vpop.permute.xlu1 %717  ;;  %v716_v47 = vpop.permute.xlu0 %715  ;;  %v933_v12 = vmul.f32 %v6764_v38, %v915_v33  ;;  %v5420_v2 = vld [vmem:[%s8076_s9 + $0xf0] sm:$0xff]   ;;  %v1509_v9 = vmul.f32 %v6795_v30, %v1491_v51  ;;  %v646_v56 = vmul.f32 %v6802_v52, %v628_v18  ;;  %v5425_v51 = vld [vmem:[%s8076_s9 + $0x38] sm:$0xff]  }
 0x190   :  { %v5532_v32 = vpop.eup %5531  ;;  %v1661_v41 = vmul.f32 1.442695, %v1638_v22  ;;  %v1659_v44 = vmul.f32 1.442695, %v1637_v49  ;;  %v758_v24 = vadd.f32 %v718_v14, %v644_v43  ;;  %1699 = vperm.xlu1 %5390, %v1681_v17   ;;  %v757_v42 = vadd.f32 %v716_v47, %v643_v54  ;;  %v5417_v43 = vld [vmem:[%s8076_s9 + $0x28] sm:$0xff]  }
 0x191   :  { %v5534_v57 = vpop.eup %5533  ;;  %v5418_v54 = vld [vmem:[%s8076_s9 + $0xa8] sm:$0xff]   ;;  %4833 = vmatpush3.bf16.msra.mxu1 %v5417_v43  ;;  %v627_v14 = vmul.f32 %v593_v60, %v593_v60  ;;  %v1170_v47 = vsub.f32 %v6934_v61, %v6790_v31 }
 0x192   :  { %5543 = vpow2.f32 %v1661_v41  ;;  %v774_v55 = vmul.f32 -0.5, %v758_v24  ;;  %v773_v19 = vmul.f32 -0.5, %v757_v42  ;;  %v817_v21 = vpack.c.bf16 %v5532_v32, %v5534_v57  ;;  %4897 = vmatpush3.bf16.msra.mxu0 %v5418_v54  ;;  %4834 = vmatprep.subr.bf16.mxu1 %v5419_v0  ;;  %v5423_v24 = vld [vmem:[%s8076_s9 + $0x78] sm:$0xff]   ;;  %v7016_v57 = vld [vmem:[%s8072_s5 + $0x50] sm:$0xff] }
 0x193   :  { %5545 = vpow2.f32 %v1659_v44  ;;  %v1294_v34 = vpop.permute.xlu1 %1293  ;;  %v1292_v37 = vpop.permute.xlu0 %1291  ;;  %4898 = vmatprep.subr.bf16.mxu0 %v5420_v2  ;;  %v5424_v42 = vld [vmem:[%s8076_s9 + $0xf8] sm:$0xff]   ;;  %v883_v46 = vsub.f32 %v7016_v57, %v6717_v7 }
 0x194   :  { %v5536_v3 = vpop.eup %5535  ;;  %v797_v28 = vmul.f32 1.442695, %v774_v55  ;;  %v795_v59 = vmul.f32 1.442695, %v773_v19  ;;  %v1334_v15 = vadd.f32 %v1294_v34, %v1220_v25  ;;  %v1333_v58 = vadd.f32 %v1292_v37, %v1219_v36  ;;  %835 = vperm.xlu0 %5389, %v817_v21   ;;  %v5421_v25 = vld [vmem:[%s8076_s9 + $0x30] sm:$0xff]   ;;  %s7552_s9 = sld [smem:[#allocation8 + $0x80]] }
 0x195   :  { %v5538_v10 = vpop.eup %5537  ;;  %v1169_v36 = vsub.f32 %v6941_v4, %v6790_v31  ;;  %4835 = vmatpush3.bf16.msra.mxu1 %v5421_v25  ;;  %v7009_v4 = vld [vmem:[%s8072_s5 + $0x58] sm:$0xff]  ;;  %v645_v34 = vmul.f32 %v6802_v52, %v627_v14  ;;  %v1204_v37 = vmul.f32 %v1170_v47, %v1170_v47  ;;  %v917_v0 = vmul.f32 %v883_v46, %v883_v46 }
 0x196   :  { %5547 = vpow2.f32 %v797_v28  ;;  %v1350_v53 = vmul.f32 -0.5, %v1334_v15  ;;  %v1349_v23 = vmul.f32 -0.5, %v1333_v58  ;;  %v1393_v22 = vpack.c.bf16 %v5536_v3, %v5538_v10  ;;  %4899 = vmatpush3.bf16.msra.mxu0 %v5422_v26  ;;  %4836 = vmatprep.subr.bf16.mxu1 %v5423_v24 }
 0x197   :  { %5549 = vpow2.f32 %v795_v59  ;;  %v1010_v49 = vpop.permute.xlu1 %1009  ;;  %v1008_v17 = vpop.permute.xlu0 %1007  ;;  %v884_v1 = vsub.f32 %v7009_v4, %v6717_v7  ;;  %4900 = vmatprep.subr.bf16.mxu0 %v5424_v42  ;;  %v1460_v2 = vsub.f32 %v7009_v4, %v6743_v40  ;;  %v596_v46 = vsub.f32 %v7009_v4, %v6757_v13 }
 0x198   :  { %v5540_v39 = vpop.eup %5539  ;;  %v1373_v33 = vmul.f32 1.442695, %v1350_v53  ;;  %v1371_v32 = vmul.f32 1.442695, %v1349_v23  ;;  %v1048_v41 = vadd.f32 %v1010_v49, %v934_v29  ;;  %1411 = vperm.xlu1 %5390, %v1393_v22   ;;  %v1047_v44 = vadd.f32 %v1008_v17, %v933_v12 }
 0x199   :  { %v5542_v61 = vpop.eup %5541  ;;  %v1203_v29 = vmul.f32 %v1169_v36, %v1169_v36  ;;  %4837 = vmatpush3.bf16.msra.mxu1 %v5425_v51  ;;  %v918_v58 = vmul.f32 %v884_v1, %v884_v1  ;;  %v1222_v23 = vmul.f32 %v6816_v5, %v1204_v37  ;;  %v1171_v37 = vsub.f32 %v7016_v57, %v6790_v31 }
 0x19a   :  { %5551 = vpow2.f32 %v1373_v33  ;;  %v1064_v43 = vmul.f32 -0.5, %v1048_v41  ;;  %v1063_v54 = vmul.f32 -0.5, %v1047_v44  ;;  %v1106_v55 = vpack.c.bf16 %v5540_v39, %v5542_v61  ;;  %4901 = vmatpush3.bf16.msra.mxu0 %v5426_v16 }
 0x19b   :  { %5553 = vpow2.f32 %v1371_v32  ;;  %v1586_v19 = vpop.permute.xlu1 %1585  ;;  %v1584_v21 = vpop.permute.xlu0 %1583  ;;  %v1221_v22 = vmul.f32 %v6816_v5, %v1203_v29  ;;  %v936_v39 = vmul.f32 %v6764_v38, %v918_v58  ;;  %v935_v33 = vmul.f32 %v6764_v38, %v917_v0 }
 0x19c   :  { %v5544_v12 = vpop.eup %5543  ;;  %v1089_v60 = vmul.f32 1.442695, %v1064_v43  ;;  %v1087_v3 = vmul.f32 1.442695, %v1063_v54  ;;  %v1624_v28 = vadd.f32 %v1586_v19, %v1510_v8  ;;  %v1623_v59 = vadd.f32 %v1584_v21, %v1509_v9  ;;  %1128 = vperm.xlu0 %5389, %v1106_v55  }
 0x19d   :  { %v5546_v15 = vpop.eup %5545  ;;  %v1459_v8 = vsub.f32 %v7016_v57, %v6743_v40  ;;  %v1494_v32 = vmul.f32 %v1460_v2, %v1460_v2 }
 0x19e   :  { %5555 = vpow2.f32 %v1089_v60  ;;  %v1640_v10 = vmul.f32 -0.5, %v1624_v28  ;;  %v1639_v18 = vmul.f32 -0.5, %v1623_v59  ;;  %v1682_v25 = vpack.c.bf16 %v5544_v12, %v5546_v15 }
 0x19f   :  { %5557 = vpow2.f32 %v1087_v3  ;;  %v722_v26 = vpop.permute.xlu1 %721  ;;  %v720_v53 = vpop.permute.xlu0 %719  ;;  %v1493_v1 = vmul.f32 %v1459_v8, %v1459_v8  ;;  %v1512_v21 = vmul.f32 %v6795_v30, %v1494_v32  ;;  %v630_v15 = vmul.f32 %v596_v46, %v596_v46 }
 0x1a0   :  { %v5548_v9 = vpop.eup %5547  ;;  %v1665_v49 = vmul.f32 1.442695, %v1640_v10  ;;  %v1663_v17 = vmul.f32 1.442695, %v1639_v18  ;;  %v760_v14 = vadd.f32 %v722_v26, %v646_v56  ;;  %1704 = vperm.xlu1 %5390, %v1682_v25   ;;  %v759_v47 = vadd.f32 %v720_v53, %v645_v34  ;;  %v5779_v53 = vld [vmem:[%s8072_s5 + $0x68] sm:$0xff] }
 0x1a1   :  { %v5550_v36 = vpop.eup %5549  ;;  %v595_v56 = vsub.f32 %v7016_v57, %v6757_v13  ;;  %v1172_v34 = vsub.f32 %v7009_v4, %v6790_v31  ;;  %v1511_v59 = vmul.f32 %v6795_v30, %v1493_v1  ;;  %v1205_v57 = vmul.f32 %v1171_v37, %v1171_v37 }
 0x1a2   :  { %5559 = vpow2.f32 %v1665_v49  ;;  %v776_v41 = vmul.f32 -0.5, %v760_v14  ;;  %v775_v44 = vmul.f32 -0.5, %v759_v47  ;;  %v818_v24 = vpack.c.bf16 %v5548_v9, %v5550_v36  ;;  %v5780_v36 = vld [vmem:[%s8072_s5 + $0x60] sm:$0xff] }
 0x1a3   :  { %5561 = vpow2.f32 %v1663_v17  ;;  %v1298_v42 = vpop.permute.xlu1 %1297  ;;  %v1296_v61 = vpop.permute.xlu0 %1295  ;;  %v629_v58 = vmul.f32 %v595_v56, %v595_v56  ;;  %v1206_v26 = vmul.f32 %v1172_v34, %v1172_v34  ;;  %v648_v14 = vmul.f32 %v6802_v52, %v630_v15 }
 0x1a4   :  { %v5552_v51 = vpop.eup %5551  ;;  %v801_v16 = vmul.f32 1.442695, %v776_v41  ;;  %v799_v43 = vmul.f32 1.442695, %v775_v44  ;;  %v1336_v54 = vadd.f32 %v1298_v42, %v1222_v23  ;;  %v1335_v55 = vadd.f32 %v1296_v61, %v1221_v22  ;;  %840 = vperm.xlu0 %5389, %v818_v24  }
 0x1a5   :  { %v5554_v19 = vpop.eup %5553  ;;  %v886_v23 = vsub.f32 %v5779_v53, %v6717_v7  ;;  %v647_v47 = vmul.f32 %v6802_v52, %v629_v58  ;;  %v1224_v61 = vmul.f32 %v6816_v5, %v1206_v26  ;;  %v1223_v1 = vmul.f32 %v6816_v5, %v1205_v57 }
 0x1a6   :  { %5563 = vpow2.f32 %v801_v16  ;;  %v1352_v29 = vmul.f32 -0.5, %v1336_v54  ;;  %v1351_v12 = vmul.f32 -0.5, %v1335_v55  ;;  %v1394_v60 = vpack.c.bf16 %v5552_v51, %v5554_v19 }
 0x1a7   :  { %5565 = vpow2.f32 %v799_v43  ;;  %v1014_v3 = vpop.permute.xlu1 %1013  ;;  %v1012_v28 = vpop.permute.xlu0 %1011  ;;  %v920_v46 = vmul.f32 %v886_v23, %v886_v23  ;;  %v1462_v19 = vsub.f32 %v5779_v53, %v6743_v40  ;;  %v597_v15 = vsub.f32 %v5780_v36, %v6757_v13 }
 0x1a8   :  { %v5556_v0 = vpop.eup %5555  ;;  %v1377_v2 = vmul.f32 1.442695, %v1352_v29  ;;  %v1375_v10 = vmul.f32 1.442695, %v1351_v12  ;;  %v1050_v18 = vadd.f32 %v1014_v3, %v936_v39  ;;  %1416 = vperm.xlu1 %5390, %v1394_v60   ;;  %v1049_v4 = vadd.f32 %v1012_v28, %v935_v33 }
 0x1a9   :  { %v5558_v25 = vpop.eup %5557  ;;  %v885_v39 = vsub.f32 %v5780_v36, %v6717_v7  ;;  %v938_v28 = vmul.f32 %v6764_v38, %v920_v46 }
 0x1aa   :  { %5567 = vpow2.f32 %v1377_v2  ;;  %v1066_v22 = vmul.f32 -0.5, %v1050_v18  ;;  %v1065_v8 = vmul.f32 -0.5, %v1049_v4  ;;  %v1107_v9 = vpack.c.bf16 %v5556_v0, %v5558_v25 }
 0x1ab   :  { %5569 = vpow2.f32 %v1375_v10  ;;  %v1590_v49 = vpop.permute.xlu1 %1589  ;;  %v1588_v17 = vpop.permute.xlu0 %1587  ;;  %v919_v55 = vmul.f32 %v885_v39, %v885_v39  ;;  %v1496_v25 = vmul.f32 %v1462_v19, %v1462_v19 }
 0x1ac   :  { %v5560_v33 = vpop.eup %5559  ;;  %v1093_v32 = vmul.f32 1.442695, %v1066_v22  ;;  %v1091_v41 = vmul.f32 1.442695, %v1065_v8  ;;  %v1626_v44 = vadd.f32 %v1590_v49, %v1512_v21  ;;  %v1625_v24 = vadd.f32 %v1588_v17, %v1511_v59  ;;  %1133 = vperm.xlu0 %5389, %v1107_v9  }
 0x1ad   :  { %v5562_v42 = vpop.eup %5561  ;;  %v1461_v21 = vsub.f32 %v5780_v36, %v6743_v40  ;;  %v598_v59 = vsub.f32 %v5779_v53, %v6757_v13  ;;  %v937_v4 = vmul.f32 %v6764_v38, %v919_v55 }
 0x1ae   :  { %5571 = vpow2.f32 %v1093_v32  ;;  %v1642_v56 = vmul.f32 -0.5, %v1626_v44  ;;  %v1641_v51 = vmul.f32 -0.5, %v1625_v24  ;;  %v1683_v16 = vpack.c.bf16 %v5560_v33, %v5562_v42 }
 0x1af   :  { %5573 = vpow2.f32 %v1091_v41  ;;  %v726_v43 = vpop.permute.xlu1 %725  ;;  %v724_v54 = vpop.permute.xlu0 %723  ;;  %v1495_v26 = vmul.f32 %v1461_v21, %v1461_v21  ;;  %v632_v17 = vmul.f32 %v598_v59, %v598_v59  ;;  %v1514_v24 = vmul.f32 %v6795_v30, %v1496_v25 }
 0x1b0   :  { %v5564_v34 = vpop.eup %5563  ;;  %v1669_v37 = vmul.f32 1.442695, %v1642_v56  ;;  %v1667_v29 = vmul.f32 1.442695, %v1641_v51  ;;  %v762_v12 = vadd.f32 %v726_v43, %v648_v14  ;;  %1709 = vperm.xlu1 %5390, %v1683_v16   ;;  %v761_v60 = vadd.f32 %v724_v54, %v647_v47 }
 0x1b1   :  { %v5566_v3 = vpop.eup %5565  ;;  %v631_v14 = vmul.f32 %v597_v15, %v597_v15  ;;  %v1174_v47 = vsub.f32 %v5779_v53, %v6790_v31  ;;  %v1513_v42 = vmul.f32 %v6795_v30, %v1495_v26  ;;  %v650_v43 = vmul.f32 %v6802_v52, %v632_v17 }
 0x1b2   :  { %5575 = vpow2.f32 %v1669_v37  ;;  %v778_v58 = vmul.f32 -0.5, %v762_v12  ;;  %v777_v0 = vmul.f32 -0.5, %v761_v60  ;;  %v819_v2 = vpack.c.bf16 %v5564_v34, %v5566_v3  ;;  %v5781_v12 = vld [vmem:[%s8072_s5 + $0x78] sm:$0xff]  ;;  %v5782_v3 = vld [vmem:[%s8072_s5 + $0x70] sm:$0xff] }
 0x1b3   :  { %5577 = vpow2.f32 %v1667_v29  ;;  %v1302_v10 = vpop.permute.xlu1 %1301  ;;  %v1300_v18 = vpop.permute.xlu0 %1299  ;;  %v649_v54 = vmul.f32 %v6802_v52, %v631_v14  ;;  %v1208_v55 = vmul.f32 %v1174_v47, %v1174_v47  ;;  %v888_v60 = vsub.f32 %v5781_v12, %v6717_v7 }
 0x1b4   :  { %v5568_v57 = vpop.eup %5567  ;;  %v805_v23 = vmul.f32 1.442695, %v778_v58  ;;  %v803_v22 = vmul.f32 1.442695, %v777_v0  ;;  %v1338_v8 = vadd.f32 %v1302_v10, %v1224_v61  ;;  %v1337_v9 = vadd.f32 %v1300_v18, %v1223_v1  ;;  %845 = vperm.xlu0 %5389, %v819_v2  }
 0x1b5   :  { %v5570_v49 = vpop.eup %5569  ;;  %v1173_v61 = vsub.f32 %v5780_v36, %v6790_v31  ;;  %v1226_v18 = vmul.f32 %v6816_v5, %v1208_v55  ;;  %v1463_v25 = vsub.f32 %v5782_v3, %v6743_v40 }
 0x1b6   :  { %5579 = vpow2.f32 %v805_v23  ;;  %v1354_v39 = vmul.f32 -0.5, %v1338_v8  ;;  %v1353_v33 = vmul.f32 -0.5, %v1337_v9  ;;  %v1395_v32 = vpack.c.bf16 %v5568_v57, %v5570_v49 }
 0x1b7   :  { %5581 = vpow2.f32 %v803_v22  ;;  %v1018_v41 = vpop.permute.xlu1 %1017  ;;  %v1016_v44 = vpop.permute.xlu0 %1015  ;;  %v1207_v36 = vmul.f32 %v1173_v61, %v1173_v61  ;;  %v922_v9 = vmul.f32 %v888_v60, %v888_v60 }
 0x1b8   :  { %v5572_v1 = vpop.eup %5571  ;;  %v1381_v46 = vmul.f32 1.442695, %v1354_v39  ;;  %v1379_v56 = vmul.f32 1.442695, %v1353_v33  ;;  %v1052_v51 = vadd.f32 %v1018_v41, %v938_v28  ;;  %1421 = vperm.xlu1 %5390, %v1395_v32   ;;  %v1051_v16 = vadd.f32 %v1016_v44, %v937_v4 }
 0x1b9   :  { %v5574_v53 = vpop.eup %5573  ;;  %v887_v28 = vsub.f32 %v5782_v3, %v6717_v7  ;;  %v1464_v4 = vsub.f32 %v5781_v12, %v6743_v40  ;;  %v1225_v8 = vmul.f32 %v6816_v5, %v1207_v36  ;;  %v1497_v40 = vmul.f32 %v1463_v25, %v1463_v25 }
 0x1ba   :  { %5583 = vpow2.f32 %v1381_v46  ;;  %v1068_v19 = vmul.f32 -0.5, %v1052_v51  ;;  %v1067_v21 = vmul.f32 -0.5, %v1051_v16  ;;  %v1108_v34 = vpack.c.bf16 %v5572_v1, %v5574_v53 }
 0x1bb   :  { %5585 = vpow2.f32 %v1379_v56  ;;  %v1594_v37 = vpop.permute.xlu1 %1593  ;;  %v1592_v29 = vpop.permute.xlu0 %1591  ;;  %v921_v49 = vmul.f32 %v887_v28, %v887_v28  ;;  %v1498_v41 = vmul.f32 %v1464_v4, %v1464_v4  ;;  %v600_v44 = vsub.f32 %v5781_v12, %v6757_v13 }
 0x1bc   :  { %v5576_v59 = vpop.eup %5575  ;;  %v1097_v15 = vmul.f32 1.442695, %v1068_v19  ;;  %v1095_v58 = vmul.f32 1.442695, %v1067_v21  ;;  %v1628_v0 = vadd.f32 %v1594_v37, %v1514_v24  ;;  %v1627_v2 = vadd.f32 %v1592_v29, %v1513_v42  ;;  %1138 = vperm.xlu0 %5389, %v1108_v34  }
 0x1bd   :  { %v5578_v10 = vpop.eup %5577  ;;  %v940_v56 = vmul.f32 %v6764_v38, %v922_v9  ;;  %v939_v51 = vmul.f32 %v6764_v38, %v921_v49  ;;  %v599_v16 = vsub.f32 %v5782_v3, %v6757_v13  ;;  %v1516_v34 = vmul.f32 %v6795_v30, %v1498_v41 }
 0x1be   :  { %5587 = vpow2.f32 %v1097_v15  ;;  %v1644_v26 = vmul.f32 -0.5, %v1628_v0  ;;  %v1643_v57 = vmul.f32 -0.5, %v1627_v2  ;;  %v1684_v23 = vpack.c.bf16 %v5576_v59, %v5578_v10 }
 0x1bf   :  { %5589 = vpow2.f32 %v1095_v58  ;;  %v730_v22 = vpop.permute.xlu1 %729  ;;  %v728_v7 = vpop.permute.xlu0 %727  ;;  %v1515_v37 = vmul.f32 %v6795_v30, %v1497_v40  ;;  %v634_v29 = vmul.f32 %v600_v44, %v600_v44  ;;  %v633_v13 = vmul.f32 %v599_v16, %v599_v16 }
 0x1c0   :  { %v5580_v17 = vpop.eup %5579  ;;  %v1673_v14 = vmul.f32 1.442695, %v1644_v26  ;;  %v1671_v47 = vmul.f32 1.442695, %v1643_v57  ;;  %v764_v39 = vadd.f32 %v730_v22, %v650_v43  ;;  %1714 = vperm.xlu1 %5390, %v1684_v23   ;;  %v763_v33 = vadd.f32 %v728_v7, %v649_v54 }
 0x1c1   :  { %v5582_v32 = vpop.eup %5581  ;;  %v1176_v15 = vsub.f32 %v5781_v12, %v6790_v31  ;;  %v1175_v58 = vsub.f32 %v5782_v3, %v6790_v31  ;;  %v652_v25 = vmul.f32 %v6802_v52, %v634_v29  ;;  %v651_v12 = vmul.f32 %v6802_v52, %v633_v13 }
 0x1c2   :  { %5591 = vpow2.f32 %v1673_v14  ;;  %v780_v24 = vmul.f32 -0.5, %v764_v39  ;;  %v779_v42 = vmul.f32 -0.5, %v763_v33  ;;  %v820_v61 = vpack.c.bf16 %v5580_v17, %v5582_v32 }
 0x1c3   :  { %5593 = vpow2.f32 %v1671_v47  ;;  %v1306_v1 = vpop.permute.xlu1 %1305  ;;  %v1304_v46 = vpop.permute.xlu0 %1303  ;;  %v1209_v31 = vmul.f32 %v1175_v58, %v1175_v58 }
 0x1c4   :  { %v5584_v53 = vpop.eup %5583  ;;  %v809_v43 = vmul.f32 1.442695, %v780_v24  ;;  %v807_v54 = vmul.f32 1.442695, %v779_v42  ;;  %v1340_v55 = vadd.f32 %v1306_v1, %v1226_v18  ;;  %v1339_v19 = vadd.f32 %v1304_v46, %v1225_v8  ;;  %850 = vperm.xlu0 %5389, %v820_v61  }
 0x1c5   :  { %v5586_v21 = vpop.eup %5585  ;;  %v1210_v8 = vmul.f32 %v1176_v15, %v1176_v15  ;;  %v1227_v52 = vmul.f32 %v6816_v5, %v1209_v31 }
 0x1c6   :  { %5595 = vpow2.f32 %v809_v43  ;;  %v1356_v36 = vmul.f32 -0.5, %v1340_v55  ;;  %v1355_v60 = vmul.f32 -0.5, %v1339_v19  ;;  %v1396_v28 = vpack.c.bf16 %v5584_v53, %v5586_v21 }
 0x1c7   :  { %5597 = vpow2.f32 %v807_v54  ;;  %v1022_v38 = vpop.permute.xlu1 %1021  ;;  %v1020_v59 = vpop.permute.xlu0 %1019  ;;  %v1228_v44 = vmul.f32 %v6816_v5, %v1210_v8 }
 0x1c8   :  { %v5588_v0 = vpop.eup %5587  ;;  %v1385_v2 = vmul.f32 1.442695, %v1356_v36  ;;  %v1383_v10 = vmul.f32 1.442695, %v1355_v60  ;;  %v1054_v18 = vadd.f32 %v1022_v38, %v940_v56  ;;  %1426 = vperm.xlu1 %5390, %v1396_v28   ;;  %v1053_v4 = vadd.f32 %v1020_v59, %v939_v51 }
 0x1c9   :  { %v5590_v30 = vpop.eup %5589 }
 0x1ca   :  { %5599 = vpow2.f32 %v1385_v2  ;;  %v1070_v26 = vmul.f32 -0.5, %v1054_v18  ;;  %v1069_v57 = vmul.f32 -0.5, %v1053_v4  ;;  %v1109_v23 = vpack.c.bf16 %v5588_v0, %v5590_v30 }
 0x1cb   :  { %5601 = vpow2.f32 %v1383_v10  ;;  %v1598_v22 = vpop.permute.xlu1 %1597  ;;  %v1596_v7 = vpop.permute.xlu0 %1595 }
 0x1cc   :  { %v5592_v3 = vpop.eup %5591  ;;  %v1101_v9 = vmul.f32 1.442695, %v1070_v26  ;;  %v1099_v49 = vmul.f32 1.442695, %v1069_v57  ;;  %v1630_v17 = vadd.f32 %v1598_v22, %v1516_v34  ;;  %v1629_v14 = vadd.f32 %v1596_v7, %v1515_v37  ;;  %1143 = vperm.xlu0 %5389, %v1109_v23   ;;  %v4650_v23 = vld [vmem:[%s8074_s7] ss:$0 sm:$0xff] }
 0x1cd   :  { %v5594_v47 = vpop.eup %5593  ;;  %v7094_v57 = vshrl.u32 %v210_v48, 7  ;;  %s4739_s7 = sld [smem:[#allocation7 + $0x81]] }
 0x1ce   :  { %5603 = vpow2.f32 %v1101_v9  ;;  %v1646_v39 = vmul.f32 -0.5, %v1630_v17  ;;  %v1645_v33 = vmul.f32 -0.5, %v1629_v14  ;;  %v1685_v32 = vpack.c.bf16 %v5592_v3, %v5594_v47 }
 0x1cf   :  { %5605 = vpow2.f32 %v1099_v49  ;;  %v734_v41 = vpop.permute.xlu1 %733  ;;  %v732_v40 = vpop.permute.xlu0 %731  ;;  %8119 = vst [vmem:[#allocation32_spill] sm:$0xff] %v7094_v57  ;;  %vm346_vm1 = vcmp.eq.s32.totalorder %v7094_v57, %v4650_v23  ;;  %v335_v22 = vadd.s32 16, %v7094_v57  ;;  %v334_v8 = vadd.s32 8, %v7094_v57 }
 0x1d0   :  { %v5596_v24 = vpop.eup %5595  ;;  %v1677_v42 = vmul.f32 1.442695, %v1646_v39  ;;  %v1675_v61 = vmul.f32 1.442695, %v1645_v33  ;;  %v766_v1 = vadd.f32 %v734_v41, %v652_v25  ;;  %1719 = vperm.xlu1 %5390, %v1685_v32   ;;  %v765_v46 = vadd.f32 %v732_v40, %v651_v12 }
 0x1d1   :  { %v5598_v56 = vpop.eup %5597  ;;  %v7102_v7 = vsel %vm346_vm1, 1.0, %v8091_v50  ;;  %vm348_vm2 = vcmp.eq.s32.totalorder %v335_v22, %v4650_v23  ;;  %v336_v12 = vadd.s32 24, %v7094_v57  ;;  %v338_v31 = vadd.s32 40, %v7094_v57 }
 0x1d2   :  { %5607 = vpow2.f32 %v1677_v42  ;;  %v782_v51 = vmul.f32 -0.5, %v766_v1  ;;  %v781_v16 = vmul.f32 -0.5, %v765_v46  ;;  %v821_v53 = vpack.c.bf16 %v5596_v24, %v5598_v56 }
 0x1d3   :  { %5609 = vpow2.f32 %v1675_v61  ;;  %v1310_v43 = vpop.permute.xlu1 %1309  ;;  %v1308_v54 = vpop.permute.xlu0 %1307  ;;  %v7108_v48 = vsel %vm348_vm2, 1.0, %v8091_v50  ;;  %vm349_vm3 = vcmp.eq.s32.totalorder %v336_v12, %v4650_v23  ;;  %vm347_vm5 = vcmp.eq.s32.totalorder %v334_v8, %v4650_v23 }
 0x1d4   :  { %v5600_v55 = vpop.eup %5599  ;;  %v813_v19 = vmul.f32 1.442695, %v782_v51  ;;  %v811_v21 = vmul.f32 1.442695, %v781_v16  ;;  %v1342_v34 = vadd.f32 %v1310_v43, %v1228_v44  ;;  %v1341_v37 = vadd.f32 %v1308_v54, %v1227_v52  ;;  %855 = vperm.xlu0 %5389, %v821_v53   ;;  %v7148_v43 = vld [vmem:[%s8072_s5] sm:$0xff] }
 0x1d5   :  { %v5602_v5 = vpop.eup %5601  ;;  %v337_v3 = vadd.s32 32, %v7094_v57  ;;  %v7114_v9 = vsel %vm349_vm3, 1.0, %v8091_v50  ;;  %v7117_v49 = vsel %vm347_vm5, 1.0, %v8091_v50  ;;  %vm351_vm6 = vcmp.eq.s32.totalorder %v338_v31, %v4650_v23 }
 0x1d6   :  { %5611 = vpow2.f32 %v813_v19  ;;  %v1358_v29 = vmul.f32 -0.5, %v1342_v34  ;;  %v1357_v36 = vmul.f32 -0.5, %v1341_v37  ;;  %v1397_v60 = vpack.c.bf16 %v5600_v55, %v5602_v5 }
 0x1d7   :  { %5613 = vpow2.f32 %v811_v21  ;;  %v340_v17 = vadd.s32 56, %v7094_v57  ;;  %vm350_vm7 = vcmp.eq.s32.totalorder %v337_v3, %v4650_v23  ;;  %v339_v14 = vadd.s32 48, %v7094_v57 }
 0x1d8   :  { %v5604_v28 = vpop.eup %5603  ;;  %v1389_v38 = vmul.f32 1.442695, %v1358_v29  ;;  %v1387_v59 = vmul.f32 1.442695, %v1357_v36  ;;  %1431 = vperm.xlu1 %5390, %v1397_v60   ;;  %v7124_v47 = vsel %vm351_vm6, 1.0, %v8091_v50  ;;  %v7127_v39 = vsel %vm350_vm7, 1.0, %v8091_v50 }
 0x1d9   :  { %v5606_v13 = vpop.eup %5605  ;;  %vm353_vm8 = vcmp.eq.s32.totalorder %v340_v17, %v4650_v23  ;;  %vm352_vm9 = vcmp.eq.s32.totalorder %v339_v14, %v4650_v23  ;;  %v7139_v1 = vstv %s4739_s7  ;;  %v7152_v60 = vstv %s4747_s19 }
 0x1da   :  { %5615 = vpow2.f32 %v1389_v38  ;;  %v1110_v15 = vpack.c.bf16 %v5604_v28, %v5606_v13  ;;  %v7132_v32 = vsel %vm353_vm8, 1.0, %v8091_v50  ;;  %v7135_v40 = vsel %vm352_vm9, 1.0, %v8091_v50 }
 0x1db   :  { %5617 = vpow2.f32 %v1387_v59  ;;  %v2827_v54 = vsub.f32 %v7148_v43, %v7139_v1  ;;  %v7161_v59 = vld [vmem:[%s8072_s5 + $0x8] sm:$0xff]  ;;  %v7624_v57 = vstv %s4744_s23  ;;  %s8128_s23 = sld [smem:[#allocation38_spill]] }
 0x1dc   :  { %v5608_v58 = vpop.eup %5607  ;;  %1148 = vperm.xlu0 %5389, %v1110_v15   ;;  %v2828_v13 = vsub.f32 %v7161_v59, %v7139_v1  ;;  %v3404_v12 = vsub.f32 %v7161_v59, %v7152_v60 }
 0x1dd   :  { %v5610_v0 = vpop.eup %5609 }
 0x1de   :  { %v1686_v2 = vpack.c.bf16 %v5608_v58, %v5610_v0  ;;  %v2877_v58 = vmul.f32 %v2827_v54, %v2827_v54  ;;  %v2878_v23 = vmul.f32 %v2828_v13, %v2828_v13  ;;  %v7211_v13 = vld [vmem:[%s8072_s5 + $0x10] sm:$0xff] }
 0x1e0   :  { %v5612_v10 = vpop.eup %5611  ;;  %1724 = vperm.xlu1 %5390, %v1686_v2  }
 0x1e1   :  { %v5614_v18 = vpop.eup %5613 }
 0x1e2   :  { %v822_v4 = vpack.c.bf16 %v5612_v10, %v5614_v18  ;;  %v7168_v10 = vstv %s7141_s24  ;;  %v3403_v18 = vsub.f32 %v7148_v43, %v7152_v60 }
 0x1e3   :  { %v2895_v22 = vmul.f32 %v7168_v10, %v2877_v58 }
 0x1e4   :  { %v5616_v30 = vpop.eup %5615  ;;  %860 = vperm.xlu0 %5389, %v822_v4   ;;  %v3453_v3 = vmul.f32 %v3403_v18, %v3403_v18 }
 0x1e5   :  { %v5618_v25 = vpop.eup %5617 }
 0x1e6   :  { %v1398_v26 = vpack.c.bf16 %v5616_v30, %v5618_v25  ;;  %v7173_v25 = vstv %s7143_s25 }
 0x1e7   :  { %v2539_v17 = vsub.f32 %v7148_v43, %v7173_v25 }
 0x1e8   :  { %1436 = vperm.xlu1 %5390, %v1398_v26  }
 0x1eb   :  { %v1114_v33 = vpop.permute.xlu0 %1113 }
 0x1ef   :  { %v1690_v41 = vpop.permute.xlu1 %1689 }
 0x1f3   :  { %v826_v44 = vpop.permute.xlu0 %825 }
 0x1f7   :  { %v1402_v24 = vpop.permute.xlu1 %1401 }
 0x1fb   :  { %v1119_v51 = vpop.permute.xlu0 %1118 }
 0x1ff   :  { %v1695_v53 = vpop.permute.xlu1 %1694 }
 0x203   :  { %370 = vadd.xlane.f32.xlu0 %v7102_v7  ;;  %v831_v37 = vpop.permute.xlu0 %830 }
 0x207   :  { %374 = vadd.xlane.f32.xlu0 %v7108_v48  ;;  %v1407_v28 = vpop.permute.xlu1 %1406 }
 0x20b   :  { %376 = vadd.xlane.f32.xlu0 %v7114_v9  ;;  %v1124_v4 = vpop.permute.xlu0 %1123 }
 0x20c   :  { %372 = vadd.xlane.f32.xlu1 %v7117_v49 }
 0x20f   :  { %380 = vadd.xlane.f32.xlu0 %v7124_v47  ;;  %v1700_v26 = vpop.permute.xlu1 %1699 }
 0x210   :  { %378 = vadd.xlane.f32.xlu1 %v7127_v39 }
 0x213   :  { %384 = vadd.xlane.f32.xlu0 %v7132_v32  ;;  %v836_v14 = vpop.permute.xlu0 %835 }
 0x214   :  { %382 = vadd.xlane.f32.xlu1 %v7135_v40  ;;  %v5171_v52 = vpop.f32.mrb[0].mxu0 }
 0x215   :  { %v512_v42 = vpop.f32.mrb[1].mxu0 }
 0x216   :  { %v5172_v61 = vpop.f32.mrb[2].mxu0 }
 0x217   :  { %v576_v46 = vpack.c.bf16 %v5172_v61, %v5171_v52  ;;  %v515_v56 = vpop.f32.mrb[3].mxu0  ;;  %v7183_v52 = vstv %s7154_s16 }
 0x218   :  { %v575_v16 = vpack.c.bf16 %v515_v56, %v512_v42  ;;  %v1412_v42 = vpop.permute.xlu1 %1411  ;;  %v2540_v56 = vsub.f32 %v7161_v59, %v7173_v25 }
 0x219   :  { %v1152_v29 = vmul.bf16 %v1119_v51, %v576_v46  ;;  %v1728_v36 = vmul.bf16 %v1695_v53, %v576_v46  ;;  %v864_v8 = vmul.bf16 %v831_v37, %v576_v46  ;;  %v1440_v31 = vmul.bf16 %v1407_v28, %v576_v46 }
 0x21a   :  { %v1439_v55 = vmul.bf16 %v1402_v24, %v575_v16  ;;  %v1151_v19 = vmul.bf16 %v1114_v33, %v575_v16  ;;  %v1727_v21 = vmul.bf16 %v1690_v41, %v575_v16  ;;  %v863_v34 = vmul.bf16 %v826_v44, %v575_v16 }
 0x21b   :  { %v7186_v24 = vstv %s7156_s4  ;;  %v2896_v46 = vmul.f32 %v7168_v10, %v2878_v23  ;;  %v3454_v16 = vmul.f32 %v3404_v12, %v3404_v12 }
 0x21c   :  { %v5175_v5 = vpop.f32.mrb[4].mxu0  ;;  %2023 = vmatprep.mubr.bf16.mxu1 %v1151_v19  ;;  %2120 = vmatprep.mubr.bf16.mxu0 %v1727_v21  ;;  %v2589_v19 = vmul.f32 %v2539_v17, %v2539_v17  ;;  %v3115_v21 = vsub.f32 %v7148_v43, %v7186_v24 }
 0x21d   :  { %v528_v38 = vpop.f32.mrb[5].mxu0  ;;  %2024 = vmatmul.mubr.bf16.vlgmr.msra.gmra.mrb[0].mxu1 %v863_v34  ;;  %2121 = vmatmul.mubr.bf16.vlgmr.msra.gmra.mrb[16].mxu0 %v1439_v55  ;;  %v3471_v55 = vmul.f32 %v7183_v52, %v3453_v3  ;;  %v1129_v34 = vpop.permute.xlu0 %1128  ;;  %v3472_v28 = vmul.f32 %v7183_v52, %v3454_v16 }
 0x21e   :  { %v5176_v15 = vpop.f32.mrb[6].mxu0  ;;  %2031 = vmatprep.mubr.bf16.mxu1 %v1152_v29  ;;  %2128 = vmatprep.mubr.bf16.mxu0 %v1728_v36  ;;  %v2590_v36 = vmul.f32 %v2540_v56, %v2540_v56  ;;  %v3405_v56 = vsub.f32 %v7211_v13, %v7152_v60 }
 0x21f   :  { %v7165_v0 = vpack.c.bf16 %v5176_v15, %v5175_v5  ;;  %v531_v2 = vpop.f32.mrb[7].mxu0  ;;  %v7202_v5 = vstv %s7175_s29  ;;  %v1705_v29 = vpop.permute.xlu1 %1704  ;;  %v2829_v15 = vsub.f32 %v7211_v13, %v7139_v1  ;;  %s4738_s29 = sld [smem:[#allocation7 + $0x80]] }
 0x220   :  { %v577_v30 = vpack.c.bf16 %v531_v2, %v528_v38  ;;  %v3116_v38 = vsub.f32 %v7161_v59, %v7186_v24  ;;  %v2607_v18 = vmul.f32 %v7202_v5, %v2589_v19  ;;  %v2608_v17 = vmul.f32 %v7202_v5, %v2590_v36 }
 0x221   :  { %v1730_v12 = vmul.bf16 %v1705_v29, %v7165_v0  ;;  %v2541_v29 = vsub.f32 %v7211_v13, %v7173_v25 }
 0x222   :  { %v1153_v41 = vmul.bf16 %v1124_v4, %v577_v30  ;;  %v1729_v44 = vmul.bf16 %v1700_v26, %v577_v30  ;;  %v865_v58 = vmul.bf16 %v836_v14, %v577_v30  ;;  %v1441_v2 = vmul.bf16 %v1412_v42, %v577_v30 }
 0x223   :  { %v3165_v4 = vmul.f32 %v3115_v21, %v3115_v21  ;;  %v841_v26 = vpop.permute.xlu0 %840  ;;  %v3166_v14 = vmul.f32 %v3116_v38, %v3116_v38  ;;  %v3455_v38 = vmul.f32 %v3405_v56, %v3405_v56 }
 0x224   :  { %v5179_v33 = vpop.f32.mrb[8].mxu0  ;;  %v866_v36 = vmul.bf16 %v841_v26, %v7165_v0 }
 0x225   :  { %v544_v61 = vpop.f32.mrb[9].mxu0  ;;  %2032 = vmatmul.mubr.bf16.gmra.mrb[4].mxu1 %v864_v8  ;;  %2129 = vmatmul.mubr.bf16.gmra.mrb[20].mxu0 %v1440_v31  ;;  %v7220_v8 = vstv %s7188_s21 }
 0x226   :  { %v5180_v51 = vpop.f32.mrb[10].mxu0  ;;  %2039 = vmatprep.mubr.bf16.mxu1 %v1153_v41  ;;  %2136 = vmatprep.mubr.bf16.mxu0 %v1729_v44  ;;  %v2879_v44 = vmul.f32 %v2829_v15, %v2829_v15  ;;  %v3184_v19 = vmul.f32 %v7220_v8, %v3166_v14 }
 0x227   :  { %v7193_v53 = vpack.c.bf16 %v5180_v51, %v5179_v33  ;;  %v547_v54 = vpop.f32.mrb[11].mxu0  ;;  %2927 = vrot.lane.b32.xlu1 %v2895_v22, %s6015_s30  ;;  %v1154_v22 = vmul.bf16 %v1129_v34, %v7165_v0  ;;  %v1417_v31 = vpop.permute.xlu1 %1416  ;;  %v7226_v33 = vld [vmem:[%s8072_s5 + $0x18] sm:$0xff] }
 0x228   :  { %v7199_v37 = vpack.c.bf16 %v547_v54, %v544_v61  ;;  %v2830_v41 = vsub.f32 %v7226_v33, %v7139_v1  ;;  %v2897_v34 = vmul.f32 %v7168_v10, %v2879_v44 }
 0x229   :  { %2929 = vrot.lane.b32.xlu0 %v2896_v46, %s6015_s30  ;;  %v3183_v46 = vmul.f32 %v7220_v8, %v3165_v4  ;;  %v2591_v4 = vmul.f32 %v2541_v29, %v2541_v29 }
 0x22a   :  { %v2880_v21 = vmul.f32 %v2830_v41, %v2830_v41 }
 0x22b   :  { %3503 = vrot.lane.b32.xlu1 %v3471_v55, %s6015_s30  ;;  %v1134_v16 = vpop.permute.xlu0 %1133  ;;  %v3406_v55 = vsub.f32 %v7226_v33, %v7152_v60 }
 0x22c   :  { %v5183_v23 = vpop.f32.mrb[12].mxu0  ;;  %v1155_v15 = vmul.bf16 %v1134_v16, %v7199_v37 }
 0x22d   :  { %v560_v3 = vpop.f32.mrb[13].mxu0  ;;  %2040 = vmatmul.mubr.bf16.gmra.mrb[8].mxu1 %v865_v58  ;;  %2137 = vmatmul.mubr.bf16.gmra.mrb[24].mxu0 %v1441_v2  ;;  %v3456_v2 = vmul.f32 %v3406_v55, %v3406_v55  ;;  %v7279_v55 = vld [vmem:[%s8072_s5 + $0x28] sm:$0xff] }
 0x22e   :  { %v5184_v30 = vpop.f32.mrb[14].mxu0  ;;  %2047 = vmatprep.mubr.bf16.mxu1 %v1154_v22  ;;  %2144 = vmatprep.mubr.bf16.mxu0 %v1730_v12  ;;  %v3473_v22 = vmul.f32 %v7183_v52, %v3455_v38 }
 0x22f   :  { %v7230_v42 = vpack.c.bf16 %v5184_v30, %v5183_v23  ;;  %v563_v61 = vpop.f32.mrb[15].mxu0  ;;  %3505 = vrot.lane.b32.xlu1 %v3472_v28, %s6015_s30  ;;  %2639 = vrot.lane.b32.xlu0 %v2607_v18, %s6015_s30  ;;  %v1710_v54 = vpop.permute.xlu1 %1709  ;;  %v1442_v28 = vmul.bf16 %v1417_v31, %v7165_v0  ;;  %v2542_v18 = vsub.f32 %v7226_v33, %v7173_v25 }
 0x230   :  { %v7237_v51 = vpack.c.bf16 %v563_v61, %v560_v3  ;;  %v1731_v58 = vmul.bf16 %v1710_v54, %v7199_v37  ;;  %v3117_v0 = vsub.f32 %v7211_v13, %v7186_v24  ;;  %v2898_v23 = vmul.f32 %v7168_v10, %v2880_v21 }
 0x231   :  { %v3474_v31 = vmul.f32 %v7183_v52, %v3456_v2  ;;  %v2592_v3 = vmul.f32 %v2542_v18, %v2542_v18  ;;  %v3118_v30 = vsub.f32 %v7226_v33, %v7186_v24 }
 0x232   :  { %v3167_v14 = vmul.f32 %v3117_v0, %v3117_v0 }
 0x233   :  { %2641 = vrot.lane.b32.xlu1 %v2608_v17, %s6015_s30  ;;  %3215 = vrot.lane.b32.xlu0 %v3183_v46, %s6015_s30  ;;  %v846_v26 = vpop.permute.xlu0 %845  ;;  %v2609_v17 = vmul.f32 %v7202_v5, %v2591_v4  ;;  %v7270_v46 = vld [vmem:[%s8072_s5 + $0x20] sm:$0xff]  ;;  %v3168_v54 = vmul.f32 %v3118_v30, %v3118_v30 }
 0x234   :  { %v867_v41 = vmul.bf16 %v846_v26, %v7199_v37  ;;  %v2831_v56 = vsub.f32 %v7270_v46, %v7139_v1  ;;  %v2543_v0 = vsub.f32 %v7270_v46, %v7173_v25  ;;  %v3119_v30 = vsub.f32 %v7270_v46, %v7186_v24 }
 0x235   :  { %2048 = vmatmul.mubr.bf16.gmra.mrb[12].mxu1 %v866_v36  ;;  %2145 = vmatmul.mubr.bf16.gmra.mrb[28].mxu0 %v1442_v28  ;;  %v3407_v36 = vsub.f32 %v7270_v46, %v7152_v60  ;;  %v3186_v38 = vmul.f32 %v7220_v8, %v3168_v54  ;;  %v7316_v54 = vld [vmem:[%s8072_s5 + $0x30] sm:$0xff] }
 0x236   :  { %2055 = vmatprep.mubr.bf16.mxu1 %v1155_v15  ;;  %2152 = vmatprep.mubr.bf16.mxu0 %v1731_v58  ;;  %v2881_v29 = vmul.f32 %v2831_v56, %v2831_v56  ;;  %v3408_v58 = vsub.f32 %v7279_v55, %v7152_v60 }
 0x237   :  { %3217 = vrot.lane.b32.xlu1 %v3184_v19, %s6015_s30  ;;  %2931 = vrot.lane.b32.xlu0 %v2897_v34, %s6015_s30  ;;  %v1422_v12 = vpop.permute.xlu1 %1421  ;;  %v2832_v19 = vsub.f32 %v7279_v55, %v7139_v1  ;;  %v3185_v34 = vmul.f32 %v7220_v8, %v3167_v14  ;;  %v3457_v4 = vmul.f32 %v3407_v36, %v3407_v36 }
 0x238   :  { %v1443_v44 = vmul.bf16 %v1422_v12, %v7199_v37  ;;  %v2610_v37 = vmul.f32 %v7202_v5, %v2592_v3  ;;  %v2899_v18 = vmul.f32 %v7168_v10, %v2881_v29  ;;  %v2544_v12 = vsub.f32 %v7279_v55, %v7173_v25  ;;  %v7325_v29 = vld [vmem:[%s8072_s5 + $0x38] sm:$0xff] }
 0x239   :  { %v2882_v15 = vmul.f32 %v2832_v19, %v2832_v19  ;;  %v3475_v3 = vmul.f32 %v7183_v52, %v3457_v4  ;;  %v2834_v36 = vsub.f32 %v7325_v29, %v7139_v1 }
 0x23b   :  { %v1139_v61 = vpop.permute.xlu0 %1138  ;;  %2933 = vrot.lane.b32.xlu1 %v2898_v23, %s6015_s30  ;;  %3507 = vrot.lane.b32.xlu0 %v3473_v22, %s6015_s30  ;;  %v2900_v23 = vmul.f32 %v7168_v10, %v2882_v15  ;;  %v3458_v22 = vmul.f32 %v3408_v58, %v3408_v58  ;;  %v3409_v58 = vsub.f32 %v7316_v54, %v7152_v60 }
 0x23c   :  { %v1156_v16 = vmul.bf16 %v1139_v61, %v7193_v53  ;;  %v3120_v61 = vsub.f32 %v7279_v55, %v7186_v24  ;;  %v2884_v4 = vmul.f32 %v2834_v36, %v2834_v36 }
 0x23d   :  { %2056 = vmatmul.mubr.bf16.gmra.mrb[16].mxu1 %v867_v41  ;;  %2153 = vmatmul.mubr.bf16.gmra.mrb[32].mxu0 %v1443_v44  ;;  %v3476_v41 = vmul.f32 %v7183_v52, %v3458_v22  ;;  %v2594_v44 = vmul.f32 %v2544_v12, %v2544_v12  ;;  %v3459_v22 = vmul.f32 %v3409_v58, %v3409_v58 }
 0x23e   :  { %2063 = vmatprep.mubr.bf16.mxu1 %v1156_v16  ;;  %v2545_v12 = vsub.f32 %v7316_v54, %v7173_v25 }
 0x23f   :  { %v1715_v21 = vpop.permute.xlu1 %1714  ;;  %3509 = vrot.lane.b32.xlu1 %v3474_v31, %s6015_s30  ;;  %2643 = vrot.lane.b32.xlu0 %v2609_v17, %s6015_s30  ;;  %v2593_v17 = vmul.f32 %v2543_v0, %v2543_v0  ;;  %v3410_v0 = vsub.f32 %v7325_v29, %v7152_v60 }
 0x240   :  { %v1732_v28 = vmul.bf16 %v1715_v21, %v7193_v53  ;;  %v2612_v21 = vmul.f32 %v7202_v5, %v2594_v44  ;;  %v2595_v44 = vmul.f32 %v2545_v12, %v2545_v12 }
 0x241   :  { %v2611_v16 = vmul.f32 %v7202_v5, %v2593_v17  ;;  %v3460_v17 = vmul.f32 %v3410_v0, %v3410_v0 }
 0x242   :  { %2160 = vmatprep.mubr.bf16.mxu0 %v1732_v28 }
 0x243   :  { %v851_v2 = vpop.permute.xlu0 %850  ;;  %2645 = vrot.lane.b32.xlu1 %v2610_v37, %s6015_s30  ;;  %3219 = vrot.lane.b32.xlu0 %v3185_v34, %s6015_s30  ;;  %v3169_v37 = vmul.f32 %v3119_v30, %v3119_v30  ;;  %v3170_v34 = vmul.f32 %v3120_v61, %v3120_v61  ;;  %v2546_v30 = vsub.f32 %v7325_v29, %v7173_v25 }
 0x244   :  { %v868_v26 = vmul.bf16 %v851_v2, %v7193_v53  ;;  %v3121_v61 = vsub.f32 %v7316_v54, %v7186_v24 }
 0x246   :  { %2064 = vmatmul.mubr.bf16.gmra.mrb[20].mxu1 %v868_v26  ;;  %v3171_v36 = vmul.f32 %v3121_v61, %v3121_v61 }
 0x247   :  { %v1427_v31 = vpop.permute.xlu1 %1426  ;;  %3221 = vrot.lane.b32.xlu1 %v3186_v38, %s6015_s30  ;;  %2935 = vrot.lane.b32.xlu0 %v2899_v18, %s6015_s30  ;;  %v3187_v38 = vmul.f32 %v7220_v8, %v3169_v37  ;;  %v3188_v18 = vmul.f32 %v7220_v8, %v3170_v34  ;;  %v3478_v37 = vmul.f32 %v7183_v52, %v3460_v17 }
 0x248   :  { %v1444_v14 = vmul.bf16 %v1427_v31, %v7193_v53  ;;  %v2833_v53 = vsub.f32 %v7316_v54, %v7139_v1  ;;  %v2613_v34 = vmul.f32 %v7202_v5, %v2595_v44 }
 0x24a   :  { %2161 = vmatmul.mubr.bf16.gmra.mrb[36].mxu0 %v1444_v14  ;;  %v2883_v15 = vmul.f32 %v2833_v53, %v2833_v53  ;;  %v2596_v53 = vmul.f32 %v2546_v30, %v2546_v30 }
 0x24b   :  { %v1144_v56 = vpop.permute.xlu0 %1143  ;;  %2937 = vrot.lane.b32.xlu1 %v2900_v23, %s6015_s30  ;;  %3511 = vrot.lane.b32.xlu0 %v3475_v3, %s6015_s30  ;;  %v2902_v3 = vmul.f32 %v7168_v10, %v2884_v4 }
 0x24c   :  { %v1157_v19 = vmul.bf16 %v1144_v56, %v7237_v51  ;;  %v2901_v23 = vmul.f32 %v7168_v10, %v2883_v15  ;;  %v5428_v15 = vld [vmem:[%s8077_s10 + $0x8] sm:$0xff]   ;;  %v2614_v58 = vmul.f32 %v7202_v5, %v2596_v53 }
 0x24e   :  { %2071 = vmatprep.mubr.bf16.mxu1 %v1157_v19  ;;  %v3122_v19 = vsub.f32 %v7325_v29, %v7186_v24 }
 0x24f   :  { %v1720_v28 = vpop.permute.xlu1 %1719  ;;  %3513 = vrot.lane.b32.xlu1 %v3476_v41, %s6015_s30  ;;  %2647 = vrot.lane.b32.xlu0 %v2611_v16, %s6015_s30  ;;  %v3477_v41 = vmul.f32 %v7183_v52, %v3459_v22  ;;  %v5427_v16 = vld [vmem:[%s8077_s10] sm:$0xff]  }
 0x250   :  { %v1733_v2 = vmul.bf16 %v1720_v28, %v7237_v51  ;;  %5185 = vmatprep.subr.bf16.mxu1 %v5427_v16  ;;  %v3172_v0 = vmul.f32 %v3122_v19, %v3122_v19 }
 0x251   :  { %5186 = vmatpush3.bf16.msra.mxu1 %v5427_v16  ;;  %v5430_v16 = vld [vmem:[%s8077_s10 + $0x18] sm:$0xff]  }
 0x252   :  { %2168 = vmatprep.mubr.bf16.mxu0 %v1733_v2  ;;  %v7377_v2 = vld [vmem:[%s8072_s5 + $0x48] sm:$0xff]  ;;  %5187 = vmatprep.subr.bf16.mxu1 %v5428_v15  ;;  %v3190_v30 = vmul.f32 %v7220_v8, %v3172_v0 }
 0x253   :  { %v856_v26 = vpop.permute.xlu0 %855  ;;  %2649 = vrot.lane.b32.xlu1 %v2612_v21, %s6015_s30  ;;  %3223 = vrot.lane.b32.xlu0 %v3187_v38, %s6015_s30 }
 0x254   :  { %v869_v31 = vmul.bf16 %v856_v26, %v7237_v51  ;;  %v3189_v26 = vmul.f32 %v7220_v8, %v3171_v36 }
 0x255   :  { %5188 = vmatpush3.bf16.msra.mxu1 %v5428_v15  ;;  %v5431_v15 = vld [vmem:[%s8077_s10 + $0x20] sm:$0xff]  }
 0x256   :  { %2072 = vmatmul.mubr.bf16.gmra.mrb[24].mxu1 %v869_v31  ;;  %v5429_v31 = vld [vmem:[%s8077_s10 + $0x10] sm:$0xff]  }
 0x257   :  { %v1432_v14 = vpop.permute.xlu1 %1431  ;;  %3225 = vrot.lane.b32.xlu1 %v3188_v18, %s6015_s30  ;;  %2939 = vrot.lane.b32.xlu0 %v2901_v23, %s6015_s30  ;;  %v2836_v18 = vsub.f32 %v7377_v2, %v7139_v1 }
 0x258   :  { %v1445_v56 = vmul.bf16 %v1432_v14, %v7237_v51  ;;  %v7365_v51 = vld [vmem:[%s8072_s5 + $0x40] sm:$0xff]  ;;  %5189 = vmatprep.subr.bf16.mxu1 %v5429_v31 }
 0x259   :  { %v2835_v28 = vsub.f32 %v7365_v51, %v7139_v1  ;;  %v3411_v12 = vsub.f32 %v7365_v51, %v7152_v60  ;;  %v2886_v14 = vmul.f32 %v2836_v18, %v2836_v18  ;;  %5190 = vmatpush3.bf16.msra.mxu1 %v5429_v31 }
 0x25a   :  { %2169 = vmatmul.mubr.bf16.gmra.mrb[40].mxu0 %v1445_v56  ;;  %v2547_v56 = vsub.f32 %v7365_v51, %v7173_v25  ;;  %5191 = vmatprep.subr.bf16.mxu1 %v5430_v16 }
 0x25b   :  { %v1149_v21 = vpop.permute.xlu0 %1148  ;;  %2941 = vrot.lane.b32.xlu1 %v2902_v3, %s6015_s30  ;;  %3515 = vrot.lane.b32.xlu0 %v3477_v41, %s6015_s30  ;;  %v2885_v23 = vmul.f32 %v2835_v28, %v2835_v28  ;;  %v3412_v3 = vsub.f32 %v7377_v2, %v7152_v60  ;;  %v3461_v61 = vmul.f32 %v3411_v12, %v3411_v12 }
 0x25c   :  { %v1158_v38 = vmul.bf16 %v1149_v21, %v7230_v42  ;;  %v2904_v53 = vmul.f32 %v7168_v10, %v2886_v14  ;;  %v2548_v21 = vsub.f32 %v7377_v2, %v7173_v25  ;;  %v2597_v28 = vmul.f32 %v2547_v56, %v2547_v56 }
 0x25d   :  { %v2903_v41 = vmul.f32 %v7168_v10, %v2885_v23  ;;  %v3462_v19 = vmul.f32 %v3412_v3, %v3412_v3  ;;  %v3479_v36 = vmul.f32 %v7183_v52, %v3461_v61  ;;  %5192 = vmatpush3.bf16.msra.mxu1 %v5430_v16  ;;  %v7428_v23 = vld [vmem:[%s8072_s5 + $0x50] sm:$0xff]  ;;  %v7440_v3 = vld [vmem:[%s8072_s5 + $0x58] sm:$0xff] }
 0x25e   :  { %2079 = vmatprep.mubr.bf16.mxu1 %v1158_v38  ;;  %v3123_v38 = vsub.f32 %v7365_v51, %v7186_v24  ;;  %v2598_v18 = vmul.f32 %v2548_v21, %v2548_v21  ;;  %v2615_v0 = vmul.f32 %v7202_v5, %v2597_v28  ;;  %5193 = vmatprep.subr.bf16.mxu1 %v5431_v15  ;;  %v5434_v21 = vld [vmem:[%s8077_s10 + $0x38] sm:$0xff]  }
 0x25f   :  { %v1725_v4 = vpop.permute.xlu1 %1724  ;;  %3517 = vrot.lane.b32.xlu1 %v3478_v37, %s6015_s30  ;;  %2651 = vrot.lane.b32.xlu0 %v2613_v34, %s6015_s30  ;;  %v3414_v16 = vsub.f32 %v7440_v3, %v7152_v60  ;;  %v2550_v28 = vsub.f32 %v7440_v3, %v7173_v25 }
 0x260   :  { %v1734_v22 = vmul.bf16 %v1725_v4, %v7230_v42  ;;  %v3124_v4 = vsub.f32 %v7377_v2, %v7186_v24  ;;  %v2616_v12 = vmul.f32 %v7202_v5, %v2598_v18 }
 0x261   :  { %5194 = vmatpush3.bf16.msra.mxu1 %v5431_v15  ;;  %v2600_v18 = vmul.f32 %v2550_v28, %v2550_v28 }
 0x262   :  { %2176 = vmatprep.mubr.bf16.mxu0 %v1734_v22  ;;  %v5432_v22 = vld [vmem:[%s8077_s10 + $0x28] sm:$0xff]   ;;  %v3174_v31 = vmul.f32 %v3124_v4, %v3124_v4  ;;  %v3126_v4 = vsub.f32 %v7440_v3, %v7186_v24 }
 0x263   :  { %v861_v17 = vpop.permute.xlu0 %860  ;;  %2653 = vrot.lane.b32.xlu1 %v2614_v58, %s6015_s30  ;;  %3227 = vrot.lane.b32.xlu0 %v3189_v26, %s6015_s30  ;;  %v5793_v58 = vld [vmem:[%s8112_s1] sm:$0xff]   ;;  %v3173_v26 = vmul.f32 %v3123_v38, %v3123_v38 }
 0x264   :  { %v870_v44 = vmul.bf16 %v861_v17, %v7230_v42  ;;  %v2838_v17 = vsub.f32 %v7440_v3, %v7139_v1  ;;  %5195 = vmatprep.subr.bf16.mxu1 %v5432_v22  ;;  %v3192_v61 = vmul.f32 %v7220_v8, %v3174_v31  ;;  %v5798_v31 = vld [vmem:[%s8112_s1 + $0x10] sm:$0xff]  }
 0x265   :  { %5196 = vmatpush3.bf16.msra.mxu1 %v5432_v22 }
 0x266   :  { %2080 = vmatmul.mubr.bf16.gmra.mrb[28].mxu1 %v870_v44  ;;  %v5433_v44 = vld [vmem:[%s8077_s10 + $0x30] sm:$0xff]   ;;  %v2888_v56 = vmul.f32 %v2838_v17, %v2838_v17  ;;  %v2618_v17 = vmul.f32 %v7202_v5, %v2600_v18 }
 0x267   :  { %v1437_v37 = vpop.permute.xlu1 %1436  ;;  %3229 = vrot.lane.b32.xlu1 %v3190_v30, %s6015_s30  ;;  %2943 = vrot.lane.b32.xlu0 %v2903_v41, %s6015_s30  ;;  %v3191_v30 = vmul.f32 %v7220_v8, %v3173_v26  ;;  %v3413_v41 = vsub.f32 %v7428_v23, %v7152_v60 }
 0x268   :  { %v1446_v34 = vmul.bf16 %v1437_v37, %v7230_v42  ;;  %5201 = vmatprep.mubr.bf16.mxu1 %v5793_v58  ;;  %v3480_v42 = vmul.f32 %v7183_v52, %v3462_v19  ;;  %5197 = vmatprep.subr.bf16.mxu1 %v5433_v44  ;;  %v2549_v19 = vsub.f32 %v7428_v23, %v7173_v25 }
 0x269   :  { %5198 = vmatpush3.bf16.msra.mxu1 %v5433_v44  ;;  %v3125_v58 = vsub.f32 %v7428_v23, %v7186_v24 }
 0x26a   :  { %2177 = vmatmul.mubr.bf16.gmra.mrb[44].mxu0 %v1446_v34  ;;  %v2906_v34 = vmul.f32 %v7168_v10, %v2888_v56  ;;  %5199 = vmatprep.subr.bf16.mxu1 %v5434_v21  ;;  %v2599_v15 = vmul.f32 %v2549_v19, %v2549_v19 }
 0x26b   :  { %5241 = vmatprep.mubr.msk.bf16.mxu0 %vm422_vm4, %v6683_v11  ;;  %2945 = vrot.lane.b32.xlu1 %v2904_v53, %s6015_s30  ;;  %v2837_v11 = vsub.f32 %v7428_v23, %v7139_v1  ;;  %v3463_v53 = vmul.f32 %v3413_v41, %v3413_v41  ;;  %v3175_v26 = vmul.f32 %v3125_v58, %v3125_v58 }
 0x26c   :  { %3519 = vrot.lane.b32.xlu0 %v3479_v36, %s6015_s30  ;;  %v3464_v36 = vmul.f32 %v3414_v16, %v3414_v16 }
 0x26d   :  { %v2887_v14 = vmul.f32 %v2837_v11, %v2837_v11  ;;  %v3481_v38 = vmul.f32 %v7183_v52, %v3463_v53  ;;  %5200 = vmatpush3.bf16.msra.mxu1 %v5434_v21  ;;  %v7479_v11 = vld [vmem:[%s8072_s5 + $0x60] sm:$0xff]  ;;  %v3193_v44 = vmul.f32 %v7220_v8, %v3175_v26 }
 0x26e   :  { %v2839_v22 = vsub.f32 %v7479_v11, %v7139_v1  ;;  %v3415_v56 = vsub.f32 %v7479_v11, %v7152_v60  ;;  %v3127_v18 = vsub.f32 %v7479_v11, %v7186_v24 }
 0x26f   :  { %3521 = vrot.lane.b32.xlu1 %v3480_v42, %s6015_s30  ;;  %v2905_v37 = vmul.f32 %v7168_v10, %v2887_v14  ;;  %v3482_v42 = vmul.f32 %v7183_v52, %v3464_v36  ;;  %v7494_v14 = vld [vmem:[%s8072_s5 + $0x68] sm:$0xff]  ;;  %v5800_v36 = vld [vmem:[%s8112_s1 + $0x18] sm:$0xff]  }
 0x270   :  { %2655 = vrot.lane.b32.xlu0 %v2615_v0, %s6015_s30  ;;  %v2617_v0 = vmul.f32 %v7202_v5, %v2599_v15  ;;  %v2840_v41 = vsub.f32 %v7494_v14, %v7139_v1  ;;  %v3416_v53 = vsub.f32 %v7494_v14, %v7152_v60  ;;  %v3465_v21 = vmul.f32 %v3415_v56, %v3415_v56 }
 0x271   :  { %v2552_v15 = vsub.f32 %v7494_v14, %v7173_v25  ;;  %v3128_v26 = vsub.f32 %v7494_v14, %v7186_v24 }
 0x272   :  { %v3483_v58 = vmul.f32 %v7183_v52, %v3465_v21 }
 0x273   :  { %2657 = vrot.lane.b32.xlu1 %v2616_v12, %s6015_s30  ;;  %v5797_v12 = vld [vmem:[%s8112_s1 + $0x8] sm:$0xff]  }
 0x274   :  { %3231 = vrot.lane.b32.xlu0 %v3191_v30, %s6015_s30  ;;  %5202 = vmatmul.mubr.bf16.vlgmr.msra.gmra.mrb[32].mxu1 %v5797_v12  ;;  %v3176_v30 = vmul.f32 %v3126_v4, %v3126_v4  ;;  %v3177_v12 = vmul.f32 %v3127_v18, %v3127_v18 }
 0x275   :  { %5205 = vmatprep.mubr.bf16.mxu1 %v5798_v31  ;;  %v5801_v31 = vld [vmem:[%s8072_s5 + $0x70] sm:$0xff] }
 0x276   :  { %v3194_v16 = vmul.f32 %v7220_v8, %v3176_v30 }
 0x277   :  { %3233 = vrot.lane.b32.xlu1 %v3192_v61, %s6015_s30  ;;  %v2889_v61 = vmul.f32 %v2839_v22, %v2839_v22 }
 0x278   :  { %2947 = vrot.lane.b32.xlu0 %v2905_v37, %s6015_s30  ;;  %v2890_v37 = vmul.f32 %v2840_v41, %v2840_v41  ;;  %v3178_v41 = vmul.f32 %v3128_v26, %v3128_v26  ;;  %v3129_v26 = vsub.f32 %v5801_v31, %v7186_v24 }
 0x279   :  { %v2907_v19 = vmul.f32 %v7168_v10, %v2889_v61 }
 0x27a   :  { %v2908_v28 = vmul.f32 %v7168_v10, %v2890_v37 }
 0x27b   :  { %2949 = vrot.lane.b32.xlu1 %v2906_v34, %s6015_s30  ;;  %v2551_v34 = vsub.f32 %v7479_v11, %v7173_v25 }
 0x27c   :  { %3523 = vrot.lane.b32.xlu0 %v3481_v38, %s6015_s30  ;;  %5206 = vmatmul.mubr.bf16.gmra.mrb[36].mxu1 %v5800_v36  ;;  %v3466_v38 = vmul.f32 %v3416_v53, %v3416_v53  ;;  %v3417_v53 = vsub.f32 %v5801_v31, %v7152_v60 }
 0x27e   :  { %v3484_v4 = vmul.f32 %v7183_v52, %v3466_v38  ;;  %v2553_v38 = vsub.f32 %v5801_v31, %v7173_v25 }
 0x27f   :  { %3525 = vrot.lane.b32.xlu1 %v3482_v42, %s6015_s30  ;;  %v2601_v42 = vmul.f32 %v2551_v34, %v2551_v34 }
 0x280   :  { %2659 = vrot.lane.b32.xlu0 %v2617_v0, %s6015_s30  ;;  %v2602_v0 = vmul.f32 %v2552_v15, %v2552_v15  ;;  %v7550_v15 = vstv %s4738_s29 }
 0x281   :  { %v2619_v22 = vmul.f32 %v7202_v5, %v2601_v42 }
 0x282   :  { %v2620_v30 = vmul.f32 %v7202_v5, %v2602_v0  ;;  %v2603_v0 = vmul.f32 %v2553_v38, %v2553_v38 }
 0x283   :  { %2661 = vrot.lane.b32.xlu1 %v2618_v17, %s6015_s30  ;;  %v2841_v17 = vsub.f32 %v5801_v31, %v7139_v1 }
 0x284   :  { %3235 = vrot.lane.b32.xlu0 %v3193_v44, %s6015_s30  ;;  %v5802_v44 = vld [vmem:[%s8072_s5 + $0x78] sm:$0xff] }
 0x285   :  { %v2842_v61 = vsub.f32 %v5802_v44, %v7139_v1  ;;  %v2891_v37 = vmul.f32 %v2841_v17, %v2841_v17  ;;  %v3418_v34 = vsub.f32 %v5802_v44, %v7152_v60  ;;  %v2554_v42 = vsub.f32 %v5802_v44, %v7173_v25 }
 0x286   :  { %v7570_v17 = vstv %s4746_s12  ;;  %v7574_v25 = vstv %s2519_s28 }
 0x287   :  { %3237 = vrot.lane.b32.xlu1 %v3194_v16, %s6015_s30  ;;  %v3195_v16 = vmul.f32 %v7220_v8, %v3177_v12  ;;  %v2892_v21 = vmul.f32 %v2842_v61, %v2842_v61  ;;  %v2909_v1 = vmul.f32 %v7168_v10, %v2891_v37  ;;  %v3468_v60 = vmul.f32 %v3418_v34, %v3418_v34 }
 0x288   :  { %2951 = vrot.lane.b32.xlu0 %v2907_v19, %s6015_s30  ;;  %v3196_v19 = vmul.f32 %v7220_v8, %v3178_v41  ;;  %v2810_v12 = vsub.f32 %v7161_v59, %v7550_v15  ;;  %v3130_v41 = vsub.f32 %v5802_v44, %v7186_v24  ;;  %v3179_v37 = vmul.f32 %v3129_v26, %v3129_v26 }
 0x289   :  { %v3486_v31 = vmul.f32 %v7183_v52, %v3468_v60  ;;  %v2521_v34 = vsub.f32 %v7148_v43, %v7574_v25  ;;  %v7595_v24 = vstv %s7554_s2  ;;  %v2522_v50 = vsub.f32 %v7161_v59, %v7574_v25 }
 0x28a   :  { %v3197_v60 = vmul.f32 %v7220_v8, %v3179_v37 }
 0x28b   :  { %2953 = vrot.lane.b32.xlu1 %v2908_v28, %s6015_s30  ;;  %v3467_v28 = vmul.f32 %v3417_v53, %v3417_v53  ;;  %v2555_v26 = vmul.f32 %v2521_v34, %v2521_v34 }
 0x28c   :  { %3527 = vrot.lane.b32.xlu0 %v3483_v58, %s6015_s30  ;;  %v2910_v58 = vmul.f32 %v7168_v10, %v2892_v21  ;;  %v2809_v10 = vsub.f32 %v7148_v43, %v7550_v15  ;;  %v3385_v21 = vsub.f32 %v7148_v43, %v7570_v17 }
 0x28f   :  { %3529 = vrot.lane.b32.xlu1 %v3484_v4, %s6015_s30  ;;  %v3485_v4 = vmul.f32 %v7183_v52, %v3467_v28  ;;  %v2843_v52 = vmul.f32 %v2809_v10, %v2809_v10  ;;  %v3180_v28 = vmul.f32 %v3130_v41, %v3130_v41  ;;  %v7612_v10 = vstv %s7572_s0 }
 0x290   :  { %v7537_v56 = vpop.xlane.xlu0 %370  ;;  %2663 = vrot.lane.b32.xlu0 %v2619_v22, %s6015_s30 }
 0x293   :  { %2665 = vrot.lane.b32.xlu1 %v2620_v30, %s6015_s30  ;;  %v2604_v30 = vmul.f32 %v2554_v42, %v2554_v42 }
 0x294   :  { %v7545_v36 = vpop.xlane.xlu0 %374  ;;  %3239 = vrot.lane.b32.xlu0 %v3195_v16, %s6015_s30  ;;  %v2621_v16 = vmul.f32 %v7202_v5, %v2603_v0  ;;  %v3419_v0 = vmul.f32 %v3385_v21, %v3385_v21 }
 0x295   :  { %v2622_v44 = vmul.f32 %v7202_v5, %v2604_v30  ;;  %v3198_v30 = vmul.f32 %v7220_v8, %v3180_v28  ;;  %v2811_v8 = vsub.f32 %v7211_v13, %v7550_v15  ;;  %v3098_v28 = vsub.f32 %v7161_v59, %v7595_v24 }
 0x296   :  { %v3437_v21 = vmul.f32 %v7612_v10, %v3419_v0 }
 0x297   :  { %3241 = vrot.lane.b32.xlu1 %v3196_v19, %s6015_s30  ;;  %v2844_v19 = vmul.f32 %v2810_v12, %v2810_v12  ;;  %v3097_v12 = vsub.f32 %v7148_v43, %v7595_v24  ;;  %v2845_v27 = vmul.f32 %v2811_v8, %v2811_v8 }
 0x298   :  { %v7559_v18 = vpop.xlane.xlu0 %376  ;;  %2955 = vrot.lane.b32.xlu0 %v2909_v1, %s6015_s30  ;;  %v7592_v1 = vstv %s7552_s9 }
 0x299   :  { %v7564_v22 = vpop.xlane.xlu1 %372  ;;  %v2861_v5 = vmul.f32 %v7592_v1, %v2843_v52  ;;  %v3131_v34 = vmul.f32 %v3097_v12, %v3097_v12 }
 0x29b   :  { %2957 = vrot.lane.b32.xlu1 %v2910_v58, %s6015_s30  ;;  %v3386_v58 = vsub.f32 %v7161_v59, %v7570_v17  ;;  %v2812_v59 = vsub.f32 %v7226_v33, %v7550_v15 }
 0x29c   :  { %v7581_v61 = vpop.xlane.xlu0 %380  ;;  %3531 = vrot.lane.b32.xlu0 %v3485_v4, %s6015_s30  ;;  %v2862_v4 = vmul.f32 %v7592_v1, %v2844_v19 }
 0x29d   :  { %v7585_v53 = vpop.xlane.xlu1 %378 }
 0x29f   :  { %3533 = vrot.lane.b32.xlu1 %v3486_v31, %s6015_s30  ;;  %v7615_v31 = vstv %s7576_s22 }
 0x2a0   :  { %v7599_v38 = vpop.xlane.xlu0 %384  ;;  %2667 = vrot.lane.b32.xlu0 %v2621_v16, %s6015_s30  ;;  %v3420_v16 = vmul.f32 %v3386_v58, %v3386_v58  ;;  %v2573_v43 = vmul.f32 %v7615_v31, %v2555_v26 }
 0x2a1   :  { %v7605_v42 = vpop.xlane.xlu1 %382 }
 0x2a2   :  { %v3438_v12 = vmul.f32 %v7612_v10, %v3420_v16  ;;  %v386_v16 = vmax.f32 %v7537_v56, 1.0 }
 0x2a3   :  { %2669 = vrot.lane.b32.xlu1 %v2622_v44, %s6015_s30 }
 0x2a4   :  { %v2930_v41 = vpop.permute.xlu0 %2929  ;;  %3243 = vrot.lane.b32.xlu0 %v3197_v60, %s6015_s30 }
 0x2a5   :  { %v2928_v37 = vpop.permute.xlu1 %2927  ;;  %v2976_v19 = vadd.f32 %v2930_v41, %v2862_v4  ;;  %v3387_v4 = vsub.f32 %v7211_v13, %v7570_v17  ;;  %v3149_v41 = vmul.f32 %v7624_v57, %v3131_v34 }
 0x2a6   :  { %v2975_v52 = vadd.f32 %v2928_v37, %v2861_v5 }
 0x2a7   :  { %v2992_v44 = vmul.f32 -0.5, %v2976_v19  ;;  %3245 = vrot.lane.b32.xlu1 %v3198_v30, %s6015_s30  ;;  %v2556_v19 = vmul.f32 %v2522_v50, %v2522_v50  ;;  %v3132_v30 = vmul.f32 %v3098_v28, %v3098_v28  ;;  %v3421_v20 = vmul.f32 %v3387_v4, %v3387_v4 }
 0x2a8   :  { %v2991_v58 = vmul.f32 -0.5, %v2975_v52  ;;  %v2640_v60 = vpop.permute.xlu0 %2639  ;;  %v2863_v28 = vmul.f32 %v7592_v1, %v2845_v27  ;;  %v3099_v27 = vsub.f32 %v7211_v13, %v7595_v24 }
 0x2a9   :  { %v3009_v0 = vmul.f32 1.442695, %v2992_v44  ;;  %v3504_v26 = vpop.permute.xlu1 %3503  ;;  %v2687_v5 = vadd.f32 %v2640_v60, %v2573_v43  ;;  %v2523_v44 = vsub.f32 %v7211_v13, %v7574_v25  ;;  %v2574_v8 = vmul.f32 %v7615_v31, %v2556_v19 }
 0x2aa   :  { %v3007_v37 = vmul.f32 1.442695, %v2991_v58  ;;  %v3551_v45 = vadd.f32 %v3504_v26, %v3437_v21  ;;  %v387_v60 = vmax.f32 %v7564_v22, 1.0  ;;  %v3150_v26 = vmul.f32 %v7624_v57, %v3132_v30 }
 0x2ab   :  { %5619 = vpow2.f32 %v3009_v0  ;;  %v2703_v34 = vmul.f32 -0.5, %v2687_v5  ;;  %v2846_v0 = vmul.f32 %v2812_v59, %v2812_v59  ;;  %v3439_v56 = vmul.f32 %v7612_v10, %v3421_v20 }
 0x2ac   :  { %5621 = vpow2.f32 %v3007_v37  ;;  %v3567_v52 = vmul.f32 -0.5, %v3551_v45  ;;  %v3216_v63 = vpop.permute.xlu0 %3215  ;;  %v3388_v45 = vsub.f32 %v7226_v33, %v7570_v17  ;;  %v2557_v5 = vmul.f32 %v2523_v44, %v2523_v44 }
 0x2ad   :  { %v3506_v43 = vpop.permute.xlu1 %3505  ;;  %v3263_v58 = vadd.f32 %v3216_v63, %v3149_v41  ;;  %5623 = vrcp.f32 %v386_v16  ;;  %v2524_v30 = vsub.f32 %v7226_v33, %v7574_v25 }
 0x2ae   :  { %v3583_v21 = vmul.f32 1.442695, %v3567_v52  ;;  %v3552_v50 = vadd.f32 %v3506_v43, %v3438_v12  ;;  %v2719_v12 = vmul.f32 1.442695, %v2703_v34  ;;  %v2864_v52 = vmul.f32 %v7592_v1, %v2846_v0 }
 0x2af   :  { %v3279_v41 = vmul.f32 -0.5, %v3263_v58  ;;  %v3422_v43 = vmul.f32 %v3388_v45, %v3388_v45  ;;  %v2575_v16 = vmul.f32 %v7615_v31, %v2557_v5  ;;  %v3100_v34 = vsub.f32 %v7226_v33, %v7595_v24 }
 0x2b0   :  { %v3568_v4 = vmul.f32 -0.5, %v3552_v50  ;;  %v2932_v37 = vpop.permute.xlu0 %2931  ;;  %5625 = vpow2.f32 %v3583_v21  ;;  %v3133_v50 = vmul.f32 %v3099_v27, %v3099_v27  ;;  %v3389_v5 = vsub.f32 %v7270_v46, %v7570_v17 }
 0x2b1   :  { %v2642_v63 = vpop.permute.xlu1 %2641  ;;  %v2977_v59 = vadd.f32 %v2932_v37, %v2863_v28  ;;  %5627 = vrcp.f32 %v387_v60  ;;  %v3295_v21 = vmul.f32 1.442695, %v3279_v41  ;;  %v3134_v41 = vmul.f32 %v3100_v34, %v3100_v34 }
 0x2b2   :  { %v3585_v22 = vmul.f32 1.442695, %v3568_v4  ;;  %v2688_v19 = vadd.f32 %v2642_v63, %v2574_v8  ;;  %v2813_v8 = vsub.f32 %v7270_v46, %v7550_v15  ;;  %v3440_v63 = vmul.f32 %v7612_v10, %v3422_v43 }
 0x2b3   :  { %v2993_v45 = vmul.f32 -0.5, %v2977_v59 }
 0x2b4   :  { %5629 = vpow2.f32 %v3585_v22  ;;  %v2704_v20 = vmul.f32 -0.5, %v2688_v19  ;;  %v3508_v44 = vpop.permute.xlu0 %3507 }
 0x2b5   :  { %v5620_v13 = vpop.eup %5619  ;;  %5631 = vpow2.f32 %v2719_v12  ;;  %v3218_v58 = vpop.permute.xlu1 %3217  ;;  %v3553_v4 = vadd.f32 %v3508_v44, %v3439_v56  ;;  %v2558_v12 = vmul.f32 %v2524_v30, %v2524_v30  ;;  %v3011_v44 = vmul.f32 1.442695, %v2993_v45 }
 0x2b6   :  { %v5622_v28 = vpop.eup %5621  ;;  %v2721_v60 = vmul.f32 1.442695, %v2704_v20  ;;  %v3264_v0 = vadd.f32 %v3218_v58, %v3150_v26  ;;  %v3151_v20 = vmul.f32 %v7624_v57, %v3133_v50  ;;  %v2847_v26 = vmul.f32 %v2813_v8, %v2813_v8 }
 0x2b7   :  { %v3039_v37 = vpack.c.bf16 %v5620_v13, %v5622_v28  ;;  %v3569_v13 = vmul.f32 -0.5, %v3553_v4  ;;  %v5624_v43 = vpop.eup %5623  ;;  %v2814_v58 = vsub.f32 %v7279_v55, %v7550_v15  ;;  %v3423_v28 = vmul.f32 %v3389_v5, %v3389_v5 }
 0x2b8   :  { %5633 = vpow2.f32 %v2721_v60  ;;  %v3280_v33 = vmul.f32 -0.5, %v3264_v0  ;;  %v2644_v22 = vpop.permute.xlu0 %2643  ;;  %v2576_v34 = vmul.f32 %v7615_v31, %v2558_v12  ;;  %v2865_v4 = vmul.f32 %v7592_v1, %v2847_v26 }
 0x2b9   :  { %5635 = vpow2.f32 %v3295_v21  ;;  %v2934_v27 = vpop.permute.xlu1 %2933  ;;  %3049 = vperm.xlu0 %5389, %v3039_v37   ;;  %v2689_v19 = vadd.f32 %v2644_v22, %v2575_v16  ;;  %v2525_v16 = vsub.f32 %v7270_v46, %v7574_v25  ;;  %v3587_v22 = vmul.f32 1.442695, %v3569_v13 }
 0x2ba   :  { %v3297_v59 = vmul.f32 1.442695, %v3280_v33  ;;  %v2978_v56 = vadd.f32 %v2934_v27, %v2864_v52  ;;  %v5626_v60 = vpop.eup %5625  ;;  %v3152_v52 = vmul.f32 %v7624_v57, %v3134_v41  ;;  %v2848_v12 = vmul.f32 %v2814_v58, %v2814_v58 }
 0x2bb   :  { %v5628_v50 = vpop.eup %5627  ;;  %v2705_v0 = vmul.f32 -0.5, %v2689_v19  ;;  %v3441_v62 = vmul.f32 %v7612_v10, %v3423_v28  ;;  %v2559_v41 = vmul.f32 %v2525_v16, %v2525_v16  ;;  %v402_v13 = vmul.f32 %v5624_v43, %v7102_v7 }
 0x2bc   :  { %5637 = vpow2.f32 %v3297_v59  ;;  %v2994_v30 = vmul.f32 -0.5, %v2978_v56  ;;  %v3220_v21 = vpop.permute.xlu0 %3219  ;;  %v3390_v56 = vsub.f32 %v7279_v55, %v7570_v17  ;;  %v403_v58 = vmul.f32 %v5628_v50, %v7117_v49 }
 0x2bd   :  { %v3510_v8 = vpop.permute.xlu1 %3509  ;;  %v3265_v45 = vadd.f32 %v3220_v21, %v3151_v20  ;;  %5639 = vpow2.f32 %v3011_v44  ;;  %v3101_v20 = vsub.f32 %v7270_v46, %v7595_v24  ;;  %v2723_v44 = vmul.f32 1.442695, %v2705_v0 }
 0x2be   :  { %v5630_v37 = vpop.eup %5629  ;;  %v3013_v33 = vmul.f32 1.442695, %v2994_v30  ;;  %v3554_v5 = vadd.f32 %v3510_v8, %v3440_v63  ;;  %v2866_v16 = vmul.f32 %v7592_v1, %v2848_v12  ;;  %v2526_v46 = vsub.f32 %v7279_v55, %v7574_v25 }
 0x2bf   :  { %v5632_v27 = vpop.eup %5631  ;;  %v3615_v59 = vpack.c.bf16 %v5630_v37, %v5626_v60  ;;  %v3281_v63 = vmul.f32 -0.5, %v3265_v45  ;;  %v3424_v45 = vmul.f32 %v3390_v56, %v3390_v56  ;;  %v2815_v49 = vsub.f32 %v7316_v54, %v7550_v15 }
 0x2c0   :  { %5641 = vpow2.f32 %v3013_v33  ;;  %v3570_v19 = vmul.f32 -0.5, %v3554_v5  ;;  %v2936_v35 = vpop.permute.xlu0 %2935  ;;  %v7678_v33 = vpack.c.bf16 %v403_v58, %v402_v13  ;;  %v3135_v50 = vmul.f32 %v3101_v20, %v3101_v20 }
 0x2c1   :  { %3625 = vperm.xlu1 %5390, %v3615_v59   ;;  %v2646_v26 = vpop.permute.xlu1 %2645  ;;  %5643 = vpow2.f32 %v3587_v22  ;;  %v2979_v28 = vadd.f32 %v2936_v35, %v2865_v4  ;;  %v3299_v35 = vmul.f32 1.442695, %v3281_v63  ;;  %v2560_v56 = vmul.f32 %v2526_v46, %v2526_v46 }
 0x2c2   :  { %v5634_v60 = vpop.eup %5633  ;;  %v3589_v30 = vmul.f32 1.442695, %v3570_v19  ;;  %v2690_v21 = vadd.f32 %v2646_v26, %v2576_v34  ;;  %v2577_v34 = vmul.f32 %v7615_v31, %v2559_v41  ;;  %5225 = vmatprep.mubr.bf16.mxu1 %v7678_v33  ;;  %v3102_v19 = vsub.f32 %v7279_v55, %v7595_v24 }
 0x2c3   :  { %v5636_v8 = vpop.eup %5635  ;;  %v2751_v37 = vpack.c.bf16 %v5634_v60, %v5632_v27  ;;  %v2995_v27 = vmul.f32 -0.5, %v2979_v28  ;;  %v3442_v63 = vmul.f32 %v7612_v10, %v3424_v45  ;;  %v2849_v41 = vmul.f32 %v2815_v49, %v2815_v49 }
 0x2c4   :  { %5645 = vpow2.f32 %v3589_v30  ;;  %v2706_v0 = vmul.f32 -0.5, %v2690_v21  ;;  %v3512_v7 = vpop.permute.xlu0 %3511  ;;  %v3136_v46 = vmul.f32 %v3102_v19, %v3102_v19 }
 0x2c5   :  { %5647 = vpow2.f32 %v2723_v44  ;;  %v3222_v43 = vpop.permute.xlu1 %3221  ;;  %2761 = vperm.xlu0 %5389, %v2751_v37   ;;  %v3555_v59 = vadd.f32 %v3512_v7, %v3441_v62  ;;  %v3391_v62 = vsub.f32 %v7316_v54, %v7570_v17  ;;  %v3015_v55 = vmul.f32 1.442695, %v2995_v27 }
 0x2c6   :  { %v5638_v4 = vpop.eup %5637  ;;  %v2725_v5 = vmul.f32 1.442695, %v2706_v0  ;;  %v3266_v22 = vadd.f32 %v3222_v43, %v3152_v52  ;;  %v3153_v52 = vmul.f32 %v7624_v57, %v3135_v50  ;;  %v2578_v37 = vmul.f32 %v7615_v31, %v2560_v56 }
 0x2c7   :  { %v3327_v12 = vpack.c.bf16 %v5638_v4, %v5636_v8  ;;  %v5640_v26 = vpop.eup %5639  ;;  %v3571_v28 = vmul.f32 -0.5, %v3555_v59  ;;  %v2816_v0 = vsub.f32 %v7325_v29, %v7550_v15  ;;  %v2867_v43 = vmul.f32 %v7592_v1, %v2849_v41 }
 0x2c8   :  { %5649 = vpow2.f32 %v2725_v5  ;;  %v3282_v44 = vmul.f32 -0.5, %v3266_v22  ;;  %v2648_v13 = vpop.permute.xlu0 %2647  ;;  %v3425_v4 = vmul.f32 %v3391_v62, %v3391_v62  ;;  %v2527_v5 = vsub.f32 %v7316_v54, %v7574_v25 }
 0x2c9   :  { %5651 = vpow2.f32 %v3299_v35  ;;  %v2938_v20 = vpop.permute.xlu1 %2937  ;;  %3337 = vperm.xlu1 %5390, %v3327_v12   ;;  %v2691_v58 = vadd.f32 %v2648_v13, %v2577_v34  ;;  %v3392_v35 = vsub.f32 %v7325_v29, %v7570_v17  ;;  %v3591_v12 = vmul.f32 1.442695, %v3571_v28 }
 0x2ca   :  { %v5642_v60 = vpop.eup %5641  ;;  %v3301_v30 = vmul.f32 1.442695, %v3282_v44  ;;  %v2980_v21 = vadd.f32 %v2938_v20, %v2866_v16  ;;  %v2850_v44 = vmul.f32 %v2816_v0, %v2816_v0  ;;  %v2528_v13 = vsub.f32 %v7325_v29, %v7574_v25 }
 0x2cb   :  { %v3040_v8 = vpack.c.bf16 %v5642_v60, %v5640_v26  ;;  %v5644_v45 = vpop.eup %5643  ;;  %v2707_v16 = vmul.f32 -0.5, %v2691_v58  ;;  %v3154_v26 = vmul.f32 %v7624_v57, %v3136_v46  ;;  %v3426_v58 = vmul.f32 %v3392_v35, %v3392_v35 }
 0x2cc   :  { %5653 = vpow2.f32 %v3301_v30  ;;  %v2996_v7 = vmul.f32 -0.5, %v2980_v21  ;;  %v3224_v49 = vpop.permute.xlu0 %3223  ;;  %v3443_v30 = vmul.f32 %v7612_v10, %v3425_v4  ;;  %v2561_v21 = vmul.f32 %v2527_v5, %v2527_v5 }
 0x2cd   :  { %v3514_v34 = vpop.permute.xlu1 %3513  ;;  %3054 = vperm.xlu0 %5389, %v3040_v8   ;;  %v3267_v50 = vadd.f32 %v3224_v49, %v3153_v52  ;;  %5655 = vpow2.f32 %v3015_v55  ;;  %v3103_v52 = vsub.f32 %v7316_v54, %v7595_v24  ;;  %v2727_v60 = vmul.f32 1.442695, %v2707_v16 }
 0x2ce   :  { %v5646_v22 = vpop.eup %5645  ;;  %v3017_v27 = vmul.f32 1.442695, %v2996_v7  ;;  %v3556_v59 = vadd.f32 %v3514_v34, %v3442_v63  ;;  %v2868_v7 = vmul.f32 %v7592_v1, %v2850_v44  ;;  %v2562_v49 = vmul.f32 %v2528_v13, %v2528_v13 }
 0x2cf   :  { %v5648_v56 = vpop.eup %5647  ;;  %v3616_v19 = vpack.c.bf16 %v5646_v22, %v5644_v45  ;;  %v3283_v63 = vmul.f32 -0.5, %v3267_v50  ;;  %v3104_v54 = vsub.f32 %v7325_v29, %v7595_v24  ;;  %v3444_v34 = vmul.f32 %v7612_v10, %v3426_v58 }
 0x2d0   :  { %5657 = vpow2.f32 %v3017_v27  ;;  %v3572_v41 = vmul.f32 -0.5, %v3556_v59  ;;  %v2940_v20 = vpop.permute.xlu0 %2939  ;;  %v3137_v50 = vmul.f32 %v3103_v52, %v3103_v52  ;;  %v2818_v13 = vsub.f32 %v7377_v2, %v7550_v15 }
 0x2d1   :  { %v2650_v62 = vpop.permute.xlu1 %2649  ;;  %3630 = vperm.xlu1 %5390, %v3616_v19   ;;  %5659 = vpow2.f32 %v3591_v12  ;;  %v2981_v46 = vadd.f32 %v2940_v20, %v2867_v43  ;;  %v3303_v5 = vmul.f32 1.442695, %v3283_v63  ;;  %v2817_v43 = vsub.f32 %v7365_v51, %v7550_v15 }
 0x2d2   :  { %v5650_v55 = vpop.eup %5649  ;;  %v3593_v28 = vmul.f32 1.442695, %v3572_v41  ;;  %v2692_v8 = vadd.f32 %v2650_v62, %v2578_v37  ;;  %v2579_v37 = vmul.f32 %v7615_v31, %v2561_v21  ;;  %v2580_v19 = vmul.f32 %v7615_v31, %v2562_v49 }
 0x2d3   :  { %v5652_v0 = vpop.eup %5651  ;;  %v2752_v45 = vpack.c.bf16 %v5650_v55, %v5648_v56  ;;  %v2997_v12 = vmul.f32 -0.5, %v2981_v46  ;;  %v3138_v44 = vmul.f32 %v3104_v54, %v3104_v54  ;;  %v3155_v52 = vmul.f32 %v7624_v57, %v3137_v50 }
 0x2d4   :  { %5661 = vpow2.f32 %v3593_v28  ;;  %v2708_v35 = vmul.f32 -0.5, %v2692_v8  ;;  %v3516_v16 = vpop.permute.xlu0 %3515  ;;  %v3394_v62 = vsub.f32 %v7377_v2, %v7570_v17  ;;  %v2851_v63 = vmul.f32 %v2817_v43, %v2817_v43 }
 0x2d5   :  { %5663 = vpow2.f32 %v2727_v60  ;;  %v3226_v4 = vpop.permute.xlu1 %3225  ;;  %2766 = vperm.xlu0 %5389, %v2752_v45   ;;  %v3557_v29 = vadd.f32 %v3516_v16, %v3443_v30  ;;  %v3393_v30 = vsub.f32 %v7365_v51, %v7570_v17  ;;  %v3019_v8 = vmul.f32 1.442695, %v2997_v12 }
 0x2d6   :  { %v5654_v22 = vpop.eup %5653  ;;  %v2729_v27 = vmul.f32 1.442695, %v2708_v35  ;;  %v3268_v59 = vadd.f32 %v3226_v4, %v3154_v26  ;;  %v3156_v45 = vmul.f32 %v7624_v57, %v3138_v44  ;;  %v2852_v49 = vmul.f32 %v2818_v13, %v2818_v13 }
 0x2d7   :  { %v3328_v56 = vpack.c.bf16 %v5654_v22, %v5652_v0  ;;  %v5656_v41 = vpop.eup %5655  ;;  %v3573_v46 = vmul.f32 -0.5, %v3557_v29  ;;  %v2530_v54 = vsub.f32 %v7377_v2, %v7574_v25  ;;  %v3428_v4 = vmul.f32 %v3394_v62, %v3394_v62 }
 0x2d8   :  { %5665 = vpow2.f32 %v2729_v27  ;;  %v3284_v20 = vmul.f32 -0.5, %v3268_v59  ;;  %v2652_v58 = vpop.permute.xlu0 %2651  ;;  %v2869_v22 = vmul.f32 %v7592_v1, %v2851_v63  ;;  %v3427_v27 = vmul.f32 %v3393_v30, %v3393_v30 }
 0x2d9   :  { %5667 = vpow2.f32 %v3303_v5  ;;  %v2942_v26 = vpop.permute.xlu1 %2941  ;;  %3342 = vperm.xlu1 %5390, %v3328_v56   ;;  %v2693_v60 = vadd.f32 %v2652_v58, %v2579_v37  ;;  %v2529_v5 = vsub.f32 %v7365_v51, %v7574_v25  ;;  %v3595_v56 = vmul.f32 1.442695, %v3573_v46 }
 0x2da   :  { %v5658_v21 = vpop.eup %5657  ;;  %v3305_v55 = vmul.f32 1.442695, %v3284_v20  ;;  %v2982_v28 = vadd.f32 %v2942_v26, %v2868_v7  ;;  %v2564_v20 = vmul.f32 %v2530_v54, %v2530_v54  ;;  %v3106_v58 = vsub.f32 %v7377_v2, %v7595_v24 }
 0x2db   :  { %v3041_v0 = vpack.c.bf16 %v5658_v21, %v5656_v41  ;;  %v5660_v35 = vpop.eup %5659  ;;  %v2709_v7 = vmul.f32 -0.5, %v2693_v60  ;;  %v2870_v41 = vmul.f32 %v7592_v1, %v2852_v49  ;;  %v2563_v60 = vmul.f32 %v2529_v5, %v2529_v5 }
 0x2dc   :  { %5669 = vpow2.f32 %v3305_v55  ;;  %v2998_v16 = vmul.f32 -0.5, %v2982_v28  ;;  %v3228_v50 = vpop.permute.xlu0 %3227  ;;  %v3445_v21 = vmul.f32 %v7612_v10, %v3427_v27  ;;  %v3105_v55 = vsub.f32 %v7365_v51, %v7595_v24 }
 0x2dd   :  { %v3518_v37 = vpop.permute.xlu1 %3517  ;;  %3059 = vperm.xlu0 %5389, %v3041_v0   ;;  %v3269_v43 = vadd.f32 %v3228_v50, %v3155_v52  ;;  %5671 = vpow2.f32 %v3019_v8  ;;  %v7729_v52 = vmul.f32 %v7612_v10, %v3428_v4  ;;  %v2731_v30 = vmul.f32 1.442695, %v2709_v7 }
 0x2de   :  { %v5662_v59 = vpop.eup %5661  ;;  %v3021_v12 = vmul.f32 1.442695, %v2998_v16  ;;  %v3558_v29 = vadd.f32 %v3518_v37, %v3444_v34  ;;  %v7735_v54 = vmul.f32 %v7615_v31, %v2564_v20  ;;  %v2820_v16 = vsub.f32 %v7440_v3, %v7550_v15 }
 0x2df   :  { %v5664_v44 = vpop.eup %5663  ;;  %v3617_v13 = vpack.c.bf16 %v5662_v59, %v5660_v35  ;;  %v3285_v34 = vmul.f32 -0.5, %v3269_v43  ;;  %v3140_v35 = vmul.f32 %v3106_v58, %v3106_v58  ;;  %v2581_v5 = vmul.f32 %v7615_v31, %v2563_v60 }
 0x2e0   :  { %5673 = vpow2.f32 %v3021_v12  ;;  %v3574_v62 = vmul.f32 -0.5, %v3558_v29  ;;  %v2944_v26 = vpop.permute.xlu0 %2943  ;;  %v2819_v51 = vsub.f32 %v7428_v23, %v7550_v15  ;;  %v3139_v7 = vmul.f32 %v3105_v55, %v3105_v55 }
 0x2e1   :  { %v2654_v63 = vpop.permute.xlu1 %2653  ;;  %3635 = vperm.xlu1 %5390, %v3617_v13   ;;  %5675 = vpow2.f32 %v3595_v56  ;;  %v2983_v46 = vadd.f32 %v2944_v26, %v2869_v22  ;;  %v3307_v37 = vmul.f32 1.442695, %v3285_v34  ;;  %v3396_v43 = vsub.f32 %v7440_v3, %v7570_v17 }
 0x2e2   :  { %v5666_v28 = vpop.eup %5665  ;;  %v3597_v8 = vmul.f32 1.442695, %v3574_v62  ;;  %v2694_v2 = vadd.f32 %v2654_v63, %v2580_v19  ;;  %v2854_v13 = vmul.f32 %v2820_v16, %v2820_v16  ;;  %v3395_v20 = vsub.f32 %v7428_v23, %v7570_v17 }
 0x2e3   :  { %v5668_v0 = vpop.eup %5667  ;;  %v2753_v49 = vpack.c.bf16 %v5666_v28, %v5664_v44  ;;  %v2999_v12 = vmul.f32 -0.5, %v2983_v46  ;;  %v7745_v44 = vmul.f32 %v7624_v57, %v3140_v35  ;;  %v2853_v60 = vmul.f32 %v2819_v51, %v2819_v51 }
 0x2e4   :  { %5677 = vpow2.f32 %v3597_v8  ;;  %v2710_v50 = vmul.f32 -0.5, %v2694_v2  ;;  %v3520_v4 = vpop.permute.xlu0 %3519  ;;  %v2532_v63 = vsub.f32 %v7440_v3, %v7574_v25  ;;  %v3430_v34 = vmul.f32 %v3396_v43, %v3396_v43 }
 0x2e5   :  { %5679 = vpow2.f32 %v2731_v30  ;;  %v3230_v19 = vpop.permute.xlu1 %3229  ;;  %2771 = vperm.xlu0 %5389, %v2753_v49   ;;  %v3559_v29 = vadd.f32 %v3520_v4, %v3445_v21  ;;  %v3157_v30 = vmul.f32 %v7624_v57, %v3139_v7  ;;  %v2531_v21 = vsub.f32 %v7428_v23, %v7574_v25 }
 0x2e6   :  { %v5670_v22 = vpop.eup %5669  ;;  %v2733_v27 = vmul.f32 1.442695, %v2710_v50  ;;  %v3270_v59 = vadd.f32 %v3230_v19, %v3156_v45  ;;  %v3023_v2 = vmul.f32 1.442695, %v2999_v12  ;;  %v7755_v35 = vmul.f32 %v7592_v1, %v2854_v13 }
 0x2e7   :  { %v3329_v56 = vpack.c.bf16 %v5670_v22, %v5668_v0  ;;  %v5672_v58 = vpop.eup %5671  ;;  %v3575_v46 = vmul.f32 -0.5, %v3559_v29  ;;  %v3429_v16 = vmul.f32 %v3395_v20, %v3395_v20  ;;  %v2871_v19 = vmul.f32 %v7592_v1, %v2853_v60 }
 0x2e8   :  { %5681 = vpow2.f32 %v2733_v27  ;;  %v3286_v62 = vmul.f32 -0.5, %v3270_v59  ;;  %v2656_v26 = vpop.permute.xlu0 %2655  ;;  %v2565_v43 = vmul.f32 %v2531_v21, %v2531_v21 }
 0x2e9   :  { %5683 = vpow2.f32 %v3307_v37  ;;  %v2946_v45 = vpop.permute.xlu1 %2945  ;;  %3347 = vperm.xlu1 %5390, %v3329_v56   ;;  %v2695_v49 = vadd.f32 %v2656_v26, %v2581_v5  ;;  %v2566_v37 = vmul.f32 %v2532_v63, %v2532_v63  ;;  %v3108_v5 = vsub.f32 %v7440_v3, %v7595_v24 }
 0x2ea   :  { %v5674_v55 = vpop.eup %5673  ;;  %v3309_v28 = vmul.f32 1.442695, %v3286_v62  ;;  %v2984_v8 = vadd.f32 %v2946_v45, %v2870_v41  ;;  %v7759_v41 = vmul.f32 %v7612_v10, %v3430_v34  ;;  %v3599_v12 = vmul.f32 1.442695, %v3575_v46 }
 0x2eb   :  { %v3042_v0 = vpack.c.bf16 %v5674_v55, %v5672_v58  ;;  %v5676_v50 = vpop.eup %5675  ;;  %v2711_v13 = vmul.f32 -0.5, %v2695_v49  ;;  %v7765_v20 = vmul.f32 %v7612_v10, %v3429_v16  ;;  %v5803_v58 = vld [vmem:[%s8072_s5 + $0x50] sm:$0xff]  ;;  %v7772_v63 = vmul.f32 %v7615_v31, %v2566_v37 }
 0x2ec   :  { %5685 = vpow2.f32 %v3309_v28  ;;  %v3000_v4 = vmul.f32 -0.5, %v2984_v8  ;;  %v3232_v51 = vpop.permute.xlu0 %3231  ;;  %v3107_v62 = vsub.f32 %v5803_v58, %v7595_v24  ;;  %v7777_v21 = vmul.f32 %v7615_v31, %v2565_v43 }
 0x2ed   :  { %v3522_v7 = vpop.permute.xlu1 %3521  ;;  %3064 = vperm.xlu0 %5389, %v3042_v0   ;;  %v3271_v23 = vadd.f32 %v3232_v51, %v3157_v30  ;;  %5687 = vpow2.f32 %v3023_v2  ;;  %v3142_v55 = vmul.f32 %v3108_v5, %v3108_v5  ;;  %v2821_v28 = vsub.f32 %v7479_v11, %v7550_v15 }
 0x2ee   :  { %v5678_v22 = vpop.eup %5677  ;;  %v3025_v27 = vmul.f32 1.442695, %v3000_v4  ;;  %v3560_v59 = vadd.f32 %v3522_v7, %v7729_v52  ;;  %v2822_v52 = vsub.f32 %v7494_v14, %v7550_v15 }
 0x2ef   :  { %v5680_v29 = vpop.eup %5679  ;;  %v3618_v56 = vpack.c.bf16 %v5678_v22, %v5676_v50  ;;  %v3287_v34 = vmul.f32 -0.5, %v3271_v23  ;;  %v2735_v50 = vmul.f32 1.442695, %v2711_v13  ;;  %v3141_v23 = vmul.f32 %v3107_v62, %v3107_v62 }
 0x2f0   :  { %5689 = vpow2.f32 %v3025_v27  ;;  %v3576_v3 = vmul.f32 -0.5, %v3560_v59  ;;  %v4838_v26 = vpop.f32.mrb[0].mxu1  ;;  %v4902_v60 = vpop.f32.mrb[16].mxu0  ;;  %v2856_v27 = vmul.f32 %v2822_v52, %v2822_v52 }
 0x2f1   :  { %v2658_v45 = vpop.permute.xlu1 %2657  ;;  %3640 = vperm.xlu1 %5390, %v3618_v56   ;;  %v4839_v30 = vpop.f32.mrb[1].mxu1  ;;  %5691 = vpow2.f32 %v3599_v12 }
 0x2f2   :  { %v5682_v8 = vpop.eup %5681  ;;  %v3601_v2 = vmul.f32 1.442695, %v3576_v3  ;;  %v2696_v46 = vadd.f32 %v2658_v45, %v7735_v54  ;;  %v4840_v0 = vadd.f32 %v4839_v30, %v4838_v26  ;;  %v4903_v49 = vpop.f32.mrb[17].mxu0  ;;  %v3311_v54 = vmul.f32 1.442695, %v3287_v34 }
 0x2f3   :  { %v4841_v16 = vpop.f32.mrb[2].mxu1  ;;  %v5684_v14 = vpop.eup %5683  ;;  %v4904_v4 = vadd.f32 %v4903_v49, %v4902_v60  ;;  %v2754_v7 = vpack.c.bf16 %v5682_v8, %v5680_v29  ;;  %v2855_v60 = vmul.f32 %v2821_v28, %v2821_v28  ;;  %v7786_v29 = vld [vmem:[%s8072_s5 + $0x68] sm:$0xff]  ;;  %v7796_v28 = vld [vmem:[%s8072_s5 + $0x60] sm:$0xff] }
 0x2f4   :  { %v4905_v51 = vpop.f32.mrb[18].mxu0  ;;  %v4842_v37 = vpop.f32.mrb[3].mxu1  ;;  %5693 = vpow2.f32 %v3601_v2  ;;  %v2712_v43 = vmul.f32 -0.5, %v2696_v46  ;;  %v3398_v62 = vsub.f32 %v7786_v29, %v7570_v17  ;;  %v3397_v46 = vsub.f32 %v7796_v28, %v7570_v17 }
 0x2f5   :  { %v4843_v5 = vadd.f32 %v4842_v37, %v4841_v16  ;;  %v4906_v22 = vpop.f32.mrb[19].mxu0  ;;  %v2948_v11 = vpop.permute.xlu0 %2947  ;;  %v2123_v59 = vadd.f32 %v4904_v4, %v4840_v0  ;;  %2776 = vperm.xlu0 %5389, %v2754_v7   ;;  %5695 = vpow2.f32 %v2735_v50  ;;  %v7804_v50 = vmul.f32 %v7592_v1, %v2856_v27 }
 0x2f6   :  { %v4907_v12 = vadd.f32 %v4906_v22, %v4905_v51  ;;  %v3234_v56 = vpop.permute.xlu1 %3233  ;;  %v2985_v58 = vadd.f32 %v2948_v11, %v2871_v19  ;;  %v5686_v3 = vpop.eup %5685  ;;  %v2737_v26 = vmul.f32 1.442695, %v2712_v43 }
 0x2f7   :  { %v3272_v13 = vadd.f32 %v3234_v56, %v7745_v44  ;;  %v3330_v45 = vpack.c.bf16 %v5686_v3, %v5684_v14  ;;  %v5688_v8 = vpop.eup %5687  ;;  %v7791_v44 = vmul.f32 %v7624_v57, %v3142_v55  ;;  %v7801_v14 = vmul.f32 %v7624_v57, %v3141_v23 }
 0x2f8   :  { %v2126_v52 = vadd.f32 %v4907_v12, %v4843_v5  ;;  %v3001_v30 = vmul.f32 -0.5, %v2985_v58  ;;  %5697 = vpow2.f32 %v2737_v26  ;;  %v4844_v34 = vpop.f32.mrb[4].mxu1  ;;  %v4908_v2 = vpop.f32.mrb[20].mxu0  ;;  %v3432_v23 = vmul.f32 %v3398_v62, %v3398_v62 }
 0x2f9   :  { %v3288_v19 = vmul.f32 -0.5, %v3272_v13  ;;  %5699 = vpow2.f32 %v3311_v54  ;;  %3352 = vperm.xlu1 %5390, %v3330_v45   ;;  %v4845_v49 = vpop.f32.mrb[5].mxu1  ;;  %v4909_v43 = vpop.f32.mrb[21].mxu0  ;;  %v3431_v26 = vmul.f32 %v3397_v46, %v3397_v46 }
 0x2fa   :  { %v2950_v0 = vpop.permute.xlu1 %2949  ;;  %v2185_v16 = vpack.c.bf16 %v2126_v52, %v2123_v59  ;;  %v5690_v55 = vpop.eup %5689  ;;  %v3027_v37 = vmul.f32 1.442695, %v3001_v30  ;;  %v4846_v7 = vadd.f32 %v4845_v49, %v4844_v34  ;;  %v4910_v22 = vadd.f32 %v4909_v43, %v4908_v2 }
 0x2fb   :  { %v3313_v4 = vmul.f32 1.442695, %v3288_v19  ;;  %v2986_v51 = vadd.f32 %v2950_v0, %v7755_v35  ;;  %v4847_v5 = vpop.f32.mrb[6].mxu1  ;;  %v4911_v11 = vpop.f32.mrb[22].mxu0  ;;  %v3043_v56 = vpack.c.bf16 %v5690_v55, %v5688_v8  ;;  %v7808_v59 = vmul.f32 %v7592_v1, %v2855_v60 }
 0x2fc   :  { %5209 = vmatprep.subr.bf16.mxu1 %v2185_v16  ;;  %v4848_v12 = vpop.f32.mrb[7].mxu1  ;;  %v5692_v54 = vpop.eup %5691  ;;  %v2131_v13 = vadd.f32 %v4910_v22, %v4846_v7  ;;  %v2534_v8 = vsub.f32 %v7786_v29, %v7574_v25  ;;  %v2533_v34 = vsub.f32 %v7796_v28, %v7574_v25  ;;  %v7817_v49 = vmul.f32 %v7612_v10, %v3432_v23 }
 0x2fd   :  { %5701 = vpow2.f32 %v3313_v4  ;;  %v3002_v27 = vmul.f32 -0.5, %v2986_v51  ;;  %v4849_v58 = vadd.f32 %v4848_v12, %v4847_v5  ;;  %v4912_v3 = vpop.f32.mrb[23].mxu0  ;;  %5210 = vmatpush3.bf16.msra.mxu1 %v2185_v16  ;;  %v3524_v35 = vpop.permute.xlu0 %3523  ;;  %3069 = vperm.xlu0 %5389, %v3043_v56   ;;  %v7820_v4 = vmul.f32 %v7612_v10, %v3431_v26 }
 0x2fe   :  { %v4913_v52 = vadd.f32 %v4912_v3, %v4911_v11  ;;  %v3526_v45 = vpop.permute.xlu1 %3525  ;;  %v3561_v30 = vadd.f32 %v3524_v35, %v7765_v20  ;;  %v5694_v60 = vpop.eup %5693  ;;  %5703 = vpow2.f32 %v3027_v37  ;;  %v3110_v51 = vsub.f32 %v7786_v29, %v7595_v24 }
 0x2ff   :  { %v3029_v19 = vmul.f32 1.442695, %v3002_v27  ;;  %v3562_v62 = vadd.f32 %v3526_v45, %v7759_v41  ;;  %v3619_v46 = vpack.c.bf16 %v5694_v60, %v5692_v54  ;;  %v5696_v41 = vpop.eup %5695  ;;  %v2568_v11 = vmul.f32 %v2534_v8, %v2534_v8 }
 0x300   :  { %v2134_v2 = vadd.f32 %v4913_v52, %v4849_v58  ;;  %v3577_v0 = vmul.f32 -0.5, %v3561_v30  ;;  %v4850_v55 = vpop.f32.mrb[8].mxu1  ;;  %v4914_v5 = vpop.f32.mrb[24].mxu0  ;;  %v2567_v58 = vmul.f32 %v2533_v34, %v2533_v34  ;;  %v3109_v3 = vsub.f32 %v7796_v28, %v7595_v24 }
 0x301   :  { %5705 = vpow2.f32 %v3029_v19  ;;  %v3578_v16 = vmul.f32 -0.5, %v3562_v62  ;;  %v2660_v20 = vpop.permute.xlu0 %2659  ;;  %3645 = vperm.xlu1 %5390, %v3619_v46   ;;  %v4851_v54 = vpop.f32.mrb[9].mxu1  ;;  %v3144_v60 = vmul.f32 %v3110_v51, %v3110_v51  ;;  %v7836_v51 = vld [vmem:[%s8072_s5 + $0x78] sm:$0xff] }
 0x302   :  { %v3603_v37 = vmul.f32 1.442695, %v3577_v0  ;;  %v2662_v7 = vpop.permute.xlu1 %2661  ;;  %v2697_v43 = vadd.f32 %v2660_v20, %v7777_v21  ;;  %v2186_v22 = vpack.c.bf16 %v2134_v2, %v2131_v13  ;;  %v5698_v12 = vpop.eup %5697  ;;  %v4852_v26 = vadd.f32 %v4851_v54, %v4850_v55 }
 0x303   :  { %v3605_v56 = vmul.f32 1.442695, %v3578_v16  ;;  %v2698_v23 = vadd.f32 %v2662_v7, %v7772_v63  ;;  %v4915_v27 = vpop.f32.mrb[25].mxu0  ;;  %v5700_v29 = vpop.eup %5699  ;;  %v2755_v63 = vpack.c.bf16 %v5698_v12, %v5696_v41 }
 0x304   :  { %5707 = vpow2.f32 %v3603_v37  ;;  %v2713_v35 = vmul.f32 -0.5, %v2697_v43  ;;  %v4916_v52 = vadd.f32 %v4915_v27, %v4914_v5  ;;  %v4853_v45 = vpop.f32.mrb[10].mxu1  ;;  %v4917_v21 = vpop.f32.mrb[26].mxu0  ;;  %5211 = vmatprep.subr.bf16.mxu1 %v2186_v22  ;;  %v7831_v37 = vmul.f32 %v7615_v31, %v2568_v11  ;;  %v7843_v11 = vld [vmem:[%s8072_s5 + $0x70] sm:$0xff] }
 0x305   :  { %5709 = vpow2.f32 %v3605_v56  ;;  %v2714_v13 = vmul.f32 -0.5, %v2698_v23  ;;  %v4854_v30 = vpop.f32.mrb[11].mxu1  ;;  %v4918_v8 = vpop.f32.mrb[27].mxu0  ;;  %5212 = vmatpush3.bf16.msra.mxu1 %v2186_v22  ;;  %2781 = vperm.xlu0 %5389, %v2755_v63   ;;  %v2824_v43 = vsub.f32 %v7836_v51, %v7550_v15  ;;  %v2823_v56 = vsub.f32 %v7843_v11, %v7550_v15 }
 0x306   :  { %v2739_v19 = vmul.f32 1.442695, %v2713_v35  ;;  %v2139_v62 = vadd.f32 %v4916_v52, %v4852_v26  ;;  %v4855_v34 = vadd.f32 %v4854_v30, %v4853_v45  ;;  %v4919_v2 = vadd.f32 %v4918_v8, %v4917_v21  ;;  %v3238_v28 = vpop.permute.xlu1 %3237  ;;  %v3236_v0 = vpop.permute.xlu0 %3235 }
 0x307   :  { %v5702_v46 = vpop.eup %5701  ;;  %v2741_v16 = vmul.f32 1.442695, %v2714_v13  ;;  %v3274_v20 = vadd.f32 %v3238_v28, %v7791_v44  ;;  %v3273_v55 = vadd.f32 %v3236_v0, %v7801_v14  ;;  %v7849_v35 = vmul.f32 %v7624_v57, %v3144_v60 }
 0x308   :  { %5711 = vpow2.f32 %v2739_v19  ;;  %v2142_v7 = vadd.f32 %v4919_v2, %v4855_v34  ;;  %v3331_v41 = vpack.c.bf16 %v5702_v46, %v5700_v29  ;;  %v5704_v5 = vpop.eup %5703  ;;  %v4856_v12 = vpop.f32.mrb[12].mxu1  ;;  %v2585_v29 = vmul.f32 %v7615_v31, %v2567_v58 }
 0x309   :  { %5713 = vpow2.f32 %v2741_v16  ;;  %v3290_v44 = vmul.f32 -0.5, %v3274_v20  ;;  %v3289_v22 = vmul.f32 -0.5, %v3273_v55  ;;  %v4920_v14 = vpop.f32.mrb[28].mxu0  ;;  %v3143_v26 = vmul.f32 %v3109_v3, %v3109_v3  ;;  %v4857_v8 = vpop.f32.mrb[13].mxu1 }
 0x30a   :  { %v2954_v23 = vpop.permute.xlu1 %2953  ;;  %3357 = vperm.xlu1 %5390, %v3331_v41   ;;  %v2952_v54 = vpop.permute.xlu0 %2951  ;;  %v2187_v27 = vpack.c.bf16 %v2142_v7, %v2139_v62  ;;  %v4858_v15 = vadd.f32 %v4857_v8, %v4856_v12  ;;  %v2858_v58 = vmul.f32 %v2824_v43, %v2824_v43  ;;  %v2857_v46 = vmul.f32 %v2823_v56, %v2823_v56 }
 0x30b   :  { %v5706_v52 = vpop.eup %5705  ;;  %v3317_v45 = vmul.f32 1.442695, %v3290_v44  ;;  %v3315_v21 = vmul.f32 1.442695, %v3289_v22  ;;  %v2988_v13 = vadd.f32 %v2954_v23, %v7804_v50  ;;  %v2987_v30 = vadd.f32 %v2952_v54, %v7808_v59  ;;  %v4921_v63 = vpop.f32.mrb[29].mxu0 }
 0x30c   :  { %v4922_v19 = vadd.f32 %v4921_v63, %v4920_v14  ;;  %v4859_v34 = vpop.f32.mrb[14].mxu1  ;;  %v4923_v2 = vpop.f32.mrb[30].mxu0  ;;  %5213 = vmatprep.subr.bf16.mxu1 %v2187_v27  ;;  %v3044_v62 = vpack.c.bf16 %v5706_v52, %v5704_v5  ;;  %v3161_v23 = vmul.f32 %v7624_v57, %v3143_v26  ;;  %v3400_v56 = vsub.f32 %v7836_v51, %v7570_v17 }
 0x30d   :  { %5715 = vpow2.f32 %v3317_v45  ;;  %v3004_v60 = vmul.f32 -0.5, %v2988_v13  ;;  %v3003_v28 = vmul.f32 -0.5, %v2987_v30  ;;  %v4860_v3 = vpop.f32.mrb[15].mxu1  ;;  %v4924_v0 = vpop.f32.mrb[31].mxu0  ;;  %5214 = vmatpush3.bf16.msra.mxu1 %v2187_v27  ;;  %v2875_v8 = vmul.f32 %v7592_v1, %v2857_v46 }
 0x30e   :  { %v5708_v16 = vpop.eup %5707  ;;  %5717 = vpow2.f32 %v3315_v21  ;;  %v2147_v50 = vadd.f32 %v4922_v19, %v4858_v15  ;;  %v4861_v59 = vadd.f32 %v4860_v3, %v4859_v34  ;;  %v4925_v20 = vadd.f32 %v4924_v0, %v4923_v2  ;;  %v3530_v55 = vpop.permute.xlu1 %3529  ;;  %3074 = vperm.xlu0 %5389, %v3044_v62  }
 0x30f   :  { %v3528_v7 = vpop.permute.xlu0 %3527  ;;  %v5710_v41 = vpop.eup %5709  ;;  %v3033_v44 = vmul.f32 1.442695, %v3004_v60  ;;  %v3031_v22 = vmul.f32 1.442695, %v3003_v28  ;;  %v3564_v43 = vadd.f32 %v3530_v55, %v7817_v49  ;;  %v2876_v21 = vmul.f32 %v7592_v1, %v2858_v58 }
 0x310   :  { %v3563_v5 = vadd.f32 %v3528_v7, %v7820_v4  ;;  %v2150_v12 = vadd.f32 %v4925_v20, %v4861_v59  ;;  %v3620_v14 = vpack.c.bf16 %v5710_v41, %v5708_v16  ;;  %v4862_v52 = vpop.f32.mrb[16].mxu1  ;;  %v4926_v45 = vpop.f32.mrb[32].mxu0  ;;  %v3399_v26 = vsub.f32 %v7843_v11, %v7570_v17 }
 0x311   :  { %5719 = vpow2.f32 %v3033_v44  ;;  %v3580_v54 = vmul.f32 -0.5, %v3564_v43  ;;  %v4863_v62 = vpop.f32.mrb[17].mxu1  ;;  %v4927_v60 = vpop.f32.mrb[33].mxu0  ;;  %v2536_v20 = vsub.f32 %v7836_v51, %v7574_v25 }
 0x312   :  { %v3579_v27 = vmul.f32 -0.5, %v3563_v5  ;;  %v5712_v13 = vpop.eup %5711  ;;  %5721 = vpow2.f32 %v3031_v22  ;;  %v2666_v30 = vpop.permute.xlu1 %2665  ;;  %3650 = vperm.xlu1 %5390, %v3620_v14   ;;  %v2188_v4 = vpack.c.bf16 %v2150_v12, %v2147_v50  ;;  %v4864_v58 = vadd.f32 %v4863_v62, %v4862_v52 }
 0x313   :  { %v2664_v49 = vpop.permute.xlu0 %2663  ;;  %v5714_v63 = vpop.eup %5713  ;;  %v3609_v15 = vmul.f32 1.442695, %v3580_v54  ;;  %v2700_v34 = vadd.f32 %v2666_v30, %v7831_v37  ;;  %v4928_v28 = vadd.f32 %v4927_v60, %v4926_v45  ;;  %v3434_v50 = vmul.f32 %v3400_v56, %v3400_v56 }
 0x314   :  { %v3607_v19 = vmul.f32 1.442695, %v3579_v27  ;;  %v2699_v2 = vadd.f32 %v2664_v49, %v2585_v29  ;;  %v4865_v3 = vpop.f32.mrb[18].mxu1  ;;  %v4929_v0 = vpop.f32.mrb[34].mxu0  ;;  %5215 = vmatprep.subr.bf16.mxu1 %v2188_v4  ;;  %v2756_v16 = vpack.c.bf16 %v5714_v63, %v5712_v13  ;;  %v3433_v27 = vmul.f32 %v3399_v26, %v3399_v26 }
 0x315   :  { %5723 = vpow2.f32 %v3609_v15  ;;  %v2716_v1 = vmul.f32 -0.5, %v2700_v34  ;;  %v4866_v59 = vpop.f32.mrb[19].mxu1  ;;  %v4930_v17 = vpop.f32.mrb[35].mxu0  ;;  %5216 = vmatpush3.bf16.msra.mxu1 %v2188_v4  ;;  %v2155_v37 = vadd.f32 %v4928_v28, %v4864_v58  ;;  %v3452_v54 = vmul.f32 %v7612_v10, %v3434_v50 }
 0x316   :  { %v2715_v46 = vmul.f32 -0.5, %v2699_v2  ;;  %5725 = vpow2.f32 %v3607_v19  ;;  %v4867_v29 = vadd.f32 %v4866_v59, %v4865_v3  ;;  %v4931_v55 = vadd.f32 %v4930_v17, %v4929_v0  ;;  %v3242_v7 = vpop.permute.xlu1 %3241  ;;  %2786 = vperm.xlu0 %5389, %v2756_v16  }
 0x317   :  { %v3240_v41 = vpop.permute.xlu0 %3239  ;;  %v5716_v44 = vpop.eup %5715  ;;  %v2745_v22 = vmul.f32 1.442695, %v2716_v1  ;;  %v3276_v5 = vadd.f32 %v3242_v7, %v7849_v35  ;;  %v2535_v52 = vsub.f32 %v7843_v11, %v7574_v25  ;;  %v2570_v15 = vmul.f32 %v2536_v20, %v2536_v20 }
 0x318   :  { %v2743_v43 = vmul.f32 1.442695, %v2715_v46  ;;  %v3275_v12 = vadd.f32 %v3240_v41, %v3161_v23  ;;  %v5718_v14 = vpop.eup %5717  ;;  %v2158_v56 = vadd.f32 %v4931_v55, %v4867_v29  ;;  %v3112_v35 = vsub.f32 %v7836_v51, %v7595_v24 }
 0x319   :  { %5727 = vpow2.f32 %v2745_v22  ;;  %v3292_v45 = vmul.f32 -0.5, %v3276_v5  ;;  %v3332_v30 = vpack.c.bf16 %v5716_v44, %v5718_v14  ;;  %v4868_v62 = vpop.f32.mrb[20].mxu1  ;;  %v3451_v58 = vmul.f32 %v7612_v10, %v3433_v27 }
 0x31a   :  { %v3291_v13 = vmul.f32 -0.5, %v3275_v12  ;;  %5729 = vpow2.f32 %v2743_v43  ;;  %v2958_v49 = vpop.permute.xlu1 %2957  ;;  %v2189_v63 = vpack.c.bf16 %v2158_v56, %v2155_v37  ;;  %v4869_v60 = vpop.f32.mrb[21].mxu1  ;;  %v2569_v28 = vmul.f32 %v2535_v52, %v2535_v52 }
 0x31b   :  { %v2956_v4 = vpop.permute.xlu0 %2955  ;;  %v5720_v23 = vpop.eup %5719  ;;  %v3321_v19 = vmul.f32 1.442695, %v3292_v45  ;;  %v2990_v2 = vadd.f32 %v2958_v49, %v2876_v21  ;;  %3362 = vperm.xlu1 %5390, %v3332_v30   ;;  %v3111_v3 = vsub.f32 %v7843_v11, %v7595_v24  ;;  %v4870_v51 = vadd.f32 %v4869_v60, %v4868_v62 }
 0x31c   :  { %v3319_v34 = vmul.f32 1.442695, %v3291_v13  ;;  %v2989_v26 = vadd.f32 %v2956_v4, %v2875_v8  ;;  %v5722_v25 = vpop.eup %5721  ;;  %5217 = vmatprep.subr.bf16.mxu1 %v2189_v63  ;;  %v4871_v50 = vpop.f32.mrb[22].mxu1  ;;  %v2588_v46 = vmul.f32 %v7615_v31, %v2570_v15  ;;  %v3146_v59 = vmul.f32 %v3112_v35, %v3112_v35 }
 0x31d   :  { %5731 = vpow2.f32 %v3321_v19  ;;  %v3006_v0 = vmul.f32 -0.5, %v2990_v2  ;;  %5218 = vmatpush3.bf16.msra.mxu1 %v2189_v63  ;;  %v4872_v21 = vpop.f32.mrb[23].mxu1  ;;  %v3045_v8 = vpack.c.bf16 %v5720_v23, %v5722_v25  ;;  %v4932_v24 = vpop.f32.mrb[36].mxu0  ;;  %v2587_v44 = vmul.f32 %v7615_v31, %v2569_v28 }
 0x31e   :  { %v3005_v16 = vmul.f32 -0.5, %v2989_v26  ;;  %5733 = vpow2.f32 %v3319_v34  ;;  %v3534_v1 = vpop.permute.xlu1 %3533  ;;  %v4873_v37 = vadd.f32 %v4872_v21, %v4871_v50  ;;  %v4933_v41 = vpop.f32.mrb[37].mxu0  ;;  %v3145_v22 = vmul.f32 %v3111_v3, %v3111_v3 }
 0x31f   :  { %v5724_v17 = vpop.eup %5723  ;;  %v3037_v20 = vmul.f32 1.442695, %v3006_v0  ;;  %v3566_v29 = vadd.f32 %v3534_v1, %v3452_v54  ;;  %v3532_v55 = vpop.permute.xlu0 %3531  ;;  %3079 = vperm.xlu0 %5389, %v3045_v8   ;;  %v4934_v5 = vadd.f32 %v4933_v41, %v4932_v24  ;;  %v3164_v54 = vmul.f32 %v7624_v57, %v3146_v59 }
 0x320   :  { %v3035_v10 = vmul.f32 1.442695, %v3005_v16  ;;  %v5726_v11 = vpop.eup %5725  ;;  %v3565_v7 = vadd.f32 %v3532_v55, %v3451_v58  ;;  %v4935_v12 = vpop.f32.mrb[38].mxu0  ;;  %v3163_v23 = vmul.f32 %v7624_v57, %v3145_v22 }
 0x321   :  { %5735 = vpow2.f32 %v3037_v20  ;;  %v3582_v43 = vmul.f32 -0.5, %v3566_v29  ;;  %v3621_v14 = vpack.c.bf16 %v5724_v17, %v5726_v11  ;;  %v4936_v27 = vpop.f32.mrb[39].mxu0  ;;  %v2163_v30 = vadd.f32 %v4934_v5, %v4870_v51 }
 0x322   :  { %5737 = vpow2.f32 %v3035_v10  ;;  %v3581_v56 = vmul.f32 -0.5, %v3565_v7  ;;  %v2670_v52 = vpop.permute.xlu1 %2669  ;;  %v4937_v49 = vadd.f32 %v4936_v27, %v4935_v12 }
 0x323   :  { %v5728_v45 = vpop.eup %5727  ;;  %v3613_v13 = vmul.f32 1.442695, %v3582_v43  ;;  %v2702_v4 = vadd.f32 %v2670_v52, %v2588_v46  ;;  %3655 = vperm.xlu1 %5390, %v3621_v14   ;;  %v2668_v63 = vpop.permute.xlu0 %2667  ;;  %v388_v14 = vmax.f32 %v7545_v36, 1.0 }
 0x324   :  { %v5730_v31 = vpop.eup %5729  ;;  %v3611_v15 = vmul.f32 1.442695, %v3581_v56  ;;  %v2701_v35 = vadd.f32 %v2668_v63, %v2587_v44  ;;  %v2166_v19 = vadd.f32 %v4937_v49, %v4873_v37  ;;  %v389_v49 = vmax.f32 %v7559_v18, 1.0 }
 0x325   :  { %5739 = vpow2.f32 %v3613_v13  ;;  %v2718_v34 = vmul.f32 -0.5, %v2702_v4  ;;  %v2757_v2 = vpack.c.bf16 %v5728_v45, %v5730_v31  ;;  %v390_v13 = vmax.f32 %v7585_v53, 1.0 }
 0x326   :  { %5741 = vpow2.f32 %v3611_v15  ;;  %v2717_v26 = vmul.f32 -0.5, %v2701_v35  ;;  %v3246_v62 = vpop.permute.xlu1 %3245  ;;  %v2190_v3 = vpack.c.bf16 %v2166_v19, %v2163_v30  ;;  %v392_v53 = vmax.f32 %v7605_v42, 1.0 }
 0x327   :  { %v5732_v25 = vpop.eup %5731  ;;  %v2749_v60 = vmul.f32 1.442695, %v2718_v34  ;;  %v3278_v58 = vadd.f32 %v3246_v62, %v3164_v54  ;;  %2791 = vperm.xlu0 %5389, %v2757_v2   ;;  %v3244_v28 = vpop.permute.xlu0 %3243  ;;  %v391_v54 = vmax.f32 %v7581_v61, 1.0  ;;  %v393_v61 = vmax.f32 %v7599_v38, 1.0 }
 0x328   :  { %v5734_v0 = vpop.eup %5733  ;;  %v2747_v16 = vmul.f32 1.442695, %v2717_v26  ;;  %v3277_v51 = vadd.f32 %v3244_v28, %v3163_v23  ;;  %5219 = vmatprep.subr.bf16.mxu1 %v2190_v3 }
 0x329   :  { %5743 = vpow2.f32 %v2749_v60  ;;  %v3294_v50 = vmul.f32 -0.5, %v3278_v58  ;;  %v3333_v57 = vpack.c.bf16 %v5732_v25, %v5734_v0  ;;  %5220 = vmatpush3.bf16.msra.mxu1 %v2190_v3  ;;  %v4874_v1 = vpop.f32.mrb[24].mxu1 }
 0x32a   :  { %5745 = vpow2.f32 %v2747_v16  ;;  %v3293_v21 = vmul.f32 -0.5, %v3277_v51  ;;  %v4875_v59 = vpop.f32.mrb[25].mxu1 }
 0x32b   :  { %v5736_v8 = vpop.eup %5735  ;;  %v3325_v46 = vmul.f32 1.442695, %v3294_v50  ;;  %3367 = vperm.xlu1 %5390, %v3333_v57   ;;  %v4876_v10 = vadd.f32 %v4875_v59, %v4874_v1  ;;  %v4877_v37 = vpop.f32.mrb[26].mxu1 }
 0x32c   :  { %v5738_v17 = vpop.eup %5737  ;;  %v3323_v20 = vmul.f32 1.442695, %v3293_v21  ;;  %v4878_v29 = vpop.f32.mrb[27].mxu1 }
 0x32d   :  { %5747 = vpow2.f32 %v3325_v46  ;;  %v3046_v55 = vpack.c.bf16 %v5736_v8, %v5738_v17  ;;  %v4879_v24 = vadd.f32 %v4878_v29, %v4877_v37  ;;  %v4938_v11 = vpop.f32.mrb[40].mxu0  ;;  %v5440_v37 = vld [vmem:[#allocation11 + $0xc8] sm:$0xff]  }
 0x32e   :  { %5749 = vpow2.f32 %v3323_v20  ;;  %v4939_v41 = vpop.f32.mrb[41].mxu0  ;;  %v5442_v29 = vld [vmem:[#allocation11 + $0x88] sm:$0xff]  }
 0x32f   :  { %v5740_v7 = vpop.eup %5739  ;;  %3084 = vperm.xlu0 %5389, %v3046_v55   ;;  %v4940_v22 = vadd.f32 %v4939_v41, %v4938_v11  ;;  %v4941_v43 = vpop.f32.mrb[42].mxu0  ;;  %5751 = vrcp.f32 %v388_v14  ;;  %v5444_v55 = vld [vmem:[#allocation11 + $0xd0] sm:$0xff]   ;;  %v5452_v11 = vld [vmem:[#allocation11 + $0xe0] sm:$0xff]   ;;  %v5456_v41 = vld [vmem:[#allocation11 + $0xe8] sm:$0xff]  }
 0x330   :  { %v5742_v44 = vpop.eup %5741  ;;  %v4942_v5 = vpop.f32.mrb[43].mxu0  ;;  %5753 = vrcp.f32 %v391_v54 }
 0x331   :  { %v3622_v12 = vpack.c.bf16 %v5740_v7, %v5742_v44  ;;  %v2171_v56 = vadd.f32 %v4940_v22, %v4876_v10  ;;  %v4943_v27 = vadd.f32 %v4942_v5, %v4941_v43  ;;  %5755 = vrcp.f32 %v390_v13  ;;  %v5454_v7 = vld [vmem:[#allocation11 + $0xa0] sm:$0xff]   ;;  %v5458_v44 = vld [vmem:[#allocation11 + $0xa8] sm:$0xff]   ;;  %v4727_v22 = vld [vmem:[#allocation10] ss:$0 sm:$0xff] }
 0x332   :  { %5757 = vrcp.f32 %v389_v49 }
 0x333   :  { %v5744_v52 = vpop.eup %5743  ;;  %3660 = vperm.xlu1 %5390, %v3622_v12   ;;  %v2174_v30 = vadd.f32 %v4943_v27, %v4879_v24  ;;  %5759 = vrcp.f32 %v393_v61  ;;  %v5446_v24 = vld [vmem:[#allocation11 + $0x90] sm:$0xff]  }
 0x334   :  { %v5746_v45 = vpop.eup %5745  ;;  %5761 = vrcp.f32 %v392_v53 }
 0x335   :  { %v2758_v4 = vpack.c.bf16 %v5744_v52, %v5746_v45  ;;  %v2191_v63 = vpack.c.bf16 %v2174_v30, %v2171_v56 }
 0x337   :  { %v5748_v31 = vpop.eup %5747  ;;  %2796 = vperm.xlu0 %5389, %v2758_v4   ;;  %5221 = vmatprep.subr.bf16.mxu1 %v2191_v63 }
 0x338   :  { %v5750_v15 = vpop.eup %5749  ;;  %5222 = vmatpush3.bf16.msra.mxu1 %v2191_v63 }
 0x339   :  { %v3334_v36 = vpack.c.bf16 %v5748_v31, %v5750_v15  ;;  %v4880_v35 = vpop.f32.mrb[28].mxu1  ;;  %v5752_v25 = vpop.eup %5751 }
 0x33a   :  { %v4881_v23 = vpop.f32.mrb[29].mxu1  ;;  %v5754_v28 = vpop.eup %5753  ;;  %v404_v21 = vmul.f32 %v5752_v25, %v7108_v48 }
 0x33b   :  { %3372 = vperm.xlu1 %5390, %v3334_v36   ;;  %v4882_v18 = vadd.f32 %v4881_v23, %v4880_v35  ;;  %v4883_v19 = vpop.f32.mrb[30].mxu1  ;;  %v5756_v0 = vpop.eup %5755  ;;  %v407_v57 = vmul.f32 %v5754_v28, %v7124_v47  ;;  %v5438_v47 = vld [vmem:[#allocation11 + $0x80] sm:$0xff]   ;;  %v5439_v28 = vld [vmem:[#allocation11 + $0x48] sm:$0xff]  }
 0x33c   :  { %v4884_v34 = vpop.f32.mrb[31].mxu1  ;;  %v5758_v51 = vpop.eup %5757  ;;  %v406_v50 = vmul.f32 %v5756_v0, %v7127_v39  ;;  %v5441_v0 = vld [vmem:[#allocation11 + $0x8] sm:$0xff]  }
 0x33d   :  { %v4885_v2 = vadd.f32 %v4884_v34, %v4883_v19  ;;  %v4944_v26 = vpop.f32.mrb[44].mxu0  ;;  %v405_v1 = vmul.f32 %v5758_v51, %v7114_v9  ;;  %v5760_v46 = vpop.eup %5759  ;;  %v5436_v9 = vld [vmem:[#allocation11 + $0xc0] sm:$0xff]   ;;  %v5447_v51 = vld [vmem:[#allocation11 + $0x58] sm:$0xff]  }
 0x33e   :  { %v4945_v62 = vpop.f32.mrb[45].mxu0  ;;  %v5762_v59 = vpop.eup %5761  ;;  %v7888_v17 = vpack.c.bf16 %v407_v57, %v406_v50  ;;  %v409_v39 = vmul.f32 %v5760_v46, %v7132_v32  ;;  %v5450_v32 = vld [vmem:[#allocation11 + $0x98] sm:$0xff]   ;;  %v8124_v46 = vld [vmem:[#allocation30_spill] sm:$0xff] }
 0x33f   :  { %v4946_v60 = vadd.f32 %v4945_v62, %v4944_v26  ;;  %v4947_v58 = vpop.f32.mrb[46].mxu0  ;;  %v7890_v20 = vpack.c.bf16 %v405_v1, %v404_v21  ;;  %v408_v10 = vmul.f32 %v5762_v59, %v7135_v40  ;;  %v5448_v40 = vld [vmem:[#allocation11 + $0xd8] sm:$0xff]   ;;  %v5453_v21 = vld [vmem:[#allocation11 + $0x20] sm:$0xff]   ;;  %v5455_v1 = vld [vmem:[#allocation11 + $0x68] sm:$0xff]  }
 0x340   :  { %v4948_v3 = vpop.f32.mrb[47].mxu0  ;;  %v8122_v50 = vld [vmem:[#allocation28_spill] sm:$0xff]  ;;  %v5457_v59 = vld [vmem:[#allocation11 + $0x28] sm:$0xff]  }
 0x341   :  { %v2179_v38 = vadd.f32 %v4946_v60, %v4882_v18  ;;  %v4949_v16 = vadd.f32 %v4948_v3, %v4947_v58  ;;  %v7896_v48 = vpack.c.bf16 %v409_v39, %v408_v10  ;;  %v5435_v60 = vld [vmem:[#allocation11 + $0x40] sm:$0xff]   ;;  %v8120_v3 = vld [vmem:[#allocation26_spill] sm:$0xff]  ;;  %v5449_v57 = vld [vmem:[#allocation11 + $0x18] sm:$0xff]  }
 0x342   :  { %v5437_v58 = vld [vmem:[#allocation11] sm:$0xff]   ;;  %v8125_v10 = vld [vmem:[#allocation31_spill] sm:$0xff] }
 0x343   :  { %v2182_v42 = vadd.f32 %v4949_v16, %v4885_v2  ;;  %v5445_v16 = vld [vmem:[#allocation11 + $0x10] sm:$0xff]  }
 0x344   :  { %v5459_v39 = vld [vmem:[#allocation11 + $0x70] sm:$0xff]  }
 0x345   :  { %v2192_v8 = vpack.c.bf16 %v2182_v42, %v2179_v38  ;;  %v5443_v38 = vld [vmem:[#allocation11 + $0x50] sm:$0xff]  }
 0x346   :  { %v8121_v42 = vld [vmem:[#allocation27_spill] sm:$0xff] }
 0x347   :  { %5223 = vmatprep.subr.bf16.mxu1 %v2192_v8 }
 0x348   :  { %5224 = vmatpush3.bf16.msra.mxu1 %v2192_v8  ;;  %v8123_v8 = vld [vmem:[#allocation29_spill] sm:$0xff] }
 0x349   :  { %5050 = vmatprep.subr.bf16.mxu1 %v5436_v9  ;;  %v5460_v9 = vld [vmem:[#allocation11 + $0xf0] sm:$0xff]  }
 0x34b   :  { %5226 = vmatmul.mubr.bf16.vlgmr.msra.gmra.mrb[32].mxu1 %v7890_v20 }
 0x34c   :  { %5229 = vmatprep.mubr.bf16.mxu1 %v7888_v17  ;;  %5051 = vmatpush3.bf16.msra.mxu1 %v5438_v47  ;;  %v5461_v47 = vld [vmem:[#allocation11 + $0x30] sm:$0xff]  }
 0x34d   :  { %5052 = vmatprep.subr.bf16.mxu1 %v5440_v37  ;;  %v5462_v37 = vld [vmem:[#allocation11 + $0xb0] sm:$0xff]  }
 0x350   :  { %5053 = vmatpush3.bf16.msra.mxu1 %v5442_v29  ;;  %v5463_v29 = vld [vmem:[#allocation11 + $0x78] sm:$0xff]  }
 0x351   :  { %5054 = vmatprep.subr.bf16.mxu1 %v5444_v55  ;;  %v5464_v55 = vld [vmem:[#allocation11 + $0xf8] sm:$0xff]  }
 0x353   :  { %5230 = vmatmul.mubr.bf16.gmra.mrb[36].mxu1 %v7896_v48 }
 0x354   :  { %5055 = vmatpush3.bf16.msra.mxu1 %v5446_v24  ;;  %v5465_v24 = vld [vmem:[#allocation11 + $0x38] sm:$0xff]  }
 0x355   :  { %5056 = vmatprep.subr.bf16.mxu1 %v5448_v40  ;;  %v5466_v40 = vld [vmem:[#allocation11 + $0xb8] sm:$0xff]  }
 0x358   :  { %5057 = vmatpush3.bf16.msra.mxu1 %v5450_v32  ;;  %v8126_v32 = vmov 0.0  }
 0x359   :  { %5058 = vmatprep.subr.bf16.mxu1 %v5452_v11  ;;  %v5467_v11 = vld [vmem:[%s8080_s13] sm:$0xff]  }
 0x35c   :  { %5059 = vmatpush3.bf16.msra.mxu1 %v5454_v7  ;;  %v3050_v7 = vpop.permute.xlu0 %3049 }
 0x35d   :  { %5060 = vmatprep.subr.bf16.mxu1 %v5456_v41  ;;  %v3626_v41 = vpop.permute.xlu1 %3625 }
 0x360   :  { %5061 = vmatpush3.bf16.msra.mxu1 %v5458_v44 }
 0x361   :  { %5062 = vmatprep.subr.bf16.mxu1 %v5460_v9 }
 0x364   :  { %5063 = vmatpush3.bf16.msra.mxu1 %v5462_v37 }
 0x365   :  { %5064 = vmatprep.subr.bf16.mxu1 %v5464_v55  ;;  %v5472_v55 = vld [vmem:[%s8080_s13 + $0x28] sm:$0xff]  }
 0x368   :  { %5065 = vmatpush3.bf16.msra.mxu1 %v5466_v40 }
 0x369   :  { %5305 = vmatprep.subr.bf16.mxu1 %v8126_v32 }
 0x41e   :  { %v5227_v43 = vpop.f32.mrb[32].mxu1 }
 0x41f   :  { %v2396_v5 = vadd.f32 %v5227_v43, %v4727_v22  ;;  %v2356_v12 = vpop.f32.mrb[33].mxu1  ;;  %v2762_v43 = vpop.permute.xlu0 %2761 }
 0x420   :  { %v2394_v14 = vadd.f32 %v4727_v22, %v2356_v12  ;;  %v5228_v56 = vpop.f32.mrb[34].mxu1  ;;  %v3338_v12 = vpop.permute.xlu1 %3337 }
 0x421   :  { %v2397_v27 = vadd.f32 %v5228_v56, %v4727_v22  ;;  %v2359_v52 = vpop.f32.mrb[35].mxu1  ;;  %v2404_v45 = vmax.f32 %v2396_v5, 0.0 }
 0x422   :  { %v2395_v54 = vadd.f32 %v4727_v22, %v2359_v52  ;;  %v2402_v30 = vmax.f32 %v2394_v14, 0.0 }
 0x423   :  { %v2405_v13 = vmax.f32 %v2397_v27, 0.0  ;;  %v3055_v52 = vpop.permute.xlu0 %3054 }
 0x424   :  { %v2403_v49 = vmax.f32 %v2395_v54, 0.0 }
 0x425   :  { %v7899_v4 = vpack.c.bf16 %v2405_v13, %v2404_v45 }
 0x426   :  { %v7901_v63 = vpack.c.bf16 %v2403_v49, %v2402_v30  ;;  %v5231_v31 = vpop.f32.mrb[36].mxu1  ;;  %v3631_v49 = vpop.permute.xlu1 %3630 }
 0x427   :  { %v2400_v15 = vadd.f32 %v5231_v31, %v4727_v22  ;;  %v2372_v36 = vpop.f32.mrb[37].mxu1 }
 0x428   :  { %v2398_v61 = vadd.f32 %v4727_v22, %v2372_v36  ;;  %v5232_v35 = vpop.f32.mrb[38].mxu1  ;;  %5233 = vmatprep.subr.bf16.mxu0 %v7901_v63 }
 0x429   :  { %v2401_v53 = vadd.f32 %v5232_v35, %v4727_v22  ;;  %v2375_v23 = vpop.f32.mrb[39].mxu1  ;;  %5234 = vmatpush3.bf16.msra.mxu0 %v7901_v63  ;;  %v2408_v19 = vmax.f32 %v2400_v15, 0.0 }
 0x42a   :  { %v2399_v18 = vadd.f32 %v4727_v22, %v2375_v23  ;;  %5235 = vmatprep.subr.bf16.mxu0 %v7899_v4  ;;  %v2406_v2 = vmax.f32 %v2398_v61, 0.0  ;;  %v5468_v61 = vld [vmem:[%s8080_s13 + $0x8] sm:$0xff]  }
 0x42b   :  { %v2409_v34 = vmax.f32 %v2401_v53, 0.0  ;;  %v2767_v53 = vpop.permute.xlu0 %2766 }
 0x42c   :  { %v2407_v26 = vmax.f32 %v2399_v18, 0.0  ;;  %v3343_v18 = vpop.permute.xlu1 %3342 }
 0x42d   :  { %v7906_v62 = vpack.c.bf16 %v2409_v34, %v2408_v19  ;;  %5236 = vmatpush3.bf16.msra.mxu0 %v7899_v4 }
 0x42e   :  { %v7909_v25 = vpack.c.bf16 %v2407_v26, %v2406_v2  ;;  %v5469_v26 = vld [vmem:[%s8080_s13 + $0x10] sm:$0xff]  }
 0x430   :  { %5237 = vmatprep.subr.bf16.mxu0 %v7909_v25 }
 0x431   :  { %5238 = vmatpush3.bf16.msra.mxu0 %v7909_v25 }
 0x432   :  { %5239 = vmatprep.subr.bf16.mxu0 %v7906_v62 }
 0x435   :  { %5240 = vmatpush3.bf16.msra.mxu0 %v7906_v62 }
 0x436   :  { %4986 = vmatprep.subr.bf16.mxu0 %v5435_v60  ;;  %v3060_v60 = vpop.permute.xlu0 %3059 }
 0x438   :  { %5242 = vmatmul.mubr.msk.bf16.vlgmr.msra.gmra.mrb[48].mxu0 %vm422_vm4, %v6681_v6  ;;  %v5451_v6 = vld [vmem:[#allocation11 + $0x60] sm:$0xff]  }
 0x439   :  { %5245 = vmatprep.mubr.msk.bf16.mxu0 %vm422_vm4, %v8120_v3  ;;  %4987 = vmatpush3.bf16.msra.mxu0 %v5437_v58  ;;  %v3636_v58 = vpop.permute.xlu1 %3635 }
 0x43a   :  { %4988 = vmatprep.subr.bf16.mxu0 %v5439_v28 }
 0x43d   :  { %4989 = vmatpush3.bf16.msra.mxu0 %v5441_v0 }
 0x43e   :  { %4990 = vmatprep.subr.bf16.mxu0 %v5443_v38 }
 0x440   :  { %5246 = vmatmul.mubr.msk.bf16.gmra.mrb[52].mxu0 %vm422_vm4, %v8121_v42 }
 0x441   :  { %5249 = vmatprep.mubr.msk.bf16.mxu0 %vm422_vm4, %v8122_v50  ;;  %4991 = vmatpush3.bf16.msra.mxu0 %v5445_v16  ;;  %v2772_v50 = vpop.permute.xlu0 %2771 }
 0x442   :  { %4992 = vmatprep.subr.bf16.mxu0 %v5447_v51  ;;  %v5470_v51 = vld [vmem:[%s8080_s13 + $0x18] sm:$0xff]  }
 0x445   :  { %4993 = vmatpush3.bf16.msra.mxu0 %v5449_v57 }
 0x446   :  { %4994 = vmatprep.subr.bf16.mxu0 %v5451_v6  ;;  %v3348_v6 = vpop.permute.xlu1 %3347 }
 0x448   :  { %5250 = vmatmul.mubr.msk.bf16.gmra.mrb[56].mxu0 %vm422_vm4, %v8123_v8 }
 0x449   :  { %5253 = vmatprep.mubr.msk.bf16.mxu0 %vm422_vm4, %v8124_v46  ;;  %4995 = vmatpush3.bf16.msra.mxu0 %v5453_v21  ;;  %v5471_v46 = vld [vmem:[%s8080_s13 + $0x20] sm:$0xff]  }
 0x44a   :  { %4996 = vmatprep.subr.bf16.mxu0 %v5455_v1 }
 0x44d   :  { %4997 = vmatpush3.bf16.msra.mxu0 %v5457_v59  ;;  %v3065_v59 = vpop.permute.xlu0 %3064 }
 0x44e   :  { %4998 = vmatprep.subr.bf16.mxu0 %v5459_v39 }
 0x450   :  { %5254 = vmatmul.mubr.msk.bf16.gmra.mrb[60].mxu0 %vm422_vm4, %v8125_v10  ;;  %v3641_v10 = vpop.permute.xlu1 %3640 }
 0x451   :  { %4999 = vmatpush3.bf16.msra.mxu0 %v5461_v47  ;;  %v2777_v40 = vpop.permute.xlu0 %2776 }
 0x452   :  { %5000 = vmatprep.subr.bf16.mxu0 %v5463_v29 }
 0x455   :  { %5001 = vmatpush3.bf16.msra.mxu0 %v5465_v24 }
 0x456   :  { %5257 = vmatprep.subr.bf16.mxu0 %v5467_v11 }
 0x50b   :  { %v5243_v44 = vpop.f32.mrb[48].mxu0 }
 0x50c   :  { %v2448_v22 = vpop.f32.mrb[49].mxu0 }
 0x50d   :  { %v5244_v5 = vpop.f32.mrb[50].mxu0 }
 0x50e   :  { %v2512_v14 = vpack.c.bf16 %v5244_v5, %v5243_v44  ;;  %v2451_v56 = vpop.f32.mrb[51].mxu0  ;;  %v3070_v5 = vpop.permute.xlu0 %3069 }
 0x50f   :  { %v2511_v27 = vpack.c.bf16 %v2451_v56, %v2448_v22 }
 0x510   :  { %v3088_v15 = vmul.bf16 %v3055_v52, %v2512_v14  ;;  %v3664_v36 = vmul.bf16 %v3631_v49, %v2512_v14  ;;  %v2800_v28 = vmul.bf16 %v2767_v53, %v2512_v14  ;;  %v3376_v3 = vmul.bf16 %v3343_v18, %v2512_v14 }
 0x511   :  { %v2799_v54 = vmul.bf16 %v2762_v43, %v2511_v27  ;;  %v3375_v45 = vmul.bf16 %v3338_v12, %v2511_v27  ;;  %v3087_v13 = vmul.bf16 %v3050_v7, %v2511_v27  ;;  %v3663_v30 = vmul.bf16 %v3626_v41, %v2511_v27  ;;  %v3353_v7 = vpop.permute.xlu1 %3352  ;;  %v5473_v43 = vld [vmem:[%s8080_s13 + $0x30] sm:$0xff]  }
 0x513   :  { %v5247_v31 = vpop.f32.mrb[52].mxu0  ;;  %3959 = vmatprep.mubr.bf16.mxu0 %v3087_v13  ;;  %4056 = vmatprep.mubr.bf16.mxu1 %v3663_v30 }
 0x514   :  { %v2464_v35 = vpop.f32.mrb[53].mxu0  ;;  %3960 = vmatmul.mubr.bf16.vlgmr.msra.gmra.mrb[64].mxu0 %v2799_v54  ;;  %4057 = vmatmul.mubr.bf16.vlgmr.msra.gmra.mrb[40].mxu1 %v3375_v45  ;;  %v5474_v54 = vld [vmem:[%s8080_s13 + $0x38] sm:$0xff]   ;;  %v2782_v45 = vpop.permute.xlu0 %2781 }
 0x515   :  { %v5248_v23 = vpop.f32.mrb[54].mxu0  ;;  %3967 = vmatprep.mubr.bf16.mxu0 %v3088_v15  ;;  %4064 = vmatprep.mubr.bf16.mxu1 %v3664_v36  ;;  %v3646_v12 = vpop.permute.xlu1 %3645 }
 0x516   :  { %v7936_v19 = vpack.c.bf16 %v5248_v23, %v5247_v31  ;;  %v2467_v34 = vpop.f32.mrb[55].mxu0  ;;  %5258 = vmatpush3.bf16.msra.mxu0 %v5467_v11 }
 0x517   :  { %v2513_v2 = vpack.c.bf16 %v2467_v34, %v2464_v35  ;;  %5259 = vmatprep.subr.bf16.mxu0 %v5468_v61 }
 0x518   :  { %v3090_v37 = vmul.bf16 %v3065_v59, %v7936_v19  ;;  %v3666_v29 = vmul.bf16 %v3641_v10, %v7936_v19  ;;  %v2802_v14 = vmul.bf16 %v2777_v40, %v7936_v19  ;;  %v3378_v56 = vmul.bf16 %v3353_v7, %v7936_v19  ;;  %v3075_v30 = vpop.permute.xlu0 %3074 }
 0x519   :  { %v3089_v38 = vmul.bf16 %v3060_v60, %v2513_v2  ;;  %v3665_v16 = vmul.bf16 %v3636_v58, %v2513_v2  ;;  %v2801_v39 = vmul.bf16 %v2772_v50, %v2513_v2  ;;  %v3377_v9 = vmul.bf16 %v3348_v6, %v2513_v2  ;;  %v3358_v13 = vpop.permute.xlu1 %3357 }
 0x51a   :  { %5260 = vmatpush3.bf16.msra.mxu0 %v5468_v61 }
 0x51b   :  { %v5251_v0 = vpop.f32.mrb[56].mxu0  ;;  %5261 = vmatprep.subr.bf16.mxu0 %v5469_v26 }
 0x51c   :  { %v2480_v42 = vpop.f32.mrb[57].mxu0  ;;  %3968 = vmatmul.mubr.bf16.gmra.mrb[68].mxu0 %v2800_v28  ;;  %4065 = vmatmul.mubr.bf16.gmra.mrb[44].mxu1 %v3376_v3  ;;  %v2787_v35 = vpop.permute.xlu0 %2786 }
 0x51d   :  { %v5252_v57 = vpop.f32.mrb[58].mxu0  ;;  %3975 = vmatprep.mubr.bf16.mxu0 %v3089_v38  ;;  %4072 = vmatprep.mubr.bf16.mxu1 %v3665_v16  ;;  %v3651_v49 = vpop.permute.xlu1 %3650 }
 0x51e   :  { %v7944_v21 = vpack.c.bf16 %v5252_v57, %v5251_v0  ;;  %v2483_v1 = vpop.f32.mrb[59].mxu0  ;;  %5262 = vmatpush3.bf16.msra.mxu0 %v5469_v26 }
 0x51f   :  { %v2515_v8 = vpack.c.bf16 %v2483_v1, %v2480_v42  ;;  %5263 = vmatprep.subr.bf16.mxu0 %v5470_v51  ;;  %v8127_v1 = vld [vmem:[#allocation32_spill] sm:$0xff] }
 0x520   :  { %v3092_v36 = vmul.bf16 %v3075_v30, %v7944_v21  ;;  %v3668_v61 = vmul.bf16 %v3651_v49, %v7944_v21  ;;  %v3080_v23 = vpop.permute.xlu0 %3079  ;;  %v2804_v19 = vmul.bf16 %v2787_v35, %v7944_v21 }
 0x521   :  { %v3091_v27 = vmul.bf16 %v3070_v5, %v2515_v8  ;;  %v3667_v52 = vmul.bf16 %v3646_v12, %v2515_v8  ;;  %v2803_v31 = vmul.bf16 %v2782_v45, %v2515_v8  ;;  %v3379_v15 = vmul.bf16 %v3358_v13, %v2515_v8  ;;  %v3363_v53 = vpop.permute.xlu1 %3362 }
 0x522   :  { %5264 = vmatpush3.bf16.msra.mxu0 %v5470_v51  ;;  %v3380_v34 = vmul.bf16 %v3363_v53, %v7944_v21  ;;  %v4659_v21 = vld [vmem:[%s8075_s8] ss:$0 sm:$0xff] }
 0x523   :  { %v5255_v47 = vpop.f32.mrb[60].mxu0  ;;  %5265 = vmatprep.subr.bf16.mxu0 %v5471_v46  ;;  %vm419_vm10 = vcmp.eq.s32.totalorder %v8127_v1, %v4659_v21 }
 0x524   :  { %v2496_v24 = vpop.f32.mrb[61].mxu0  ;;  %3976 = vmatmul.mubr.bf16.gmra.mrb[72].mxu0 %v2801_v39  ;;  %4073 = vmatmul.mubr.bf16.gmra.mrb[48].mxu1 %v3377_v9  ;;  %v2792_v60 = vpop.permute.xlu0 %2791  ;;  %v7982_v8 = vsel %vm419_vm10, 1.0, %v8126_v32 }
 0x525   :  { %v5256_v11 = vpop.f32.mrb[62].mxu0  ;;  %3983 = vmatprep.mubr.bf16.mxu0 %v3090_v37  ;;  %4080 = vmatprep.mubr.bf16.mxu1 %v3666_v29  ;;  %v3656_v18 = vpop.permute.xlu1 %3655 }
 0x526   :  { %v7954_v41 = vpack.c.bf16 %v5256_v11, %v5255_v47  ;;  %v2499_v44 = vpop.f32.mrb[63].mxu0  ;;  %5266 = vmatpush3.bf16.msra.mxu0 %v5471_v46 }
 0x527   :  { %v2517_v22 = vpack.c.bf16 %v2499_v44, %v2496_v24  ;;  %5267 = vmatprep.subr.bf16.mxu0 %v5472_v55 }
 0x528   :  { %v3085_v28 = vpop.permute.xlu0 %3084 }
 0x529   :  { %v3093_v2 = vmul.bf16 %v3080_v23, %v2517_v22  ;;  %v3669_v26 = vmul.bf16 %v3656_v18, %v2517_v22  ;;  %v3368_v58 = vpop.permute.xlu1 %3367  ;;  %v2805_v0 = vmul.bf16 %v2792_v60, %v2517_v22  ;;  %v3094_v16 = vmul.bf16 %v3085_v28, %v7954_v41 }
 0x52a   :  { %5268 = vmatpush3.bf16.msra.mxu0 %v5472_v55  ;;  %v3381_v38 = vmul.bf16 %v3368_v58, %v2517_v22 }
 0x52b   :  { %5269 = vmatprep.subr.bf16.mxu0 %v5473_v43 }
 0x52c   :  { %3984 = vmatmul.mubr.bf16.gmra.mrb[76].mxu0 %v2802_v14  ;;  %4081 = vmatmul.mubr.bf16.gmra.mrb[52].mxu1 %v3378_v56  ;;  %v2797_v42 = vpop.permute.xlu0 %2796 }
 0x52d   :  { %3991 = vmatprep.mubr.bf16.mxu0 %v3091_v27  ;;  %4088 = vmatprep.mubr.bf16.mxu1 %v3667_v52  ;;  %v3661_v3 = vpop.permute.xlu1 %3660  ;;  %v2806_v57 = vmul.bf16 %v2797_v42, %v7954_v41 }
 0x52e   :  { %5270 = vmatpush3.bf16.msra.mxu0 %v5473_v43  ;;  %v3670_v51 = vmul.bf16 %v3661_v3, %v7954_v41 }
 0x52f   :  { %5271 = vmatprep.subr.bf16.mxu0 %v5474_v54 }
 0x531   :  { %v3373_v50 = vpop.permute.xlu1 %3372 }
 0x532   :  { %5272 = vmatpush3.bf16.msra.mxu0 %v5474_v54  ;;  %v3382_v6 = vmul.bf16 %v3373_v50, %v7954_v41 }
 0x534   :  { %3992 = vmatmul.mubr.bf16.gmra.mrb[80].mxu0 %v2803_v31  ;;  %4089 = vmatmul.mubr.bf16.gmra.mrb[56].mxu1 %v3379_v15 }
 0x535   :  { %3999 = vmatprep.mubr.bf16.mxu0 %v3092_v36  ;;  %4096 = vmatprep.mubr.bf16.mxu1 %v3668_v61 }
 0x53c   :  { %4000 = vmatmul.mubr.bf16.gmra.mrb[84].mxu0 %v2804_v19  ;;  %4097 = vmatmul.mubr.bf16.gmra.mrb[60].mxu1 %v3380_v34 }
 0x53d   :  { %4007 = vmatprep.mubr.bf16.mxu0 %v3093_v2  ;;  %4104 = vmatprep.mubr.bf16.mxu1 %v3669_v26 }
 0x544   :  { %4008 = vmatmul.mubr.bf16.gmra.mrb[88].mxu0 %v2805_v0  ;;  %4105 = vmatmul.mubr.bf16.gmra.mrb[64].mxu1 %v3381_v38 }
 0x545   :  { %4015 = vmatprep.mubr.bf16.mxu0 %v3094_v16  ;;  %4112 = vmatprep.mubr.bf16.mxu1 %v3670_v51 }
 0x54c   :  { %4016 = vmatmul.mubr.bf16.gmra.mrb[92].mxu0 %v2806_v57  ;;  %4113 = vmatmul.mubr.bf16.gmra.mrb[68].mxu1 %v3382_v6 }
 0x54d   :  { %5273 = vmatprep.mubr.bf16.mxu0 %v7901_v63  ;;  %v423_v63 = vsel %vm422_vm4, %v7982_v8, 0.0  ;;  %5313 = vmatprep.mubr.msk.bf16.mxu1 %vm6017_vm11, %v8126_v32 }
 0x54e   :  { %424 = vadd.xlane.f32.xlu0 %v423_v63 }
 0x554   :  { %5274 = vmatmul.mubr.bf16.vlgmr.msra.gmra.mrb[96].mxu0 %v7899_v4 }
 0x555   :  { %5277 = vmatprep.mubr.bf16.mxu0 %v7909_v25 }
 0x55c   :  { %5278 = vmatmul.mubr.bf16.gmra.mrb[100].mxu0 %v7906_v62 }
 0x55d   :  { %5297 = vmatprep.mubr.bf16.mxu0 %v7678_v33 }
 0x5e7   :  { %v5002_v4 = vpop.f32.mrb[64].mxu0  ;;  %v5066_v46 = vpop.f32.mrb[40].mxu1 }
 0x5e8   :  { %v5003_v25 = vpop.f32.mrb[65].mxu0  ;;  %v5067_v59 = vpop.f32.mrb[41].mxu1 }
 0x5e9   :  { %v5004_v62 = vadd.f32 %v5003_v25, %v5002_v4  ;;  %v5068_v10 = vadd.f32 %v5067_v59, %v5066_v46  ;;  %v5005_v33 = vpop.f32.mrb[66].mxu0  ;;  %v5069_v39 = vpop.f32.mrb[42].mxu1 }
 0x5ea   :  { %v5006_v9 = vpop.f32.mrb[67].mxu0  ;;  %v5070_v47 = vpop.f32.mrb[43].mxu1 }
 0x5eb   :  { %v4059_v37 = vadd.f32 %v5068_v10, %v5004_v62  ;;  %v5007_v29 = vadd.f32 %v5006_v9, %v5005_v33  ;;  %v5071_v55 = vadd.f32 %v5070_v47, %v5069_v39 }
 0x5ed   :  { %v4062_v24 = vadd.f32 %v5071_v55, %v5007_v29 }
 0x5ef   :  { %v5008_v40 = vpop.f32.mrb[68].mxu0  ;;  %v5072_v11 = vpop.f32.mrb[44].mxu1  ;;  %v4121_v7 = vpack.c.bf16 %v4062_v24, %v4059_v37 }
 0x5f0   :  { %v5009_v41 = vpop.f32.mrb[69].mxu0  ;;  %v5073_v44 = vpop.f32.mrb[45].mxu1 }
 0x5f1   :  { %v5010_v22 = vadd.f32 %v5009_v41, %v5008_v40  ;;  %v5074_v43 = vadd.f32 %v5073_v44, %v5072_v11  ;;  %v5011_v5 = vpop.f32.mrb[70].mxu0  ;;  %v5075_v12 = vpop.f32.mrb[46].mxu1  ;;  %5281 = vmatprep.subr.bf16.mxu0 %v4121_v7 }
 0x5f2   :  { %v5012_v14 = vpop.f32.mrb[71].mxu0  ;;  %v5076_v56 = vpop.f32.mrb[47].mxu1  ;;  %5282 = vmatpush3.bf16.msra.mxu0 %v4121_v7 }
 0x5f3   :  { %v4067_v27 = vadd.f32 %v5074_v43, %v5010_v22  ;;  %v5013_v52 = vadd.f32 %v5012_v14, %v5011_v5  ;;  %v5077_v54 = vadd.f32 %v5076_v56, %v5075_v12 }
 0x5f5   :  { %v4070_v45 = vadd.f32 %v5077_v54, %v5013_v52 }
 0x5f7   :  { %v5014_v13 = vpop.f32.mrb[72].mxu0  ;;  %v5078_v30 = vpop.f32.mrb[48].mxu1  ;;  %v4122_v49 = vpack.c.bf16 %v4070_v45, %v4067_v27 }
 0x5f8   :  { %v5015_v31 = vpop.f32.mrb[73].mxu0  ;;  %v5079_v15 = vpop.f32.mrb[49].mxu1 }
 0x5f9   :  { %v5016_v36 = vadd.f32 %v5015_v31, %v5014_v13  ;;  %v5080_v61 = vadd.f32 %v5079_v15, %v5078_v30  ;;  %v5017_v35 = vpop.f32.mrb[74].mxu0  ;;  %v5081_v53 = vpop.f32.mrb[50].mxu1  ;;  %5283 = vmatprep.subr.bf16.mxu0 %v4122_v49 }
 0x5fa   :  { %v5018_v23 = vpop.f32.mrb[75].mxu0  ;;  %v5082_v18 = vpop.f32.mrb[51].mxu1  ;;  %5284 = vmatpush3.bf16.msra.mxu0 %v4122_v49 }
 0x5fb   :  { %v4075_v19 = vadd.f32 %v5080_v61, %v5016_v36  ;;  %v5019_v34 = vadd.f32 %v5018_v23, %v5017_v35  ;;  %v5083_v2 = vadd.f32 %v5082_v18, %v5081_v53 }
 0x5fd   :  { %v4078_v26 = vadd.f32 %v5083_v2, %v5019_v34 }
 0x5ff   :  { %v5020_v60 = vpop.f32.mrb[76].mxu0  ;;  %v5084_v58 = vpop.f32.mrb[52].mxu1  ;;  %v4123_v28 = vpack.c.bf16 %v4078_v26, %v4075_v19 }
 0x600   :  { %v5021_v3 = vpop.f32.mrb[77].mxu0  ;;  %v5085_v0 = vpop.f32.mrb[53].mxu1 }
 0x601   :  { %v5022_v38 = vadd.f32 %v5021_v3, %v5020_v60  ;;  %v5086_v16 = vadd.f32 %v5085_v0, %v5084_v58  ;;  %v5023_v51 = vpop.f32.mrb[78].mxu0  ;;  %v5087_v42 = vpop.f32.mrb[54].mxu1  ;;  %5285 = vmatprep.subr.bf16.mxu0 %v4123_v28 }
 0x602   :  { %v5024_v50 = vpop.f32.mrb[79].mxu0  ;;  %v5088_v57 = vpop.f32.mrb[55].mxu1  ;;  %5286 = vmatpush3.bf16.msra.mxu0 %v4123_v28 }
 0x603   :  { %v4083_v6 = vadd.f32 %v5086_v16, %v5022_v38  ;;  %v5025_v21 = vadd.f32 %v5024_v50, %v5023_v51  ;;  %v5089_v1 = vadd.f32 %v5088_v57, %v5087_v42 }
 0x605   :  { %v4086_v63 = vadd.f32 %v5089_v1, %v5025_v21 }
 0x607   :  { %v5026_v4 = vpop.f32.mrb[80].mxu0  ;;  %v5090_v46 = vpop.f32.mrb[56].mxu1  ;;  %v4124_v25 = vpack.c.bf16 %v4086_v63, %v4083_v6 }
 0x608   :  { %v5027_v59 = vpop.f32.mrb[81].mxu0  ;;  %v5091_v62 = vpop.f32.mrb[57].mxu1 }
 0x609   :  { %v5028_v10 = vadd.f32 %v5027_v59, %v5026_v4  ;;  %v5092_v33 = vadd.f32 %v5091_v62, %v5090_v46  ;;  %v5029_v39 = vpop.f32.mrb[82].mxu0  ;;  %v5093_v9 = vpop.f32.mrb[58].mxu1  ;;  %5287 = vmatprep.subr.bf16.mxu0 %v4124_v25 }
 0x60a   :  { %v5030_v47 = vpop.f32.mrb[83].mxu0  ;;  %v5094_v37 = vpop.f32.mrb[59].mxu1  ;;  %5288 = vmatpush3.bf16.msra.mxu0 %v4124_v25 }
 0x60b   :  { %v4091_v29 = vadd.f32 %v5092_v33, %v5028_v10  ;;  %v5031_v55 = vadd.f32 %v5030_v47, %v5029_v39  ;;  %v5095_v24 = vadd.f32 %v5094_v37, %v5093_v9  ;;  %v425_v25 = vpop.xlane.xlu0 %424  ;;  %v4790_v10 = vld [vmem:[#allocation13] ss:$0 sm:$0xff] }
 0x60c   :  { %v426_v59 = vmax.f32 %v425_v25, 1.0 }
 0x60d   :  { %v4094_v40 = vadd.f32 %v5095_v24, %v5031_v55 }
 0x60e   :  { %5763 = vrcp.f32 %v426_v59 }
 0x60f   :  { %v5032_v11 = vpop.f32.mrb[84].mxu0  ;;  %v5096_v7 = vpop.f32.mrb[60].mxu1  ;;  %v4125_v41 = vpack.c.bf16 %v4094_v40, %v4091_v29 }
 0x610   :  { %v5033_v44 = vpop.f32.mrb[85].mxu0  ;;  %v5097_v22 = vpop.f32.mrb[61].mxu1 }
 0x611   :  { %v5034_v43 = vadd.f32 %v5033_v44, %v5032_v11  ;;  %v5098_v5 = vadd.f32 %v5097_v22, %v5096_v7  ;;  %v5035_v12 = vpop.f32.mrb[86].mxu0  ;;  %v5099_v14 = vpop.f32.mrb[62].mxu1  ;;  %5289 = vmatprep.subr.bf16.mxu0 %v4125_v41 }
 0x612   :  { %v5036_v56 = vpop.f32.mrb[87].mxu0  ;;  %v5100_v27 = vpop.f32.mrb[63].mxu1  ;;  %5290 = vmatpush3.bf16.msra.mxu0 %v4125_v41 }
 0x613   :  { %v4099_v52 = vadd.f32 %v5098_v5, %v5034_v43  ;;  %v5037_v54 = vadd.f32 %v5036_v56, %v5035_v12  ;;  %v5101_v45 = vadd.f32 %v5100_v27, %v5099_v14  ;;  %v5475_v27 = vld [vmem:[%s8128_s23] sm:$0xff]  }
 0x615   :  { %v4102_v13 = vadd.f32 %v5101_v45, %v5037_v54  ;;  %v5478_v54 = vld [vmem:[%s8128_s23 + $0x18] sm:$0xff]   ;;  %v5479_v45 = vld [vmem:[%s8128_s23 + $0x20] sm:$0xff]  }
 0x617   :  { %v5038_v30 = vpop.f32.mrb[88].mxu0  ;;  %v5102_v49 = vpop.f32.mrb[64].mxu1  ;;  %v4126_v31 = vpack.c.bf16 %v4102_v13, %v4099_v52  ;;  %v5476_v52 = vld [vmem:[%s8128_s23 + $0x8] sm:$0xff]  }
 0x618   :  { %v5039_v15 = vpop.f32.mrb[89].mxu0  ;;  %v5103_v36 = vpop.f32.mrb[65].mxu1  ;;  %v5480_v13 = vld [vmem:[%s8128_s23 + $0x28] sm:$0xff]  }
 0x619   :  { %v5040_v61 = vadd.f32 %v5039_v15, %v5038_v30  ;;  %v5104_v35 = vadd.f32 %v5103_v36, %v5102_v49  ;;  %v5041_v53 = vpop.f32.mrb[90].mxu0  ;;  %v5105_v23 = vpop.f32.mrb[66].mxu1  ;;  %5291 = vmatprep.subr.bf16.mxu0 %v4126_v31  ;;  %v5481_v30 = vld [vmem:[%s8128_s23 + $0x30] sm:$0xff]   ;;  %v5482_v49 = vld [vmem:[%s8128_s23 + $0x38] sm:$0xff]   ;;  %v5484_v15 = vld [vmem:[%s8129_s14 + $0x8] sm:$0xff]  }
 0x61a   :  { %v5042_v18 = vpop.f32.mrb[91].mxu0  ;;  %v5106_v19 = vpop.f32.mrb[67].mxu1  ;;  %5292 = vmatpush3.bf16.msra.mxu0 %v4126_v31  ;;  %v5483_v31 = vld [vmem:[%s8129_s14] sm:$0xff]   ;;  %v5485_v36 = vld [vmem:[%s8129_s14 + $0x10] sm:$0xff]  }
 0x61b   :  { %v4107_v34 = vadd.f32 %v5104_v35, %v5040_v61  ;;  %v5043_v2 = vadd.f32 %v5042_v18, %v5041_v53  ;;  %v5107_v26 = vadd.f32 %v5106_v19, %v5105_v23  ;;  %v5764_v44 = vpop.eup %5763  ;;  %v5486_v61 = vld [vmem:[%s8129_s14 + $0x18] sm:$0xff]   ;;  %v5487_v35 = vld [vmem:[%s8129_s14 + $0x20] sm:$0xff]   ;;  %v5488_v53 = vld [vmem:[%s8129_s14 + $0x28] sm:$0xff]  }
 0x61c   :  { %v428_v14 = vmul.f32 %v5764_v44, %v7982_v8  ;;  %v5477_v8 = vld [vmem:[%s8128_s23 + $0x10] sm:$0xff]  }
 0x61d   :  { %v4110_v60 = vadd.f32 %v5107_v26, %v5043_v2  ;;  %v5489_v26 = vld [vmem:[%s8129_s14 + $0x30] sm:$0xff]  }
 0x61e   :  { %v429_v56 = vpack.c.bf16 %v428_v14, %v428_v14 }
 0x61f   :  { %v5044_v58 = vpop.f32.mrb[92].mxu0  ;;  %v5108_v28 = vpop.f32.mrb[68].mxu1  ;;  %v4127_v3 = vpack.c.bf16 %v4110_v60, %v4107_v34  ;;  %v5490_v60 = vld [vmem:[%s8129_s14 + $0x38] sm:$0xff]  }
 0x620   :  { %v5045_v0 = vpop.f32.mrb[93].mxu0  ;;  %v5109_v38 = vpop.f32.mrb[69].mxu1 }
 0x621   :  { %v5046_v16 = vadd.f32 %v5045_v0, %v5044_v58  ;;  %v5110_v51 = vadd.f32 %v5109_v38, %v5108_v28  ;;  %v5047_v42 = vpop.f32.mrb[94].mxu0  ;;  %v5111_v50 = vpop.f32.mrb[70].mxu1  ;;  %5293 = vmatprep.subr.bf16.mxu0 %v4127_v3  ;;  %v4792_v58 = vld [vmem:[#allocation14] ss:$0 sm:$0xff]  ;;  %v4498_v38 = vld [vmem:[#allocation16] sm:$0xff] }
 0x622   :  { %v5048_v57 = vpop.f32.mrb[95].mxu0  ;;  %v5112_v6 = vpop.f32.mrb[71].mxu1  ;;  %5294 = vmatpush3.bf16.msra.mxu0 %v4127_v3 }
 0x623   :  { %v4115_v21 = vadd.f32 %v5110_v51, %v5046_v16  ;;  %v5049_v1 = vadd.f32 %v5048_v57, %v5047_v42  ;;  %v5113_v63 = vadd.f32 %v5112_v6, %v5111_v50  ;;  %v4801_v6 = vld [vmem:[#allocation17] ss:$0 sm:$0xff] }
 0x625   :  { %v4118_v4 = vadd.f32 %v5113_v63, %v5049_v1 }
 0x627   :  { %v4128_v46 = vpack.c.bf16 %v4118_v4, %v4115_v21 }
 0x629   :  { %5295 = vmatprep.subr.bf16.mxu0 %v4128_v46 }
 0x62a   :  { %5296 = vmatpush3.bf16.msra.mxu0 %v4128_v46 }
 0x62b   :  { %5337 = vmatprep.subr.bf16.mxu0 %v8126_v32 }
 0x62d   :  { %5298 = vmatmul.mubr.bf16.vlgmr.msra.gmra.mrb[96].mxu0 %v7890_v20 }
 0x62e   :  { %5301 = vmatprep.mubr.bf16.mxu0 %v7888_v17  ;;  %5338 = vmatpush3.bf16.msra.mxu0 %v5483_v31 }
 0x62f   :  { %5339 = vmatprep.subr.bf16.mxu0 %v8126_v32 }
 0x632   :  { %5340 = vmatpush3.bf16.msra.mxu0 %v5484_v15 }
 0x633   :  { %5341 = vmatprep.subr.bf16.mxu0 %v8126_v32 }
 0x635   :  { %5302 = vmatmul.mubr.bf16.gmra.mrb[100].mxu0 %v7896_v48 }
 0x636   :  { %5353 = vmatprep.mubr.msk.bf16.mxu0 %vm6017_vm11, %v8126_v32  ;;  %5342 = vmatpush3.bf16.msra.mxu0 %v5485_v36 }
 0x637   :  { %5343 = vmatprep.subr.bf16.mxu0 %v8126_v32 }
 0x63a   :  { %5344 = vmatpush3.bf16.msra.mxu0 %v5486_v61 }
 0x63b   :  { %5345 = vmatprep.subr.bf16.mxu0 %v8126_v32 }
 0x63e   :  { %5346 = vmatpush3.bf16.msra.mxu0 %v5487_v35 }
 0x63f   :  { %5347 = vmatprep.subr.bf16.mxu0 %v8126_v32 }
 0x642   :  { %5348 = vmatpush3.bf16.msra.mxu0 %v5488_v53 }
 0x643   :  { %5349 = vmatprep.subr.bf16.mxu0 %v8126_v32 }
 0x646   :  { %5350 = vmatpush3.bf16.msra.mxu0 %v5489_v26 }
 0x647   :  { %5351 = vmatprep.subr.bf16.mxu0 %v8126_v32 }
 0x64a   :  { %5352 = vmatpush3.bf16.msra.mxu0 %v5490_v60 }
 0x700   :  { %v5299_v62 = vpop.f32.mrb[96].mxu0 }
 0x701   :  { %v4292_v33 = vpop.f32.mrb[97].mxu0  ;;  %v4332_v9 = vadd.f32 %v5299_v62, %v4790_v10 }
 0x702   :  { %v5300_v39 = vpop.f32.mrb[98].mxu0  ;;  %v4330_v17 = vadd.f32 %v4790_v10, %v4292_v33 }
 0x703   :  { %v4333_v20 = vadd.f32 %v5300_v39, %v4790_v10  ;;  %v4295_v47 = vpop.f32.mrb[99].mxu0 }
 0x704   :  { %v4331_v37 = vadd.f32 %v4790_v10, %v4295_v47 }
 0x705   :  { %v4339_v48 = vpack.c.bf16 %v4333_v20, %v4332_v9 }
 0x706   :  { %v4338_v29 = vpack.c.bf16 %v4331_v37, %v4330_v17 }
 0x708   :  { %v5303_v55 = vpop.f32.mrb[100].mxu0  ;;  %5306 = vmatpush3.bf16.msra.mxu1 %v4338_v29 }
 0x709   :  { %v4308_v24 = vpop.f32.mrb[101].mxu0  ;;  %5307 = vmatprep.subr.bf16.mxu1 %v8126_v32  ;;  %v4336_v11 = vadd.f32 %v5303_v55, %v4790_v10 }
 0x70a   :  { %v5304_v40 = vpop.f32.mrb[102].mxu0  ;;  %v4334_v22 = vadd.f32 %v4790_v10, %v4308_v24 }
 0x70b   :  { %v4337_v7 = vadd.f32 %v5304_v40, %v4790_v10  ;;  %v4311_v41 = vpop.f32.mrb[103].mxu0 }
 0x70c   :  { %v4335_v43 = vadd.f32 %v4790_v10, %v4311_v41  ;;  %5308 = vmatpush3.bf16.msra.mxu1 %v4339_v48 }
 0x70d   :  { %v4341_v5 = vpack.c.bf16 %v4337_v7, %v4336_v11  ;;  %5309 = vmatprep.subr.bf16.mxu1 %v8126_v32 }
 0x70e   :  { %v4340_v12 = vpack.c.bf16 %v4335_v43, %v4334_v22 }
 0x710   :  { %5310 = vmatpush3.bf16.msra.mxu1 %v4340_v12 }
 0x711   :  { %5311 = vmatprep.subr.bf16.mxu1 %v8126_v32 }
 0x714   :  { %5312 = vmatpush3.bf16.msra.mxu1 %v4341_v5 }
 0x715   :  { %5317 = vmatprep.subr.bf16.mxu1 %v8126_v32 }
 0x717   :  { %5314 = vmatmul.mubr.msk.bf16.vlgmr.msra.gmra.mrb[72].mxu1 %vm422_vm4, %v429_v56 }
 0x718   :  { %5318 = vmatpush3.bf16.msra.mxu1 %v5475_v27  ;;  %5333 = vmatprep.mubr.msk.bf16.mxu1 %vm6017_vm11, %v8126_v32 }
 0x719   :  { %5319 = vmatprep.subr.bf16.mxu1 %v8126_v32 }
 0x71c   :  { %5320 = vmatpush3.bf16.msra.mxu1 %v5476_v52 }
 0x71d   :  { %5321 = vmatprep.subr.bf16.mxu1 %v8126_v32 }
 0x720   :  { %5322 = vmatpush3.bf16.msra.mxu1 %v5477_v8 }
 0x721   :  { %5323 = vmatprep.subr.bf16.mxu1 %v8126_v32 }
 0x724   :  { %5324 = vmatpush3.bf16.msra.mxu1 %v5478_v54 }
 0x725   :  { %5325 = vmatprep.subr.bf16.mxu1 %v8126_v32 }
 0x728   :  { %5326 = vmatpush3.bf16.msra.mxu1 %v5479_v45 }
 0x729   :  { %5327 = vmatprep.subr.bf16.mxu1 %v8126_v32 }
 0x72c   :  { %5328 = vmatpush3.bf16.msra.mxu1 %v5480_v13 }
 0x72d   :  { %5329 = vmatprep.subr.bf16.mxu1 %v8126_v32 }
 0x730   :  { %5330 = vmatpush3.bf16.msra.mxu1 %v5481_v30 }
 0x731   :  { %5331 = vmatprep.subr.bf16.mxu1 %v8126_v32 }
 0x734   :  { %5332 = vmatpush3.bf16.msra.mxu1 %v5482_v49 }
 0x7ea   :  { %v4379_v23 = vpop.f32.mrb[72].mxu1 }
 0x7eb   :  { %v4385_v18 = vpack.c.bf16 %v4379_v23, %v4379_v23  ;;  %v5315_v19 = vpop.f32.mrb[73].mxu1 }
 0x7ec   :  { %v4382_v34 = vpop.f32.mrb[74].mxu1 }
 0x7ed   :  { %5334 = vmatmul.mubr.bf16.vlgmr.msra.gmra.mrb[76].mxu1 %v4385_v18  ;;  %v5316_v2 = vpop.f32.mrb[75].mxu1 }
 0x8c0   :  { %v4491_v28 = vpop.f32.mrb[76].mxu1 }
 0x8c1   :  { %v4492_v3 = vadd.f32 %v4792_v58, %v4491_v28  ;;  %v5335_v0 = vpop.f32.mrb[77].mxu1 }
 0x8c2   :  { %v4494_v16 = vpop.f32.mrb[78].mxu1 }
 0x8c3   :  { %v4497_v51 = vmax.f32 %v4492_v3, 0.0  ;;  %v5336_v42 = vpop.f32.mrb[79].mxu1 }
 0x8c5   :  { %v4499_v50 = vmul.f32 %v4498_v38, %v4497_v51 }
 0x8c7   :  { %v4500_v57 = vpack.c.bf16 %v4499_v50, %v4499_v50 }
 0x8c9   :  { %5354 = vmatmul.mubr.bf16.vlgmr.msra.gmra.mrb[104].mxu0 %v4500_v57 }
 0x99c   :  { %v4606_v21 = vpop.f32.mrb[104].mxu0 }
 0x99d   :  { %v4607_v1 = vadd.f32 %v4801_v6, %v4606_v21  ;;  %v5355_v32 = vpop.f32.mrb[105].mxu0 }
 0x99e   :  { %v4609_v63 = vpop.f32.mrb[106].mxu0 }
 0x99f   :  { %4612 = vmax.xlane.f32.xlu1 %v4607_v1  ;;  %v5356_v4 = vpop.f32.mrb[107].mxu0 }
 0xa2c   :  { %v4613_v46 = vpop.xlane.xlu1 %4612 }
 0xa2d   :  { %v4614_v25 = vsub.f32 %v4607_v1, %v4613_v46 }
 0xa2f   :  { %v4615_v59 = vmul.f32 1.442695, %v4614_v25 }
 0xa31   :  { %5765 = vpow2.f32 %v4615_v59 }
 0xa3b   :  { %v5766_v62 = vpop.eup %5765 }
 0xa3c   :  { %4617 = vadd.xlane.f32.xlu0 %v5766_v62 }
 0xac9   :  { %v4618_v10 = vpop.xlane.xlu0 %4617 }
 0xaca   :  { %5767 = vlog2.f32 %v4618_v10 }
 0xad4   :  { %v5768_v33 = vpop.eup %5767 }
 0xad5   :  { %v4620_v39 = vmul.f32 0.6931472, %v5768_v33 }
 0xad7   :  { %v4621_v9 = vsub.f32 %v4614_v25, %v4620_v39 }
 0xad9   :  { %4622 = vst [vmem:[%s8130_s6] sm:$0xff] %v4621_v9 }
 0xada   :  { %4627 = vsyncpa [#allocation3], 1 }
 0xadb   :  { %4628 = vsyncpa [#allocation12], 1 }
 0xadc   :  { %4629 = vsyncpa [#allocation15], 1 }
 0xadd   :  { %4630 = vsyncpa [#allocation18], 1 }
 0xade   :  { %4631 = vsyncpa [#allocation4], 1 }
 0xadf   :  { %4632 = vsyncpa [#allocation6], 1 }
 0xae0   :  { %4633 = vsyncpa [#allocation9], 1 }

</bundles_post_ra>
